<compile_context>
chip_gen: v6e
topology: v6e:2x2x1
jax: 0.10.0
libtpu: 0.0.40
codegen_flags: <defaults>
</compile_context>

<pallas_src>
import jax
import jax.numpy as jnp
from jax.experimental import pallas as pl
from jax.experimental.pallas import tpu as pltpu

SEQ_LEN = 4
N_FEATURES = 384
HIDDEN_DIM = 256      # rnn1 hidden size
EMBEDDING_DIM = 128   # rnn2 hidden size


def _gate_nonlin(pre, H):
    """Split pre-activations (PyTorch gate order i, f, g, o) and apply nonlinearities."""
    i = jax.nn.sigmoid(pre[:, 0 * H:1 * H])
    f = jax.nn.sigmoid(pre[:, 1 * H:2 * H])
    g = jnp.tanh(pre[:, 2 * H:3 * H])
    o = jax.nn.sigmoid(pre[:, 3 * H:4 * H])
    return i, f, g, o


def encoder_kernel(x_ref, w1i_ref, w1h_ref, b1_ref, w2_ref, b2_ref, out_ref):
    B = out_ref.shape[0]
    TB = x_ref.shape[0]
    T = TB // B
    H1 = w1h_ref.shape[0]
    H2 = out_ref.shape[1]

    # ---- Layer-1 input projection for ALL timesteps: one big MXU matmul, bias folded. ----
    xw1 = (jnp.dot(x_ref[...], w1i_ref[...], preferred_element_type=jnp.float32)
           + b1_ref[...])                                            # (T*B, 4*H1) f32

    w1h = w1h_ref[...]       # (H1, 4*H1)       bf16
    w2 = w2_ref[...]         # (H1+H2, 4*H2)    bf16  ([W2_ih ; W2_hh] stacked)
    b2 = b2_ref[...]         # (1, 4*H2)        f32

    h1 = jnp.zeros((B, H1), jnp.float32)
    c1 = jnp.zeros((B, H1), jnp.float32)
    h2 = jnp.zeros((B, H2), jnp.float32)
    c2 = jnp.zeros((B, H2), jnp.float32)

    for t in range(T):       # T = 4, static unroll
        # ---- layer-1 cell: only the small recurrent matmul is on the serial path ----
        pre1 = xw1[t * B:(t + 1) * B, :] + jnp.dot(
            h1.astype(jnp.bfloat16), w1h, preferred_element_type=jnp.float32)
        i1, f1, g1, o1 = _gate_nonlin(pre1, H1)
        c1 = f1 * c1 + i1 * g1
        h1 = o1 * jnp.tanh(c1)

        # ---- layer-2 cell (consumes h1 just produced); fused [h1|h2] @ [W_ih;W_hh] ----
        hh = jnp.concatenate([h1, h2], axis=1).astype(jnp.bfloat16)  # (B, H1+H2), 128-lane aligned
        pre2 = jnp.dot(hh, w2, preferred_element_type=jnp.float32) + b2
        i2, f2, g2, o2 = _gate_nonlin(pre2, H2)
        c2 = f2 * c2 + i2 * g2
        h2 = o2 * jnp.tanh(c2)

    # hidden_n / hidden_n.norm(dim=1, keepdim=True)  (rsqrt + mul; tiny eps guards 0-norm)
    sq = jnp.sum(h2 * h2, axis=1, keepdims=True)
    out_ref[...] = h2 * jax.lax.rsqrt(sq + 1e-12)


def encoder_forward(x, params):
    B, T, F = x.shape
    w1i, w1h, b1, w2i, w2h, b2 = params

    # Time-major flat layout: (B, T, F) -> (T, B, F) -> (T*B, F); per-step slab t is rows
    # [t*B, (t+1)*B), contiguous and 8-sublane aligned.  MXU operands are bf16
    # (accumulation stays f32 inside the kernel); biases stay f32.
    x_flat = jnp.transpose(x, (1, 0, 2)).reshape(T * B, F).astype(jnp.bfloat16)
    w1i_b = w1i.astype(jnp.bfloat16)
    w1h_b = w1h.astype(jnp.bfloat16)
    # Stack layer-2 input / recurrent weights so the per-step projection is ONE matmul.
    w2_b = jnp.concatenate([w2i, w2h], axis=0).astype(jnp.bfloat16)

    # TODO(synk): for B >= 16, add a batch grid axis with dimension_semantics=("parallel",)
    #             so multi-TensorCore chips split the batch; at B = 8 a single core keeps
    #             clean 8-sublane alignment.
    return pl.pallas_call(
        encoder_kernel,
        out_shape=jax.ShapeDtypeStruct((B, EMBEDDING_DIM), jnp.float32),
        in_specs=[pl.BlockSpec(memory_space=pltpu.MemorySpace.VMEM)] * 6,
        out_specs=pl.BlockSpec(memory_space=pltpu.MemorySpace.VMEM),
    )(x_flat, w1i_b, w1h_b, b1, w2_b, b2)


def init_params(key):
    """Deterministic parameter init mimicking PyTorch LSTM's U(-1/sqrt(H), 1/sqrt(H))."""
    ks = jax.random.split(key, 6)

    def u(k, shape, H):
        bound = 1.0 / jnp.sqrt(jnp.asarray(H, jnp.float32))
        return jax.random.uniform(k, shape, jnp.float32, -bound, bound)

    H1, H2, F = HIDDEN_DIM, EMBEDDING_DIM, N_FEATURES
    # Stored pre-transposed: (in_dim, 4*H); bias = bias_ih + bias_hh (combined).
    w1i = u(ks[0], (F, 4 * H1), H1)
    w1h = u(ks[1], (H1, 4 * H1), H1)
    b1 = u(ks[2], (1, 4 * H1), H1) * 2.0
    w2i = u(ks[3], (H1, 4 * H2), H2)
    w2h = u(ks[4], (H2, 4 * H2), H2)
    b2 = u(ks[5], (1, 4 * H2), H2) * 2.0
    return (w1i, w1h, b1, w2i, w2h, b2)


def encoder_reference(x, params):
    """Pure-JAX reference of the same forward pass (same bf16-weight / f32-accum math)."""
    w1i, w1h, b1, w2i, w2h, b2 = params
    w1i = w1i.astype(jnp.bfloat16)
    w1h = w1h.astype(jnp.bfloat16)
    w2i = w2i.astype(jnp.bfloat16)
    w2h = w2h.astype(jnp.bfloat16)
    B, T, _ = x.shape

    def cell(x_t, h, c, w_ih, w_hh, b, H):
        pre = (jnp.dot(x_t.astype(jnp.bfloat16), w_ih, preferred_element_type=jnp.float32)
               + jnp.dot(h.astype(jnp.bfloat16), w_hh, preferred_element_type=jnp.float32)
               + b)
        i, f, g, o = _gate_nonlin(pre, H)
        c_new = f * c + i * g
        return o * jnp.tanh(c_new), c_new

    h1 = jnp.zeros((B, HIDDEN_DIM), jnp.float32)
    c1 = jnp.zeros((B, HIDDEN_DIM), jnp.float32)
    h2 = jnp.zeros((B, EMBEDDING_DIM), jnp.float32)
    c2 = jnp.zeros((B, EMBEDDING_DIM), jnp.float32)
    for t in range(T):
        h1, c1 = cell(x[:, t, :], h1, c1, w1i, w1h, b1, HIDDEN_DIM)
        h2, c2 = cell(h1, h2, c2, w2i, w2h, b2, EMBEDDING_DIM)
    sq = jnp.sum(h2 * h2, axis=1, keepdims=True)
    return h2 * jax.lax.rsqrt(sq + 1e-12)


if __name__ == "__main__":
    key = jax.random.PRNGKey(0)
    k_params, k_x = jax.random.split(key)

    params = init_params(k_params)
    B = 8
    x = jax.random.normal(k_x, (B, SEQ_LEN, N_FEATURES), jnp.float32)

    out = jax.block_until_ready(encoder_forward(x, params))
    ref = jax.block_until_ready(encoder_reference(x, params))

    assert out.shape == (B, EMBEDDING_DIM)
    assert jnp.allclose(out, ref, atol=1e-4, rtol=1e-4), float(jnp.max(jnp.abs(out - ref)))

    print("KERNEL_OK")
</pallas_src>

<mosaic_0001>
module attributes {stable_mosaic.version = 11 : i64} {
  func.func @encoder_kernel(%arg0: memref<32x384xbf16, #tpu.memory_space<vmem>>, %arg1: memref<384x1024xbf16, #tpu.memory_space<vmem>>, %arg2: memref<256x1024xbf16, #tpu.memory_space<vmem>>, %arg3: memref<1x1024xf32, #tpu.memory_space<vmem>>, %arg4: memref<384x512xbf16, #tpu.memory_space<vmem>>, %arg5: memref<1x512xf32, #tpu.memory_space<vmem>>, %arg6: memref<8x128xf32, #tpu.memory_space<vmem>>) attributes {dimension_semantics = [], scalar_prefetch = 0 : i64, scratch_operands = 0 : i64, tpu.core_type = #tpu.core_type<tc>} {
    %c0 = arith.constant 0 : index
    %c0_0 = arith.constant 0 : index
    %0 = vector.load %arg0[%c0, %c0_0] : memref<32x384xbf16, #tpu.memory_space<vmem>>, vector<32x384xbf16>
    %c0_1 = arith.constant 0 : index
    %c0_2 = arith.constant 0 : index
    %1 = vector.load %arg1[%c0_1, %c0_2] : memref<384x1024xbf16, #tpu.memory_space<vmem>>, vector<384x1024xbf16>
    %cst = arith.constant dense<0.000000e+00> : vector<32x1024xf32>
    %2 = tpu.matmul %0, %1, %cst {dimension_numbers = #tpu.dot_dimension_numbers<[1], [0], [0], [1], [0, 0, 1, 1], [], []>} : vector<32x384xbf16>, vector<384x1024xbf16>, vector<32x1024xf32> -> vector<32x1024xf32>
    %c0_3 = arith.constant 0 : index
    %c0_4 = arith.constant 0 : index
    %3 = vector.load %arg3[%c0_3, %c0_4] : memref<1x1024xf32, #tpu.memory_space<vmem>>, vector<1x1024xf32>
    %4 = vector.broadcast %3 : vector<1x1024xf32> to vector<32x1024xf32>
    %5 = arith.addf %2, %4 : vector<32x1024xf32>
    %c0_5 = arith.constant 0 : index
    %c0_6 = arith.constant 0 : index
    %6 = vector.load %arg2[%c0_5, %c0_6] : memref<256x1024xbf16, #tpu.memory_space<vmem>>, vector<256x1024xbf16>
    %c0_7 = arith.constant 0 : index
    %c0_8 = arith.constant 0 : index
    %7 = vector.load %arg4[%c0_7, %c0_8] : memref<384x512xbf16, #tpu.memory_space<vmem>>, vector<384x512xbf16>
    %c0_9 = arith.constant 0 : index
    %c0_10 = arith.constant 0 : index
    %8 = vector.load %arg5[%c0_9, %c0_10] : memref<1x512xf32, #tpu.memory_space<vmem>>, vector<1x512xf32>
    %cst_11 = arith.constant 0.000000e+00 : f32
    %9 = vector.broadcast %cst_11 : f32 to vector<8x256xf32>
    %cst_12 = arith.constant 0.000000e+00 : f32
    %10 = vector.broadcast %cst_12 : f32 to vector<8x256xf32>
    %cst_13 = arith.constant 0.000000e+00 : f32
    %11 = vector.broadcast %cst_13 : f32 to vector<8x128xf32>
    %cst_14 = arith.constant 0.000000e+00 : f32
    %12 = vector.broadcast %cst_14 : f32 to vector<8x128xf32>
    %13 = vector.extract_strided_slice %5 {offsets = [0, 0], sizes = [8, 1024], strides = [1, 1]} : vector<32x1024xf32> to vector<8x1024xf32>
    %14 = arith.truncf %9 : vector<8x256xf32> to vector<8x256xbf16>
    %cst_15 = arith.constant dense<0.000000e+00> : vector<8x1024xf32>
    %15 = tpu.matmul %14, %6, %cst_15 {dimension_numbers = #tpu.dot_dimension_numbers<[1], [0], [0], [1], [0, 0, 1, 1], [], []>} : vector<8x256xbf16>, vector<256x1024xbf16>, vector<8x1024xf32> -> vector<8x1024xf32>
    %16 = arith.addf %13, %15 : vector<8x1024xf32>
    %17 = vector.extract_strided_slice %16 {offsets = [0, 0], sizes = [8, 256], strides = [1, 1]} : vector<8x1024xf32> to vector<8x256xf32>
    %18 = arith.negf %17 : vector<8x256xf32>
    %19 = math.exp %18 : vector<8x256xf32>
    %cst_16 = arith.constant 1.000000e+00 : f32
    %20 = vector.broadcast %cst_16 : f32 to vector<8x256xf32>
    %21 = arith.addf %20, %19 : vector<8x256xf32>
    %22 = arith.divf %20, %21 : vector<8x256xf32>
    %23 = vector.extract_strided_slice %16 {offsets = [0, 256], sizes = [8, 256], strides = [1, 1]} : vector<8x1024xf32> to vector<8x256xf32>
    %24 = arith.negf %23 : vector<8x256xf32>
    %25 = math.exp %24 : vector<8x256xf32>
    %cst_17 = arith.constant 1.000000e+00 : f32
    %26 = vector.broadcast %cst_17 : f32 to vector<8x256xf32>
    %27 = arith.addf %26, %25 : vector<8x256xf32>
    %28 = arith.divf %26, %27 : vector<8x256xf32>
    %29 = vector.extract_strided_slice %16 {offsets = [0, 512], sizes = [8, 256], strides = [1, 1]} : vector<8x1024xf32> to vector<8x256xf32>
    %30 = math.tanh %29 : vector<8x256xf32>
    %31 = vector.extract_strided_slice %16 {offsets = [0, 768], sizes = [8, 256], strides = [1, 1]} : vector<8x1024xf32> to vector<8x256xf32>
    %32 = arith.negf %31 : vector<8x256xf32>
    %33 = math.exp %32 : vector<8x256xf32>
    %cst_18 = arith.constant 1.000000e+00 : f32
    %34 = vector.broadcast %cst_18 : f32 to vector<8x256xf32>
    %35 = arith.addf %34, %33 : vector<8x256xf32>
    %36 = arith.divf %34, %35 : vector<8x256xf32>
    %37 = arith.mulf %28, %10 : vector<8x256xf32>
    %38 = arith.mulf %22, %30 : vector<8x256xf32>
    %39 = arith.addf %37, %38 : vector<8x256xf32>
    %40 = math.tanh %39 : vector<8x256xf32>
    %41 = arith.mulf %36, %40 : vector<8x256xf32>
    %42 = tpu.concatenate %41, %11 in 1 : vector<8x256xf32>, vector<8x128xf32> -> vector<8x384xf32>
    %43 = arith.truncf %42 : vector<8x384xf32> to vector<8x384xbf16>
    %cst_19 = arith.constant dense<0.000000e+00> : vector<8x512xf32>
    %44 = tpu.matmul %43, %7, %cst_19 {dimension_numbers = #tpu.dot_dimension_numbers<[1], [0], [0], [1], [0, 0, 1, 1], [], []>} : vector<8x384xbf16>, vector<384x512xbf16>, vector<8x512xf32> -> vector<8x512xf32>
    %45 = vector.broadcast %8 : vector<1x512xf32> to vector<8x512xf32>
    %46 = arith.addf %44, %45 : vector<8x512xf32>
    %47 = vector.extract_strided_slice %46 {offsets = [0, 0], sizes = [8, 128], strides = [1, 1]} : vector<8x512xf32> to vector<8x128xf32>
    %48 = arith.negf %47 : vector<8x128xf32>
    %49 = math.exp %48 : vector<8x128xf32>
    %cst_20 = arith.constant 1.000000e+00 : f32
    %50 = vector.broadcast %cst_20 : f32 to vector<8x128xf32>
    %51 = arith.addf %50, %49 : vector<8x128xf32>
    %52 = arith.divf %50, %51 : vector<8x128xf32>
    %53 = vector.extract_strided_slice %46 {offsets = [0, 128], sizes = [8, 128], strides = [1, 1]} : vector<8x512xf32> to vector<8x128xf32>
    %54 = arith.negf %53 : vector<8x128xf32>
    %55 = math.exp %54 : vector<8x128xf32>
    %cst_21 = arith.constant 1.000000e+00 : f32
    %56 = vector.broadcast %cst_21 : f32 to vector<8x128xf32>
    %57 = arith.addf %56, %55 : vector<8x128xf32>
    %58 = arith.divf %56, %57 : vector<8x128xf32>
    %59 = vector.extract_strided_slice %46 {offsets = [0, 256], sizes = [8, 128], strides = [1, 1]} : vector<8x512xf32> to vector<8x128xf32>
    %60 = math.tanh %59 : vector<8x128xf32>
    %61 = vector.extract_strided_slice %46 {offsets = [0, 384], sizes = [8, 128], strides = [1, 1]} : vector<8x512xf32> to vector<8x128xf32>
    %62 = arith.negf %61 : vector<8x128xf32>
    %63 = math.exp %62 : vector<8x128xf32>
    %cst_22 = arith.constant 1.000000e+00 : f32
    %64 = vector.broadcast %cst_22 : f32 to vector<8x128xf32>
    %65 = arith.addf %64, %63 : vector<8x128xf32>
    %66 = arith.divf %64, %65 : vector<8x128xf32>
    %67 = arith.mulf %58, %12 : vector<8x128xf32>
    %68 = arith.mulf %52, %60 : vector<8x128xf32>
    %69 = arith.addf %67, %68 : vector<8x128xf32>
    %70 = math.tanh %69 : vector<8x128xf32>
    %71 = arith.mulf %66, %70 : vector<8x128xf32>
    %72 = vector.extract_strided_slice %5 {offsets = [8, 0], sizes = [8, 1024], strides = [1, 1]} : vector<32x1024xf32> to vector<8x1024xf32>
    %73 = arith.truncf %41 : vector<8x256xf32> to vector<8x256xbf16>
    %cst_23 = arith.constant dense<0.000000e+00> : vector<8x1024xf32>
    %74 = tpu.matmul %73, %6, %cst_23 {dimension_numbers = #tpu.dot_dimension_numbers<[1], [0], [0], [1], [0, 0, 1, 1], [], []>} : vector<8x256xbf16>, vector<256x1024xbf16>, vector<8x1024xf32> -> vector<8x1024xf32>
    %75 = arith.addf %72, %74 : vector<8x1024xf32>
    %76 = vector.extract_strided_slice %75 {offsets = [0, 0], sizes = [8, 256], strides = [1, 1]} : vector<8x1024xf32> to vector<8x256xf32>
    %77 = arith.negf %76 : vector<8x256xf32>
    %78 = math.exp %77 : vector<8x256xf32>
    %cst_24 = arith.constant 1.000000e+00 : f32
    %79 = vector.broadcast %cst_24 : f32 to vector<8x256xf32>
    %80 = arith.addf %79, %78 : vector<8x256xf32>
    %81 = arith.divf %79, %80 : vector<8x256xf32>
    %82 = vector.extract_strided_slice %75 {offsets = [0, 256], sizes = [8, 256], strides = [1, 1]} : vector<8x1024xf32> to vector<8x256xf32>
    %83 = arith.negf %82 : vector<8x256xf32>
    %84 = math.exp %83 : vector<8x256xf32>
    %cst_25 = arith.constant 1.000000e+00 : f32
    %85 = vector.broadcast %cst_25 : f32 to vector<8x256xf32>
    %86 = arith.addf %85, %84 : vector<8x256xf32>
    %87 = arith.divf %85, %86 : vector<8x256xf32>
    %88 = vector.extract_strided_slice %75 {offsets = [0, 512], sizes = [8, 256], strides = [1, 1]} : vector<8x1024xf32> to vector<8x256xf32>
    %89 = math.tanh %88 : vector<8x256xf32>
    %90 = vector.extract_strided_slice %75 {offsets = [0, 768], sizes = [8, 256], strides = [1, 1]} : vector<8x1024xf32> to vector<8x256xf32>
    %91 = arith.negf %90 : vector<8x256xf32>
    %92 = math.exp %91 : vector<8x256xf32>
    %cst_26 = arith.constant 1.000000e+00 : f32
    %93 = vector.broadcast %cst_26 : f32 to vector<8x256xf32>
    %94 = arith.addf %93, %92 : vector<8x256xf32>
    %95 = arith.divf %93, %94 : vector<8x256xf32>
    %96 = arith.mulf %87, %39 : vector<8x256xf32>
    %97 = arith.mulf %81, %89 : vector<8x256xf32>
    %98 = arith.addf %96, %97 : vector<8x256xf32>
    %99 = math.tanh %98 : vector<8x256xf32>
    %100 = arith.mulf %95, %99 : vector<8x256xf32>
    %101 = tpu.concatenate %100, %71 in 1 : vector<8x256xf32>, vector<8x128xf32> -> vector<8x384xf32>
    %102 = arith.truncf %101 : vector<8x384xf32> to vector<8x384xbf16>
    %cst_27 = arith.constant dense<0.000000e+00> : vector<8x512xf32>
    %103 = tpu.matmul %102, %7, %cst_27 {dimension_numbers = #tpu.dot_dimension_numbers<[1], [0], [0], [1], [0, 0, 1, 1], [], []>} : vector<8x384xbf16>, vector<384x512xbf16>, vector<8x512xf32> -> vector<8x512xf32>
    %104 = vector.broadcast %8 : vector<1x512xf32> to vector<8x512xf32>
    %105 = arith.addf %103, %104 : vector<8x512xf32>
    %106 = vector.extract_strided_slice %105 {offsets = [0, 0], sizes = [8, 128], strides = [1, 1]} : vector<8x512xf32> to vector<8x128xf32>
    %107 = arith.negf %106 : vector<8x128xf32>
    %108 = math.exp %107 : vector<8x128xf32>
    %cst_28 = arith.constant 1.000000e+00 : f32
    %109 = vector.broadcast %cst_28 : f32 to vector<8x128xf32>
    %110 = arith.addf %109, %108 : vector<8x128xf32>
    %111 = arith.divf %109, %110 : vector<8x128xf32>
    %112 = vector.extract_strided_slice %105 {offsets = [0, 128], sizes = [8, 128], strides = [1, 1]} : vector<8x512xf32> to vector<8x128xf32>
    %113 = arith.negf %112 : vector<8x128xf32>
    %114 = math.exp %113 : vector<8x128xf32>
    %cst_29 = arith.constant 1.000000e+00 : f32
    %115 = vector.broadcast %cst_29 : f32 to vector<8x128xf32>
    %116 = arith.addf %115, %114 : vector<8x128xf32>
    %117 = arith.divf %115, %116 : vector<8x128xf32>
    %118 = vector.extract_strided_slice %105 {offsets = [0, 256], sizes = [8, 128], strides = [1, 1]} : vector<8x512xf32> to vector<8x128xf32>
    %119 = math.tanh %118 : vector<8x128xf32>
    %120 = vector.extract_strided_slice %105 {offsets = [0, 384], sizes = [8, 128], strides = [1, 1]} : vector<8x512xf32> to vector<8x128xf32>
    %121 = arith.negf %120 : vector<8x128xf32>
    %122 = math.exp %121 : vector<8x128xf32>
    %cst_30 = arith.constant 1.000000e+00 : f32
    %123 = vector.broadcast %cst_30 : f32 to vector<8x128xf32>
    %124 = arith.addf %123, %122 : vector<8x128xf32>
    %125 = arith.divf %123, %124 : vector<8x128xf32>
    %126 = arith.mulf %117, %69 : vector<8x128xf32>
    %127 = arith.mulf %111, %119 : vector<8x128xf32>
    %128 = arith.addf %126, %127 : vector<8x128xf32>
    %129 = math.tanh %128 : vector<8x128xf32>
    %130 = arith.mulf %125, %129 : vector<8x128xf32>
    %131 = vector.extract_strided_slice %5 {offsets = [16, 0], sizes = [8, 1024], strides = [1, 1]} : vector<32x1024xf32> to vector<8x1024xf32>
    %132 = arith.truncf %100 : vector<8x256xf32> to vector<8x256xbf16>
    %cst_31 = arith.constant dense<0.000000e+00> : vector<8x1024xf32>
    %133 = tpu.matmul %132, %6, %cst_31 {dimension_numbers = #tpu.dot_dimension_numbers<[1], [0], [0], [1], [0, 0, 1, 1], [], []>} : vector<8x256xbf16>, vector<256x1024xbf16>, vector<8x1024xf32> -> vector<8x1024xf32>
    %134 = arith.addf %131, %133 : vector<8x1024xf32>
    %135 = vector.extract_strided_slice %134 {offsets = [0, 0], sizes = [8, 256], strides = [1, 1]} : vector<8x1024xf32> to vector<8x256xf32>
    %136 = arith.negf %135 : vector<8x256xf32>
    %137 = math.exp %136 : vector<8x256xf32>
    %cst_32 = arith.constant 1.000000e+00 : f32
    %138 = vector.broadcast %cst_32 : f32 to vector<8x256xf32>
    %139 = arith.addf %138, %137 : vector<8x256xf32>
    %140 = arith.divf %138, %139 : vector<8x256xf32>
    %141 = vector.extract_strided_slice %134 {offsets = [0, 256], sizes = [8, 256], strides = [1, 1]} : vector<8x1024xf32> to vector<8x256xf32>
    %142 = arith.negf %141 : vector<8x256xf32>
    %143 = math.exp %142 : vector<8x256xf32>
    %cst_33 = arith.constant 1.000000e+00 : f32
    %144 = vector.broadcast %cst_33 : f32 to vector<8x256xf32>
    %145 = arith.addf %144, %143 : vector<8x256xf32>
    %146 = arith.divf %144, %145 : vector<8x256xf32>
    %147 = vector.extract_strided_slice %134 {offsets = [0, 512], sizes = [8, 256], strides = [1, 1]} : vector<8x1024xf32> to vector<8x256xf32>
    %148 = math.tanh %147 : vector<8x256xf32>
    %149 = vector.extract_strided_slice %134 {offsets = [0, 768], sizes = [8, 256], strides = [1, 1]} : vector<8x1024xf32> to vector<8x256xf32>
    %150 = arith.negf %149 : vector<8x256xf32>
    %151 = math.exp %150 : vector<8x256xf32>
    %cst_34 = arith.constant 1.000000e+00 : f32
    %152 = vector.broadcast %cst_34 : f32 to vector<8x256xf32>
    %153 = arith.addf %152, %151 : vector<8x256xf32>
    %154 = arith.divf %152, %153 : vector<8x256xf32>
    %155 = arith.mulf %146, %98 : vector<8x256xf32>
    %156 = arith.mulf %140, %148 : vector<8x256xf32>
    %157 = arith.addf %155, %156 : vector<8x256xf32>
    %158 = math.tanh %157 : vector<8x256xf32>
    %159 = arith.mulf %154, %158 : vector<8x256xf32>
    %160 = tpu.concatenate %159, %130 in 1 : vector<8x256xf32>, vector<8x128xf32> -> vector<8x384xf32>
    %161 = arith.truncf %160 : vector<8x384xf32> to vector<8x384xbf16>
    %cst_35 = arith.constant dense<0.000000e+00> : vector<8x512xf32>
    %162 = tpu.matmul %161, %7, %cst_35 {dimension_numbers = #tpu.dot_dimension_numbers<[1], [0], [0], [1], [0, 0, 1, 1], [], []>} : vector<8x384xbf16>, vector<384x512xbf16>, vector<8x512xf32> -> vector<8x512xf32>
    %163 = vector.broadcast %8 : vector<1x512xf32> to vector<8x512xf32>
    %164 = arith.addf %162, %163 : vector<8x512xf32>
    %165 = vector.extract_strided_slice %164 {offsets = [0, 0], sizes = [8, 128], strides = [1, 1]} : vector<8x512xf32> to vector<8x128xf32>
    %166 = arith.negf %165 : vector<8x128xf32>
    %167 = math.exp %166 : vector<8x128xf32>
    %cst_36 = arith.constant 1.000000e+00 : f32
    %168 = vector.broadcast %cst_36 : f32 to vector<8x128xf32>
    %169 = arith.addf %168, %167 : vector<8x128xf32>
    %170 = arith.divf %168, %169 : vector<8x128xf32>
    %171 = vector.extract_strided_slice %164 {offsets = [0, 128], sizes = [8, 128], strides = [1, 1]} : vector<8x512xf32> to vector<8x128xf32>
    %172 = arith.negf %171 : vector<8x128xf32>
    %173 = math.exp %172 : vector<8x128xf32>
    %cst_37 = arith.constant 1.000000e+00 : f32
    %174 = vector.broadcast %cst_37 : f32 to vector<8x128xf32>
    %175 = arith.addf %174, %173 : vector<8x128xf32>
    %176 = arith.divf %174, %175 : vector<8x128xf32>
    %177 = vector.extract_strided_slice %164 {offsets = [0, 256], sizes = [8, 128], strides = [1, 1]} : vector<8x512xf32> to vector<8x128xf32>
    %178 = math.tanh %177 : vector<8x128xf32>
    %179 = vector.extract_strided_slice %164 {offsets = [0, 384], sizes = [8, 128], strides = [1, 1]} : vector<8x512xf32> to vector<8x128xf32>
    %180 = arith.negf %179 : vector<8x128xf32>
    %181 = math.exp %180 : vector<8x128xf32>
    %cst_38 = arith.constant 1.000000e+00 : f32
    %182 = vector.broadcast %cst_38 : f32 to vector<8x128xf32>
    %183 = arith.addf %182, %181 : vector<8x128xf32>
    %184 = arith.divf %182, %183 : vector<8x128xf32>
    %185 = arith.mulf %176, %128 : vector<8x128xf32>
    %186 = arith.mulf %170, %178 : vector<8x128xf32>
    %187 = arith.addf %185, %186 : vector<8x128xf32>
    %188 = math.tanh %187 : vector<8x128xf32>
    %189 = arith.mulf %184, %188 : vector<8x128xf32>
    %190 = vector.extract_strided_slice %5 {offsets = [24, 0], sizes = [8, 1024], strides = [1, 1]} : vector<32x1024xf32> to vector<8x1024xf32>
    %191 = arith.truncf %159 : vector<8x256xf32> to vector<8x256xbf16>
    %cst_39 = arith.constant dense<0.000000e+00> : vector<8x1024xf32>
    %192 = tpu.matmul %191, %6, %cst_39 {dimension_numbers = #tpu.dot_dimension_numbers<[1], [0], [0], [1], [0, 0, 1, 1], [], []>} : vector<8x256xbf16>, vector<256x1024xbf16>, vector<8x1024xf32> -> vector<8x1024xf32>
    %193 = arith.addf %190, %192 : vector<8x1024xf32>
    %194 = vector.extract_strided_slice %193 {offsets = [0, 0], sizes = [8, 256], strides = [1, 1]} : vector<8x1024xf32> to vector<8x256xf32>
    %195 = arith.negf %194 : vector<8x256xf32>
    %196 = math.exp %195 : vector<8x256xf32>
    %cst_40 = arith.constant 1.000000e+00 : f32
    %197 = vector.broadcast %cst_40 : f32 to vector<8x256xf32>
    %198 = arith.addf %197, %196 : vector<8x256xf32>
    %199 = arith.divf %197, %198 : vector<8x256xf32>
    %200 = vector.extract_strided_slice %193 {offsets = [0, 256], sizes = [8, 256], strides = [1, 1]} : vector<8x1024xf32> to vector<8x256xf32>
    %201 = arith.negf %200 : vector<8x256xf32>
    %202 = math.exp %201 : vector<8x256xf32>
    %cst_41 = arith.constant 1.000000e+00 : f32
    %203 = vector.broadcast %cst_41 : f32 to vector<8x256xf32>
    %204 = arith.addf %203, %202 : vector<8x256xf32>
    %205 = arith.divf %203, %204 : vector<8x256xf32>
    %206 = vector.extract_strided_slice %193 {offsets = [0, 512], sizes = [8, 256], strides = [1, 1]} : vector<8x1024xf32> to vector<8x256xf32>
    %207 = math.tanh %206 : vector<8x256xf32>
    %208 = vector.extract_strided_slice %193 {offsets = [0, 768], sizes = [8, 256], strides = [1, 1]} : vector<8x1024xf32> to vector<8x256xf32>
    %209 = arith.negf %208 : vector<8x256xf32>
    %210 = math.exp %209 : vector<8x256xf32>
    %cst_42 = arith.constant 1.000000e+00 : f32
    %211 = vector.broadcast %cst_42 : f32 to vector<8x256xf32>
    %212 = arith.addf %211, %210 : vector<8x256xf32>
    %213 = arith.divf %211, %212 : vector<8x256xf32>
    %214 = arith.mulf %205, %157 : vector<8x256xf32>
    %215 = arith.mulf %199, %207 : vector<8x256xf32>
    %216 = arith.addf %214, %215 : vector<8x256xf32>
    %217 = math.tanh %216 : vector<8x256xf32>
    %218 = arith.mulf %213, %217 : vector<8x256xf32>
    %219 = tpu.concatenate %218, %189 in 1 : vector<8x256xf32>, vector<8x128xf32> -> vector<8x384xf32>
    %220 = arith.truncf %219 : vector<8x384xf32> to vector<8x384xbf16>
    %cst_43 = arith.constant dense<0.000000e+00> : vector<8x512xf32>
    %221 = tpu.matmul %220, %7, %cst_43 {dimension_numbers = #tpu.dot_dimension_numbers<[1], [0], [0], [1], [0, 0, 1, 1], [], []>} : vector<8x384xbf16>, vector<384x512xbf16>, vector<8x512xf32> -> vector<8x512xf32>
    %222 = vector.broadcast %8 : vector<1x512xf32> to vector<8x512xf32>
    %223 = arith.addf %221, %222 : vector<8x512xf32>
    %224 = vector.extract_strided_slice %223 {offsets = [0, 0], sizes = [8, 128], strides = [1, 1]} : vector<8x512xf32> to vector<8x128xf32>
    %225 = arith.negf %224 : vector<8x128xf32>
    %226 = math.exp %225 : vector<8x128xf32>
    %cst_44 = arith.constant 1.000000e+00 : f32
    %227 = vector.broadcast %cst_44 : f32 to vector<8x128xf32>
    %228 = arith.addf %227, %226 : vector<8x128xf32>
    %229 = arith.divf %227, %228 : vector<8x128xf32>
    %230 = vector.extract_strided_slice %223 {offsets = [0, 128], sizes = [8, 128], strides = [1, 1]} : vector<8x512xf32> to vector<8x128xf32>
    %231 = arith.negf %230 : vector<8x128xf32>
    %232 = math.exp %231 : vector<8x128xf32>
    %cst_45 = arith.constant 1.000000e+00 : f32
    %233 = vector.broadcast %cst_45 : f32 to vector<8x128xf32>
    %234 = arith.addf %233, %232 : vector<8x128xf32>
    %235 = arith.divf %233, %234 : vector<8x128xf32>
    %236 = vector.extract_strided_slice %223 {offsets = [0, 256], sizes = [8, 128], strides = [1, 1]} : vector<8x512xf32> to vector<8x128xf32>
    %237 = math.tanh %236 : vector<8x128xf32>
    %238 = vector.extract_strided_slice %223 {offsets = [0, 384], sizes = [8, 128], strides = [1, 1]} : vector<8x512xf32> to vector<8x128xf32>
    %239 = arith.negf %238 : vector<8x128xf32>
    %240 = math.exp %239 : vector<8x128xf32>
    %cst_46 = arith.constant 1.000000e+00 : f32
    %241 = vector.broadcast %cst_46 : f32 to vector<8x128xf32>
    %242 = arith.addf %241, %240 : vector<8x128xf32>
    %243 = arith.divf %241, %242 : vector<8x128xf32>
    %244 = arith.mulf %235, %187 : vector<8x128xf32>
    %245 = arith.mulf %229, %237 : vector<8x128xf32>
    %246 = arith.addf %244, %245 : vector<8x128xf32>
    %247 = math.tanh %246 : vector<8x128xf32>
    %248 = arith.mulf %243, %247 : vector<8x128xf32>
    %249 = arith.mulf %248, %248 : vector<8x128xf32>
    %cst_47 = arith.constant dense<0.000000e+00> : vector<8xf32>
    %250 = vector.multi_reduction <add>, %249, %cst_47 [1] : vector<8x128xf32> to vector<8xf32>
    %251 = vector.shape_cast %250 : vector<8xf32> to vector<8x1xf32>
    %cst_48 = arith.constant 9.99999996E-13 : f32
    %252 = vector.broadcast %cst_48 : f32 to vector<8x1xf32>
    %253 = arith.addf %251, %252 : vector<8x1xf32>
    %254 = math.rsqrt %253 : vector<8x1xf32>
    %255 = vector.broadcast %254 : vector<8x1xf32> to vector<8x128xf32>
    %256 = arith.mulf %248, %255 : vector<8x128xf32>
    %c0_49 = arith.constant 0 : index
    %c0_50 = arith.constant 0 : index
    %257 = vector.load %arg6[%c0_49, %c0_50] : memref<8x128xf32, #tpu.memory_space<vmem>>, vector<8x128xf32>
    tpu.vector_store %arg6[%c0_49, %c0_50], %256 {strides = array<i32>} : memref<8x128xf32, #tpu.memory_space<vmem>>, vector<8x128xf32>,
    return
  }
}

</mosaic_0001>

<bundles_post_ra>
// kernel: tpu_custom_call.1
= control target key start
LH: loop header
LB: loop body
LE: loop exit
PB: predicated region body
PF: predicated region fallthrough
CT: control target
= control target key end

     0   :  { %11 = vsyncpa [#allocation3], 0  ;;  %s7784_s0 = inlined_call_operand.hbm [shape: bf16[32,384], index: 0, kind: input, shape index: {}]   ;;  %s7785_s1 = inlined_call_operand.hbm [shape: bf16[384,1024], index: 1, kind: input, shape index: {}]   ;;  %s7786_s2 = inlined_call_operand.hbm [shape: bf16[256,1024], index: 2, kind: input, shape index: {}]   ;;  %s7787_s3 = inlined_call_operand.hbm [shape: f32[1,1024], index: 3, kind: input, shape index: {}]   ;;  %s7788_s4 = inlined_call_operand.hbm [shape: bf16[384,512], index: 4, kind: input, shape index: {}]   ;;  %s7789_s5 = inlined_call_operand.vmem [shape: f32[1,512], index: 5, kind: input, shape index: {}]   ;;  %s7790_s6 = inlined_call_operand.hbm [shape: f32[8,128], index: 6, kind: output, shape index: {}]  }
   0x1   :  { %12 = vsyncpa [#allocation6], 0 }
   0x2   :  { %13 = vsyncpa [#allocation9], 0 }
   0x3   :  { %14 = vsyncpa [#allocation4], 0  ;;  %s5836_s21 = smov [#allocation5]  }
   0x4   :  { %s32_s22 = sshll.u32 %s5836_s21, 4  ;;  %s33_s22 = int_to_ptr.vmem [resolvable:$true] %s32_s22 }
   0x5   :  { %s5716_s23 = scalar_lea.vmem %s33_s22, 24576  ;;  %p5721_p1 = scmp.lt.s32.totalorder %s33_s22, %s33_s22 }
   0x6   :  { %p5717_p0 = scmp.ne.s32.totalorder %s33_s22, %s5716_s23  ;;  %p5722_p2 = scmp.lt.s32.totalorder %s5716_s23, %s5716_s23 }
   0x8   :  { %p5723_p3 = por %p5722_p2, %p5721_p1 }
   0xa   :  { %p5724_p4 = pnand %p5723_p3, %p5717_p0 }
   0xc   :  { %5727 = shalt.err (!%p5724_p4)
}
   0xd   :  { %s5837_s24 = smov 512   ;;  %s5838_s25 = smov 32  }
   0xe   :  { %38 = dma.hbm_to_vmem [thread:$0]  %s7785_s1, 24576, %s33_s22, [#allocation6], %s5837_s24, %s5837_s24, %s5838_s25  }
   0xf   :  { %s5839_s28 = smov [#allocation8]   ;;  %s5840_s30 = smov [#allocation2]  }
  0x10   :  { %s57_s29 = sshll.u32 %s5839_s28, 4  ;;  %s20_s7 = sshll.u32 %s5840_s30, 4  ;;  %s58_s29 = int_to_ptr.vmem [resolvable:$true] %s57_s29  ;;  %s21_s7 = int_to_ptr.vmem [resolvable:$true] %s20_s7 }
  0x11   :  { %s5736_s8 = scalar_lea.vmem %s58_s29, 128  ;;  %p5741_p6 = scmp.lt.s32.totalorder %s58_s29, %s58_s29 }
  0x12   :  { %p5737_p5 = scmp.ne.s32.totalorder %s58_s29, %s5736_s8  ;;  %p5742_p7 = scmp.lt.s32.totalorder %s5736_s8, %s5736_s8 }
  0x14   :  { %p5743_p8 = por %p5742_p7, %p5741_p6 }
  0x16   :  { %p5744_p9 = pnand %p5743_p8, %p5737_p5 }
  0x18   :  { %5747 = shalt.err (!%p5744_p9)
}
  0x19   :  { %60 = dma.hbm_to_vmem [thread:$0]  %s7787_s3, 128, %s58_s29, [#allocation9]  }
  0x1a   :  { %s5756_s11 = scalar_lea.vmem %s21_s7, 768  ;;  %p5761_p11 = scmp.lt.s32.totalorder %s21_s7, %s21_s7 }
  0x1b   :  { %p5757_p10 = scmp.ne.s32.totalorder %s21_s7, %s5756_s11  ;;  %p5762_p12 = scmp.lt.s32.totalorder %s5756_s11, %s5756_s11 }
  0x1d   :  { %p5763_p13 = por %p5762_p12, %p5761_p11 }
  0x1f   :  { %p5764_p0 = pnand %p5763_p13, %p5757_p10 }
  0x21   :  { %5767 = shalt.err (!%p5764_p0)
}
  0x22   :  { %s5841_s1 = smov 192   ;;  %s5842_s12 = smov 12  }
  0x23   :  { %26 = dma.hbm_to_vmem [thread:$0]  %s7784_s0, 768, %s21_s7, [#allocation3], %s5841_s1, %s5841_s1, %s5842_s12  }
  0x24   :  { %s5843_s15 = smov [#allocation7]   ;;  %s5844_s17 = smov [#allocation10]  }
  0x25   :  { %s44_s16 = sshll.u32 %s5843_s15, 4  ;;  %s66_s18 = sshll.u32 %s5844_s17, 4  ;;  %s45_s16 = int_to_ptr.vmem [resolvable:$true] %s44_s16  ;;  %s67_s18 = int_to_ptr.vmem [resolvable:$true] %s66_s18 }
  0x26   :  { %s5776_s3 = scalar_lea.vmem %s45_s16, 16384  ;;  %p5781_p2 = scmp.lt.s32.totalorder %s45_s16, %s45_s16 }
  0x27   :  { %p5777_p1 = scmp.ne.s32.totalorder %s45_s16, %s5776_s3  ;;  %p5782_p3 = scmp.lt.s32.totalorder %s5776_s3, %s5776_s3 }
  0x29   :  { %p5783_p4 = por %p5782_p3, %p5781_p2 }
  0x2b   :  { %p5784_p5 = pnand %p5783_p4, %p5777_p1 }
  0x2d   :  { %5787 = shalt.err (!%p5784_p5)
}
  0x2e   :  { %50 = dma.hbm_to_vmem [thread:$0]  %s7786_s2, 16384, %s45_s16, [#allocation6], %s5837_s24, %s5837_s24, %s5838_s25  }
  0x2f   :  { %s5796_s0 = scalar_lea.vmem %s67_s18, 12288  ;;  %p5801_p7 = scmp.lt.s32.totalorder %s67_s18, %s67_s18 }
  0x30   :  { %p5797_p6 = scmp.ne.s32.totalorder %s67_s18, %s5796_s0  ;;  %p5802_p8 = scmp.lt.s32.totalorder %s5796_s0, %s5796_s0 }
  0x32   :  { %p5803_p9 = por %p5802_p8, %p5801_p7 }
  0x34   :  { %p5804_p10 = pnand %p5803_p9, %p5797_p6 }
  0x36   :  { %5807 = shalt.err (!%p5804_p10)
}
  0x37   :  { %s5845_s21 = smov 256   ;;  %s5846_s22 = smov 16  }
  0x38   :  { %72 = dma.hbm_to_vmem [thread:$0]  %s7788_s4, 12288, %s67_s18, [#allocation9], %s5845_s21, %s5845_s21, %s5846_s22  }
  0x39   :  { %5828 = dma.done.wait [#allocation3], 768  }
  0x3a   :  { %5829 = vsyncadd [#allocation3], 4294966528 }
  0x3b   :  { %5830 = dma.done.wait [#allocation6], 40960  }
  0x3c   :  { %5831 = vsyncadd [#allocation6], 4294926336 }
  0x3d   :  { %5832 = dma.done.wait [#allocation9], 12416  }
  0x3e   :  { %5833 = vsyncadd [#allocation9], 4294954880  ;;  %v7791_v0 = vmov 0   ;;  %v155_v1 = vld [vmem:[#allocation5 + $0x1c0] sm:$0xff] }
  0x3f   :  { %1410 = vmatprep.mubr.bf16.mxu1 %v7791_v0  ;;  %v159_v2 = vld [vmem:[#allocation5 + $0x1e0] sm:$0xff] }
  0x40   :  { %v283_v3 = vld [vmem:[#allocation5 + $0x5c0] sm:$0xff]  ;;  %v4846_v4 = vcombine.high %v155_v1, %v159_v2  ;;  %v4845_v6 = vcombine.low %v155_v1, %v159_v2 }
  0x41   :  { %v287_v5 = vld [vmem:[#allocation5 + $0x5e0] sm:$0xff] }
  0x42   :  { %v147_v7 = vld [vmem:[#allocation5 + $0x180] sm:$0xff]  ;;  %v4974_v9 = vcombine.high %v283_v3, %v287_v5  ;;  %v4973_v10 = vcombine.low %v283_v3, %v287_v5  ;;  %1325 = vmatprep.subr.bf16.mxu0 %v4846_v4  ;;  %v156_v3 = vld [vmem:[#allocation5 + $0x1c8] sm:$0xff] }
  0x43   :  { %v151_v8 = vld [vmem:[#allocation5 + $0x1a0] sm:$0xff]  ;;  %1326 = vmatpush1.bf16.msra.mxu0 %v4845_v6  ;;  %v160_v4 = vld [vmem:[#allocation5 + $0x1e8] sm:$0xff] }
  0x44   :  { %v4838_v11 = vcombine.high %v147_v7, %v151_v8  ;;  %v275_v12 = vld [vmem:[#allocation5 + $0x580] sm:$0xff]  ;;  %1378 = vmatprep.subr.bf16.mxu1 %v4974_v9  ;;  %v4837_v19 = vcombine.low %v147_v7, %v151_v8  ;;  %v4848_v8 = vcombine.high %v156_v3, %v160_v4 }
  0x45   :  { %v279_v13 = vld [vmem:[#allocation5 + $0x5a0] sm:$0xff]  ;;  %1379 = vmatpush1.bf16.msra.mxu1 %v4973_v10 }
  0x46   :  { %v139_v14 = vld [vmem:[#allocation5 + $0x140] sm:$0xff]  ;;  %v4966_v15 = vcombine.high %v275_v12, %v279_v13  ;;  %1327 = vmatprep.subr.bf16.mxu0 %v4838_v11  ;;  %v4965_v20 = vcombine.low %v275_v12, %v279_v13  ;;  %v148_v11 = vld [vmem:[#allocation5 + $0x188] sm:$0xff] }
  0x47   :  { %v143_v16 = vld [vmem:[#allocation5 + $0x160] sm:$0xff]  ;;  %1328 = vmatpush1.bf16.msra.mxu0 %v4837_v19  ;;  %v152_v12 = vld [vmem:[#allocation5 + $0x1a8] sm:$0xff] }
  0x48   :  { %v267_v17 = vld [vmem:[#allocation5 + $0x540] sm:$0xff]  ;;  %v4830_v21 = vcombine.high %v139_v14, %v143_v16  ;;  %1380 = vmatprep.subr.bf16.mxu1 %v4966_v15  ;;  %v4829_v27 = vcombine.low %v139_v14, %v143_v16  ;;  %v4847_v15 = vcombine.low %v156_v3, %v160_v4 }
  0x49   :  { %v271_v18 = vld [vmem:[#allocation5 + $0x560] sm:$0xff]  ;;  %1381 = vmatpush1.bf16.msra.mxu1 %v4965_v20  ;;  %v140_v20 = vld [vmem:[#allocation5 + $0x148] sm:$0xff] }
  0x4a   :  { %v4958_v22 = vcombine.high %v267_v17, %v271_v18  ;;  %v131_v23 = vld [vmem:[#allocation5 + $0x100] sm:$0xff]  ;;  %1329 = vmatprep.subr.bf16.mxu0 %v4830_v21  ;;  %v4957_v28 = vcombine.low %v267_v17, %v271_v18  ;;  %v4840_v17 = vcombine.high %v148_v11, %v152_v12  ;;  %v144_v21 = vld [vmem:[#allocation5 + $0x168] sm:$0xff] }
  0x4b   :  { %v135_v24 = vld [vmem:[#allocation5 + $0x120] sm:$0xff]  ;;  %1330 = vmatpush1.bf16.msra.mxu0 %v4829_v27 }
  0x4c   :  { %v259_v25 = vld [vmem:[#allocation5 + $0x500] sm:$0xff]  ;;  %v4822_v29 = vcombine.high %v131_v23, %v135_v24  ;;  %1382 = vmatprep.subr.bf16.mxu1 %v4958_v22  ;;  %v4821_v35 = vcombine.low %v131_v23, %v135_v24  ;;  %v4839_v23 = vcombine.low %v148_v11, %v152_v12 }
  0x4d   :  { %v263_v26 = vld [vmem:[#allocation5 + $0x520] sm:$0xff]  ;;  %1383 = vmatpush1.bf16.msra.mxu1 %v4957_v28  ;;  %v132_v28 = vld [vmem:[#allocation5 + $0x108] sm:$0xff] }
  0x4e   :  { %v4950_v30 = vcombine.high %v259_v25, %v263_v26  ;;  %v123_v31 = vld [vmem:[#allocation5 + $0xc0] sm:$0xff]  ;;  %1331 = vmatprep.subr.bf16.mxu0 %v4822_v29  ;;  %v4949_v36 = vcombine.low %v259_v25, %v263_v26  ;;  %v4832_v25 = vcombine.high %v140_v20, %v144_v21  ;;  %v136_v29 = vld [vmem:[#allocation5 + $0x128] sm:$0xff] }
  0x4f   :  { %v127_v32 = vld [vmem:[#allocation5 + $0xe0] sm:$0xff]  ;;  %1332 = vmatpush1.bf16.msra.mxu0 %v4821_v35 }
  0x50   :  { %v251_v33 = vld [vmem:[#allocation5 + $0x4c0] sm:$0xff]  ;;  %v4814_v37 = vcombine.high %v123_v31, %v127_v32  ;;  %1384 = vmatprep.subr.bf16.mxu1 %v4950_v30  ;;  %v4813_v43 = vcombine.low %v123_v31, %v127_v32  ;;  %v5914_v31 = vld [vmem:[#allocation2 + $0x20] ss:$12 sps:$4 sm:$0xff]   ;;  %v4831_v32 = vcombine.low %v140_v20, %v144_v21  ;;  %v5920_v20 = vld [vmem:[#allocation2 + $0x1c] ss:$12 sps:$4 sm:$0xff]  }
  0x51   :  { %v255_v34 = vld [vmem:[#allocation5 + $0x4e0] sm:$0xff]  ;;  %1385 = vmatpush1.bf16.msra.mxu1 %v4949_v36 }
  0x52   :  { %v4942_v38 = vcombine.high %v251_v33, %v255_v34  ;;  %v115_v39 = vld [vmem:[#allocation5 + $0x80] sm:$0xff]  ;;  %1333 = vmatprep.subr.bf16.mxu0 %v4814_v37  ;;  %v4941_v44 = vcombine.low %v251_v33, %v255_v34  ;;  %v4824_v34 = vcombine.high %v132_v28, %v136_v29  ;;  %v124_v37 = vld [vmem:[#allocation5 + $0xc8] sm:$0xff] }
  0x53   :  { %v119_v40 = vld [vmem:[#allocation5 + $0xa0] sm:$0xff]  ;;  %1334 = vmatpush1.bf16.msra.mxu0 %v4813_v43 }
  0x54   :  { %v243_v41 = vld [vmem:[#allocation5 + $0x480] sm:$0xff]  ;;  %v4806_v45 = vcombine.high %v115_v39, %v119_v40  ;;  %1386 = vmatprep.subr.bf16.mxu1 %v4942_v38  ;;  %v4805_v51 = vcombine.low %v115_v39, %v119_v40  ;;  %v128_v38 = vld [vmem:[#allocation5 + $0xe8] sm:$0xff]  ;;  %v4823_v40 = vcombine.low %v132_v28, %v136_v29 }
  0x55   :  { %v247_v42 = vld [vmem:[#allocation5 + $0x4a0] sm:$0xff]  ;;  %1387 = vmatpush1.bf16.msra.mxu1 %v4941_v44 }
  0x56   :  { %v4934_v46 = vcombine.high %v243_v41, %v247_v42  ;;  %v107_v47 = vld [vmem:[#allocation5 + $0x40] sm:$0xff]  ;;  %1335 = vmatprep.subr.bf16.mxu0 %v4806_v45  ;;  %v4933_v52 = vcombine.low %v243_v41, %v247_v42  ;;  %v4816_v42 = vcombine.high %v124_v37, %v128_v38  ;;  %v116_v45 = vld [vmem:[#allocation5 + $0x88] sm:$0xff] }
  0x57   :  { %v111_v48 = vld [vmem:[#allocation5 + $0x60] sm:$0xff]  ;;  %1336 = vmatpush1.bf16.msra.mxu0 %v4805_v51 }
  0x58   :  { %v235_v49 = vld [vmem:[#allocation5 + $0x440] sm:$0xff]  ;;  %v4798_v53 = vcombine.high %v107_v47, %v111_v48  ;;  %1388 = vmatprep.subr.bf16.mxu1 %v4934_v46  ;;  %v4797_v60 = vcombine.low %v107_v47, %v111_v48  ;;  %v120_v46 = vld [vmem:[#allocation5 + $0xa8] sm:$0xff]  ;;  %v4815_v48 = vcombine.low %v124_v37, %v128_v38 }
  0x59   :  { %v239_v50 = vld [vmem:[#allocation5 + $0x460] sm:$0xff]  ;;  %1389 = vmatpush1.bf16.msra.mxu1 %v4933_v52  ;;  %v5924_v37 = vld [vmem:[#allocation2 + $0x18] ss:$12 sps:$4 sm:$0xff]  }
  0x5a   :  { %v99_v54 = vld [vmem:[#allocation5] sm:$0xff]  ;;  %v4926_v55 = vcombine.high %v235_v49, %v239_v50  ;;  %1337 = vmatprep.subr.bf16.mxu0 %v4798_v53  ;;  %v4925_v61 = vcombine.low %v235_v49, %v239_v50  ;;  %v4808_v50 = vcombine.high %v116_v45, %v120_v46  ;;  %v108_v53 = vld [vmem:[#allocation5 + $0x48] sm:$0xff] }
  0x5b   :  { %v103_v56 = vld [vmem:[#allocation5 + $0x20] sm:$0xff]  ;;  %1338 = vmatpush1.bf16.msra.mxu0 %v4797_v60 }
  0x5c   :  { %v227_v57 = vld [vmem:[#allocation5 + $0x400] sm:$0xff]  ;;  %v4790_v62 = vcombine.high %v99_v54, %v103_v56  ;;  %1390 = vmatprep.subr.bf16.mxu1 %v4926_v55  ;;  %v4789_v5 = vcombine.low %v99_v54, %v103_v56  ;;  %v112_v54 = vld [vmem:[#allocation5 + $0x68] sm:$0xff]  ;;  %v4807_v56 = vcombine.low %v116_v45, %v120_v46 }
  0x5d   :  { %v231_v58 = vld [vmem:[#allocation5 + $0x420] sm:$0xff]  ;;  %1391 = vmatpush1.bf16.msra.mxu1 %v4925_v61  ;;  %v256_v45 = vld [vmem:[#allocation5 + $0x4e8] sm:$0xff] }
  0x5e   :  { %v5907_v59 = vld [vmem:[#allocation2 + $0x4] ss:$12 sps:$4 sm:$0xff]   ;;  %v4918_v63 = vcombine.high %v227_v57, %v231_v58  ;;  %1339 = vmatprep.subr.bf16.mxu0 %v4790_v62  ;;  %v4917_v6 = vcombine.low %v227_v57, %v231_v58  ;;  %v5910_v13 = vld [vmem:[#allocation2 + $0x8] ss:$12 sps:$4 sm:$0xff]   ;;  %v4800_v58 = vcombine.high %v108_v53, %v112_v54  ;;  %v100_v62 = vld [vmem:[#allocation5 + $0x8] sm:$0xff] }
  0x5f   :  { %v219_v1 = vld [vmem:[#allocation5 + $0x3c0] sm:$0xff]  ;;  %1357 = vmatprep.mubr.bf16.mxu0 %v5907_v59  ;;  %1340 = vmatpush1.bf16.msra.mxu0 %v4789_v5  ;;  %v284_v5 = vld [vmem:[#allocation5 + $0x5c8] sm:$0xff] }
  0x60   :  { %v223_v2 = vld [vmem:[#allocation5 + $0x3e0] sm:$0xff]  ;;  %1392 = vmatprep.subr.bf16.mxu1 %v4918_v63  ;;  %v104_v63 = vld [vmem:[#allocation5 + $0x28] sm:$0xff] }
  0x61   :  { %v4910_v7 = vcombine.high %v219_v1, %v223_v2  ;;  %v211_v9 = vld [vmem:[#allocation5 + $0x380] sm:$0xff]  ;;  %v4909_v14 = vcombine.low %v219_v1, %v223_v2  ;;  %1393 = vmatpush1.bf16.msra.mxu1 %v4917_v6  ;;  %v4799_v2 = vcombine.low %v108_v53, %v112_v54  ;;  %v4792_v4 = vcombine.high %v100_v62, %v104_v63  ;;  %v288_v6 = vld [vmem:[#allocation5 + $0x5e8] sm:$0xff] }
  0x62   :  { %v215_v10 = vld [vmem:[#allocation5 + $0x3a0] sm:$0xff]  ;;  %1431 = vmatprep.subr.bf16.mxu1 %v4848_v8  ;;  %v224_v8 = vld [vmem:[#allocation5 + $0x3e8] sm:$0xff]  ;;  %v4976_v11 = vcombine.high %v284_v5, %v288_v6 }
  0x63   :  { %1341 = vmatprep.subr.bf16.mxu0 %v4910_v7  ;;  %v4902_v16 = vcombine.high %v211_v9, %v215_v10  ;;  %v203_v18 = vld [vmem:[#allocation5 + $0x340] sm:$0xff]  ;;  %v4901_v22 = vcombine.low %v211_v9, %v215_v10  ;;  %v220_v7 = vld [vmem:[#allocation5 + $0x3c8] sm:$0xff]  ;;  %v4791_v10 = vcombine.low %v100_v62, %v104_v63 }
  0x64   :  { %v207_v19 = vld [vmem:[#allocation5 + $0x360] sm:$0xff]  ;;  %1411 = vmatmul.mubr.bf16.vlgmr.msra.gmra.mxu1 %v5910_v13  ;;  %1342 = vmatpush2.bf16.msra.mxu0 %v4909_v14  ;;  %v4912_v12 = vcombine.high %v220_v7, %v224_v8  ;;  %v276_v14 = vld [vmem:[#allocation5 + $0x588] sm:$0xff]  ;;  %v4911_v21 = vcombine.low %v220_v7, %v224_v8 }
  0x65   :  { %1432 = vmatpush1.bf16.msra.mxu1 %v4847_v15  ;;  %1343 = vmatprep.subr.bf16.mxu0 %v4902_v16  ;;  %v4894_v24 = vcombine.high %v203_v18, %v207_v19  ;;  %v195_v26 = vld [vmem:[#allocation5 + $0x300] sm:$0xff]  ;;  %v4893_v30 = vcombine.low %v203_v18, %v207_v19  ;;  %v280_v15 = vld [vmem:[#allocation5 + $0x5a8] sm:$0xff]  ;;  %v5918_v16 = vld [vmem:[#allocation2] ss:$12 sps:$4 sm:$0xff]   ;;  %v4975_v19 = vcombine.low %v284_v5, %v288_v6 }
  0x66   :  { %1433 = vmatprep.subr.bf16.mxu1 %v4840_v17  ;;  %v199_v27 = vld [vmem:[#allocation5 + $0x320] sm:$0xff]  ;;  %1420 = vmatprep.mubr.bf16.mxu1 %v7791_v0  ;;  %v212_v17 = vld [vmem:[#allocation5 + $0x388] sm:$0xff]  ;;  %v4967_v28 = vcombine.low %v276_v14, %v280_v15 }
  0x67   :  { %v4886_v33 = vcombine.high %v195_v26, %v199_v27  ;;  %v187_v35 = vld [vmem:[#allocation5 + $0x2c0] sm:$0xff]  ;;  %v4885_v39 = vcombine.low %v195_v26, %v199_v27  ;;  %v216_v18 = vld [vmem:[#allocation5 + $0x3a8] sm:$0xff] }
  0x68   :  { %1344 = vmatpush2.bf16.msra.mxu0 %v4901_v22  ;;  %v191_v36 = vld [vmem:[#allocation5 + $0x2e0] sm:$0xff]  ;;  %v4968_v22 = vcombine.high %v276_v14, %v280_v15  ;;  %v204_v26 = vld [vmem:[#allocation5 + $0x348] sm:$0xff]  ;;  %v4903_v29 = vcombine.low %v212_v17, %v216_v18  ;;  %v285_v14 = vld [vmem:[#allocation5 + $0x5d0] sm:$0xff] }
  0x69   :  { %1434 = vmatpush1.bf16.msra.mxu1 %v4839_v23  ;;  %1345 = vmatprep.subr.bf16.mxu0 %v4894_v24  ;;  %v4878_v41 = vcombine.high %v187_v35, %v191_v36  ;;  %v179_v43 = vld [vmem:[#allocation5 + $0x280] sm:$0xff]  ;;  %v4877_v47 = vcombine.low %v187_v35, %v191_v36  ;;  %v4904_v23 = vcombine.high %v212_v17, %v216_v18  ;;  %v268_v24 = vld [vmem:[#allocation5 + $0x548] sm:$0xff]  ;;  %v289_v17 = vld [vmem:[#allocation5 + $0x5f0] sm:$0xff] }
  0x6a   :  { %1435 = vmatprep.subr.bf16.mxu1 %v4832_v25  ;;  %v183_v44 = vld [vmem:[#allocation5 + $0x2a0] sm:$0xff]  ;;  %v272_v25 = vld [vmem:[#allocation5 + $0x568] sm:$0xff] }
  0x6b   :  { %v4870_v49 = vcombine.high %v179_v43, %v183_v44  ;;  %v171_v51 = vld [vmem:[#allocation5 + $0x240] sm:$0xff]  ;;  %v4869_v55 = vcombine.low %v179_v43, %v183_v44  ;;  %v208_v27 = vld [vmem:[#allocation5 + $0x368] sm:$0xff]  ;;  %v4959_v38 = vcombine.low %v268_v24, %v272_v25 }
  0x6c   :  { %1346 = vmatpush2.bf16.msra.mxu0 %v4893_v30  ;;  %1421 = vmatmul.mubr.bf16.gmra.mxu1 %v5914_v31  ;;  %v175_v52 = vld [vmem:[#allocation5 + $0x260] sm:$0xff]  ;;  %v4960_v30 = vcombine.high %v268_v24, %v272_v25  ;;  %v260_v35 = vld [vmem:[#allocation5 + $0x508] sm:$0xff]  ;;  %v277_v24 = vld [vmem:[#allocation5 + $0x590] sm:$0xff]  ;;  %v4978_v25 = vcombine.high %v285_v14, %v289_v17 }
  0x6d   :  { %1436 = vmatpush1.bf16.msra.mxu1 %v4831_v32  ;;  %1347 = vmatprep.subr.bf16.mxu0 %v4886_v33  ;;  %v4862_v57 = vcombine.high %v171_v51, %v175_v52  ;;  %v163_v60 = vld [vmem:[#allocation5 + $0x200] sm:$0xff]  ;;  %v4861_v1 = vcombine.low %v171_v51, %v175_v52  ;;  %v196_v32 = vld [vmem:[#allocation5 + $0x308] sm:$0xff]  ;;  %v4896_v33 = vcombine.high %v204_v26, %v208_v27 }
  0x6e   :  { %1437 = vmatprep.subr.bf16.mxu1 %v4824_v34  ;;  %1463 = vmatprep.mubr.bf16.mxu1 %v5907_v59  ;;  %v167_v61 = vld [vmem:[#allocation5 + $0x220] sm:$0xff]  ;;  %v200_v34 = vld [vmem:[#allocation5 + $0x328] sm:$0xff] }
  0x6f   :  { %v4854_v3 = vcombine.high %v163_v60, %v167_v61  ;;  %v4853_v9 = vcombine.low %v163_v60, %v167_v61  ;;  %v264_v36 = vld [vmem:[#allocation5 + $0x528] sm:$0xff]  ;;  %v4888_v44 = vcombine.high %v196_v32, %v200_v34 }
  0x70   :  { %1348 = vmatpush2.bf16.msra.mxu0 %v4885_v39  ;;  %v4895_v39 = vcombine.low %v204_v26, %v208_v27  ;;  %v252_v43 = vld [vmem:[#allocation5 + $0x4c8] sm:$0xff]  ;;  %v4951_v46 = vcombine.low %v260_v35, %v264_v36  ;;  %v281_v26 = vld [vmem:[#allocation5 + $0x5b0] sm:$0xff] }
  0x71   :  { %1438 = vmatpush1.bf16.msra.mxu1 %v4823_v40  ;;  %1349 = vmatprep.subr.bf16.mxu0 %v4878_v41  ;;  %v4952_v40 = vcombine.high %v260_v35, %v264_v36  ;;  %v188_v41 = vld [vmem:[#allocation5 + $0x2c8] sm:$0xff]  ;;  %v4943_v54 = vcombine.low %v252_v43, %v256_v45  ;;  %v273_v35 = vld [vmem:[#allocation5 + $0x570] sm:$0xff] }
  0x72   :  { %1439 = vmatprep.subr.bf16.mxu1 %v4816_v42  ;;  %v192_v42 = vld [vmem:[#allocation5 + $0x2e8] sm:$0xff] }
  0x73   :  { %v244_v51 = vld [vmem:[#allocation5 + $0x488] sm:$0xff]  ;;  %v4880_v52 = vcombine.high %v188_v41, %v192_v42 }
  0x74   :  { %1350 = vmatpush2.bf16.msra.mxu0 %v4877_v47  ;;  %v4887_v47 = vcombine.low %v196_v32, %v200_v34  ;;  %v248_v53 = vld [vmem:[#allocation5 + $0x4a8] sm:$0xff]  ;;  %v145_v32 = vld [vmem:[#allocation5 + $0x170] sm:$0xff]  ;;  %v4970_v34 = vcombine.high %v277_v24, %v281_v26 }
  0x75   :  { %1440 = vmatpush1.bf16.msra.mxu1 %v4815_v48  ;;  %1351 = vmatprep.subr.bf16.mxu0 %v4870_v49  ;;  %v4944_v48 = vcombine.high %v252_v43, %v256_v45  ;;  %v180_v49 = vld [vmem:[#allocation5 + $0x288] sm:$0xff]  ;;  %v4935_v63 = vcombine.low %v244_v51, %v248_v53 }
  0x76   :  { %1441 = vmatprep.subr.bf16.mxu1 %v4808_v50  ;;  %v184_v50 = vld [vmem:[#allocation5 + $0x2a8] sm:$0xff] }
  0x77   :  { %v236_v60 = vld [vmem:[#allocation5 + $0x448] sm:$0xff]  ;;  %v4872_v61 = vcombine.high %v180_v49, %v184_v50 }
  0x78   :  { %1352 = vmatpush2.bf16.msra.mxu0 %v4869_v55  ;;  %v4879_v55 = vcombine.low %v188_v41, %v192_v42  ;;  %v240_v62 = vld [vmem:[#allocation5 + $0x468] sm:$0xff]  ;;  %v137_v41 = vld [vmem:[#allocation5 + $0x130] sm:$0xff] }
  0x79   :  { %1442 = vmatpush1.bf16.msra.mxu1 %v4807_v56  ;;  %1353 = vmatprep.subr.bf16.mxu0 %v4862_v57  ;;  %v4936_v56 = vcombine.high %v244_v51, %v248_v53  ;;  %v172_v57 = vld [vmem:[#allocation5 + $0x248] sm:$0xff]  ;;  %v4927_v8 = vcombine.low %v236_v60, %v240_v62  ;;  %v261_v42 = vld [vmem:[#allocation5 + $0x510] sm:$0xff] }
  0x7a   :  { %1443 = vmatprep.subr.bf16.mxu1 %v4800_v58  ;;  %v176_v58 = vld [vmem:[#allocation5 + $0x268] sm:$0xff] }
  0x7b   :  { %v228_v5 = vld [vmem:[#allocation5 + $0x408] sm:$0xff]  ;;  %v4864_v6 = vcombine.high %v172_v57, %v176_v58 }
  0x7c   :  { %1354 = vmatpush2.bf16.msra.mxu0 %v4861_v1  ;;  %v4871_v1 = vcombine.low %v180_v49, %v184_v50  ;;  %v232_v7 = vld [vmem:[#allocation5 + $0x428] sm:$0xff]  ;;  %v129_v49 = vld [vmem:[#allocation5 + $0xf0] sm:$0xff] }
  0x7d   :  { %1444 = vmatpush1.bf16.msra.mxu1 %v4799_v2  ;;  %1355 = vmatprep.subr.bf16.mxu0 %v4854_v3  ;;  %v4928_v2 = vcombine.high %v236_v60, %v240_v62  ;;  %v164_v3 = vld [vmem:[#allocation5 + $0x208] sm:$0xff]  ;;  %v4919_v18 = vcombine.low %v228_v5, %v232_v7  ;;  %v253_v50 = vld [vmem:[#allocation5 + $0x4d0] sm:$0xff] }
  0x7e   :  { %1445 = vmatprep.subr.bf16.mxu1 %v4792_v4  ;;  %v168_v4 = vld [vmem:[#allocation5 + $0x228] sm:$0xff] }
  0x7f   :  { %v4856_v15 = vcombine.high %v164_v3, %v168_v4 }
  0x80   :  { %1356 = vmatpush2.bf16.msra.mxu0 %v4853_v9  ;;  %v4863_v9 = vcombine.low %v172_v57, %v176_v58  ;;  %v121_v57 = vld [vmem:[#allocation5 + $0xb0] sm:$0xff] }
  0x81   :  { %1446 = vmatpush1.bf16.msra.mxu1 %v4791_v10  ;;  %1484 = vmatprep.subr.bf16.mxu0 %v4976_v11  ;;  %v4920_v10 = vcombine.high %v228_v5, %v232_v7  ;;  %v157_v11 = vld [vmem:[#allocation5 + $0x1d0] sm:$0xff] }
  0x82   :  { %1447 = vmatprep.subr.bf16.mxu1 %v4912_v12  ;;  %v161_v12 = vld [vmem:[#allocation5 + $0x1f0] sm:$0xff] }
  0x83   :  { %1358 = vmatmul.mubr.bf16.vlgmr.msra.gmra.mxu0 %v5918_v16  ;;  %v4849_v27 = vcombine.low %v157_v11, %v161_v12  ;;  %v245_v58 = vld [vmem:[#allocation5 + $0x490] sm:$0xff] }
  0x84   :  { %1485 = vmatpush1.bf16.msra.mxu0 %v4975_v19  ;;  %1367 = vmatprep.mubr.bf16.mxu0 %v5920_v20  ;;  %v4855_v19 = vcombine.low %v164_v3, %v168_v4  ;;  %v113_v3 = vld [vmem:[#allocation5 + $0x70] sm:$0xff] }
  0x85   :  { %1448 = vmatpush2.bf16.msra.mxu1 %v4911_v21  ;;  %1486 = vmatprep.subr.bf16.mxu0 %v4968_v22  ;;  %v4850_v21 = vcombine.high %v157_v11, %v161_v12  ;;  %v149_v22 = vld [vmem:[#allocation5 + $0x190] sm:$0xff] }
  0x86   :  { %1449 = vmatprep.subr.bf16.mxu1 %v4904_v23  ;;  %v153_v23 = vld [vmem:[#allocation5 + $0x1b0] sm:$0xff] }
  0x87   :  { %v4841_v36 = vcombine.low %v149_v22, %v153_v23  ;;  %v237_v4 = vld [vmem:[#allocation5 + $0x450] sm:$0xff] }
  0x88   :  { %1487 = vmatpush1.bf16.msra.mxu0 %v4967_v28  ;;  %v4977_v28 = vcombine.low %v285_v14, %v289_v17  ;;  %v105_v12 = vld [vmem:[#allocation5 + $0x30] sm:$0xff] }
  0x89   :  { %1450 = vmatpush2.bf16.msra.mxu1 %v4903_v29  ;;  %1488 = vmatprep.subr.bf16.mxu0 %v4960_v30  ;;  %v4842_v29 = vcombine.high %v149_v22, %v153_v23  ;;  %v141_v30 = vld [vmem:[#allocation5 + $0x150] sm:$0xff] }
  0x8a   :  { %1451 = vmatprep.subr.bf16.mxu1 %v4896_v33  ;;  %v269_v33 = vld [vmem:[#allocation5 + $0x550] sm:$0xff]  ;;  %v4833_v45 = vcombine.low %v141_v30, %v145_v32 }
  0x8b   :  { %1368 = vmatmul.mubr.bf16.gmra.mxu0 %v5924_v37  ;;  %v4962_v43 = vcombine.high %v269_v33, %v273_v35  ;;  %v229_v14 = vld [vmem:[#allocation5 + $0x410] sm:$0xff] }
  0x8c   :  { %1489 = vmatpush1.bf16.msra.mxu0 %v4959_v38  ;;  %1516 = vmatprep.mubr.bf16.mxu0 %v7791_v0  ;;  %v4969_v38 = vcombine.low %v277_v24, %v281_v26  ;;  %v221_v22 = vld [vmem:[#allocation5 + $0x3d0] sm:$0xff]  ;;  %v158_v24 = vld [vmem:[#allocation5 + $0x1d8] sm:$0xff] }
  0x8d   :  { %1452 = vmatpush2.bf16.msra.mxu1 %v4895_v39  ;;  %1490 = vmatprep.subr.bf16.mxu0 %v4952_v40  ;;  %v4834_v39 = vcombine.high %v141_v30, %v145_v32  ;;  %v133_v40 = vld [vmem:[#allocation5 + $0x110] sm:$0xff] }
  0x8e   :  { %1453 = vmatprep.subr.bf16.mxu1 %v4888_v44  ;;  %v265_v44 = vld [vmem:[#allocation5 + $0x530] sm:$0xff]  ;;  %v4825_v53 = vcombine.low %v133_v40, %v137_v41 }
  0x8f   :  { %v4954_v51 = vcombine.high %v261_v42, %v265_v44  ;;  %v225_v23 = vld [vmem:[#allocation5 + $0x3f0] sm:$0xff] }
  0x90   :  { %1491 = vmatpush1.bf16.msra.mxu0 %v4951_v46  ;;  %v4961_v46 = vcombine.low %v269_v33, %v273_v35  ;;  %v213_v30 = vld [vmem:[#allocation5 + $0x390] sm:$0xff]  ;;  %v150_v33 = vld [vmem:[#allocation5 + $0x198] sm:$0xff]  ;;  %v4913_v35 = vcombine.low %v221_v22, %v225_v23 }
  0x91   :  { %1454 = vmatpush2.bf16.msra.mxu1 %v4887_v47  ;;  %1492 = vmatprep.subr.bf16.mxu0 %v4944_v48  ;;  %v4826_v47 = vcombine.high %v133_v40, %v137_v41  ;;  %v125_v48 = vld [vmem:[#allocation5 + $0xd0] sm:$0xff] }
  0x92   :  { %1455 = vmatprep.subr.bf16.mxu1 %v4880_v52  ;;  %v257_v52 = vld [vmem:[#allocation5 + $0x4f0] sm:$0xff]  ;;  %v4817_v62 = vcombine.low %v125_v48, %v129_v49 }
  0x93   :  { %v4946_v60 = vcombine.high %v253_v50, %v257_v52  ;;  %v217_v32 = vld [vmem:[#allocation5 + $0x3b0] sm:$0xff] }
  0x94   :  { %1493 = vmatpush1.bf16.msra.mxu0 %v4943_v54  ;;  %v4953_v54 = vcombine.low %v261_v42, %v265_v44  ;;  %v205_v40 = vld [vmem:[#allocation5 + $0x350] sm:$0xff]  ;;  %v142_v42 = vld [vmem:[#allocation5 + $0x158] sm:$0xff]  ;;  %v4905_v44 = vcombine.low %v213_v30, %v217_v32 }
  0x95   :  { %1456 = vmatpush2.bf16.msra.mxu1 %v4879_v55  ;;  %1494 = vmatprep.subr.bf16.mxu0 %v4936_v56  ;;  %v4818_v55 = vcombine.high %v125_v48, %v129_v49  ;;  %v117_v56 = vld [vmem:[#allocation5 + $0x90] sm:$0xff] }
  0x96   :  { %1457 = vmatprep.subr.bf16.mxu1 %v4872_v61  ;;  %v249_v61 = vld [vmem:[#allocation5 + $0x4b0] sm:$0xff]  ;;  %v4809_v7 = vcombine.low %v117_v56, %v121_v57 }
  0x97   :  { %v4938_v5 = vcombine.high %v245_v58, %v249_v61  ;;  %v209_v41 = vld [vmem:[#allocation5 + $0x370] sm:$0xff] }
  0x98   :  { %1495 = vmatpush1.bf16.msra.mxu0 %v4935_v63  ;;  %v4945_v63 = vcombine.low %v253_v50, %v257_v52  ;;  %v197_v48 = vld [vmem:[#allocation5 + $0x310] sm:$0xff]  ;;  %v134_v50 = vld [vmem:[#allocation5 + $0x118] sm:$0xff]  ;;  %v4897_v52 = vcombine.low %v205_v40, %v209_v41 }
  0x99   :  { %1458 = vmatpush2.bf16.msra.mxu1 %v4871_v1  ;;  %1496 = vmatprep.subr.bf16.mxu0 %v4928_v2  ;;  %v4810_v1 = vcombine.high %v117_v56, %v121_v57  ;;  %v109_v2 = vld [vmem:[#allocation5 + $0x50] sm:$0xff]  ;;  %v126_v57 = vld [vmem:[#allocation5 + $0xd8] sm:$0xff] }
  0x9a   :  { %1459 = vmatprep.subr.bf16.mxu1 %v4864_v6  ;;  %v241_v6 = vld [vmem:[#allocation5 + $0x470] sm:$0xff]  ;;  %v4801_v17 = vcombine.low %v109_v2, %v113_v3 }
  0x9b   :  { %v4930_v11 = vcombine.high %v237_v4, %v241_v6  ;;  %v201_v49 = vld [vmem:[#allocation5 + $0x330] sm:$0xff] }
  0x9c   :  { %1497 = vmatpush1.bf16.msra.mxu0 %v4927_v8  ;;  %v4937_v8 = vcombine.low %v245_v58, %v249_v61  ;;  %v193_v56 = vld [vmem:[#allocation5 + $0x2f0] sm:$0xff]  ;;  %v130_v58 = vld [vmem:[#allocation5 + $0xf8] sm:$0xff] }
  0x9d   :  { %1460 = vmatpush2.bf16.msra.mxu1 %v4863_v9  ;;  %1498 = vmatprep.subr.bf16.mxu0 %v4920_v10  ;;  %v4802_v9 = vcombine.high %v109_v2, %v113_v3  ;;  %v101_v10 = vld [vmem:[#allocation5 + $0x10] sm:$0xff]  ;;  %v118_v3 = vld [vmem:[#allocation5 + $0x98] sm:$0xff] }
  0x9e   :  { %1461 = vmatprep.subr.bf16.mxu1 %v4856_v15  ;;  %v233_v15 = vld [vmem:[#allocation5 + $0x430] sm:$0xff]  ;;  %v4793_v26 = vcombine.low %v101_v10, %v105_v12 }
  0x9f   :  { %v185_v2 = vld [vmem:[#allocation5 + $0x2b0] sm:$0xff] }
  0xa0   :  { %1499 = vmatpush1.bf16.msra.mxu0 %v4919_v18  ;;  %v4929_v18 = vcombine.low %v237_v4, %v241_v6  ;;  %v122_v4 = vld [vmem:[#allocation5 + $0xb8] sm:$0xff]  ;;  %v4819_v6 = vcombine.low %v126_v57, %v130_v58 }
  0xa1   :  { %1462 = vmatpush2.bf16.msra.mxu1 %v4855_v19  ;;  %1537 = vmatprep.subr.bf16.mxu0 %v4850_v21  ;;  %v4794_v19 = vcombine.high %v101_v10, %v105_v12  ;;  %v4922_v21 = vcombine.high %v229_v14, %v233_v15  ;;  %v110_v10 = vld [vmem:[#allocation5 + $0x58] sm:$0xff] }
  0xa2   :  { %1590 = vmatprep.subr.bf16.mxu1 %v4978_v25  ;;  %v162_v25 = vld [vmem:[#allocation5 + $0x1f8] sm:$0xff] }
  0xa3   :  { %1517 = vmatmul.mubr.bf16.vlgmr.msra.gmra.mxu0 %v5910_v13 }
  0xa4   :  { %1464 = vmatmul.mubr.bf16.vlgmr.msra.gmra.mxu1 %v5918_v16  ;;  %1538 = vmatpush1.bf16.msra.mxu0 %v4849_v27  ;;  %v4921_v27 = vcombine.low %v229_v14, %v233_v15  ;;  %v4811_v14 = vcombine.low %v118_v3, %v122_v4 }
  0xa5   :  { %1591 = vmatpush1.bf16.msra.mxu1 %v4977_v28  ;;  %1539 = vmatprep.subr.bf16.mxu0 %v4842_v29  ;;  %v4914_v28 = vcombine.high %v221_v22, %v225_v23  ;;  %v4852_v29 = vcombine.high %v158_v24, %v162_v25 }
  0xa6   :  { %1592 = vmatprep.subr.bf16.mxu1 %v4970_v34  ;;  %1473 = vmatprep.mubr.bf16.mxu1 %v5920_v20  ;;  %v154_v34 = vld [vmem:[#allocation5 + $0x1b8] sm:$0xff] }
  0xa7   :  { %1526 = vmatprep.mubr.bf16.mxu0 %v7791_v0 }
  0xa8   :  { %1540 = vmatpush1.bf16.msra.mxu0 %v4841_v36  ;;  %v4851_v36 = vcombine.low %v158_v24, %v162_v25 }
  0xa9   :  { %1593 = vmatpush1.bf16.msra.mxu1 %v4969_v38  ;;  %1541 = vmatprep.subr.bf16.mxu0 %v4834_v39  ;;  %v4906_v38 = vcombine.high %v213_v30, %v217_v32  ;;  %v4844_v39 = vcombine.high %v150_v33, %v154_v34 }
  0xaa   :  { %1594 = vmatprep.subr.bf16.mxu1 %v4962_v43  ;;  %v146_v43 = vld [vmem:[#allocation5 + $0x178] sm:$0xff] }
  0xab   :  { %1527 = vmatmul.mubr.bf16.gmra.mxu0 %v5914_v31 }
  0xac   :  { %1542 = vmatpush1.bf16.msra.mxu0 %v4833_v45  ;;  %1474 = vmatmul.mubr.bf16.gmra.mxu1 %v5924_v37  ;;  %v4843_v45 = vcombine.low %v150_v33, %v154_v34 }
  0xad   :  { %1595 = vmatpush1.bf16.msra.mxu1 %v4961_v46  ;;  %1543 = vmatprep.subr.bf16.mxu0 %v4826_v47  ;;  %v4898_v46 = vcombine.high %v205_v40, %v209_v41  ;;  %v4836_v47 = vcombine.high %v142_v42, %v146_v43 }
  0xae   :  { %1596 = vmatprep.subr.bf16.mxu1 %v4954_v51  ;;  %1622 = vmatprep.mubr.bf16.mxu1 %v7791_v0  ;;  %v138_v51 = vld [vmem:[#allocation5 + $0x138] sm:$0xff] }
  0xaf   :  { %1569 = vmatprep.mubr.bf16.mxu0 %v5907_v59  ;;  %v4827_v61 = vcombine.low %v134_v50, %v138_v51 }
  0xb0   :  { %1544 = vmatpush1.bf16.msra.mxu0 %v4825_v53  ;;  %v4835_v53 = vcombine.low %v142_v42, %v146_v43 }
  0xb1   :  { %1597 = vmatpush1.bf16.msra.mxu1 %v4953_v54  ;;  %1545 = vmatprep.subr.bf16.mxu0 %v4818_v55  ;;  %v4828_v54 = vcombine.high %v134_v50, %v138_v51  ;;  %v189_v55 = vld [vmem:[#allocation5 + $0x2d0] sm:$0xff] }
  0xb2   :  { %1598 = vmatprep.subr.bf16.mxu1 %v4946_v60  ;;  %v4889_v60 = vcombine.low %v197_v48, %v201_v49 }
  0xb4   :  { %1546 = vmatpush1.bf16.msra.mxu0 %v4817_v62  ;;  %v4882_v62 = vcombine.high %v189_v55, %v193_v56 }
  0xb5   :  { %1599 = vmatpush1.bf16.msra.mxu1 %v4945_v63  ;;  %1547 = vmatprep.subr.bf16.mxu0 %v4810_v1  ;;  %v4820_v63 = vcombine.high %v126_v57, %v130_v58  ;;  %v181_v1 = vld [vmem:[#allocation5 + $0x290] sm:$0xff]  ;;  %v254_v58 = vld [vmem:[#allocation5 + $0x4d8] sm:$0xff] }
  0xb6   :  { %1600 = vmatprep.subr.bf16.mxu1 %v4938_v5  ;;  %v4881_v5 = vcombine.low %v189_v55, %v193_v56  ;;  %v4873_v12 = vcombine.low %v181_v1, %v185_v2 }
  0xb8   :  { %1548 = vmatpush1.bf16.msra.mxu0 %v4809_v7  ;;  %v4874_v7 = vcombine.high %v181_v1, %v185_v2 }
  0xb9   :  { %1601 = vmatpush1.bf16.msra.mxu1 %v4937_v8  ;;  %1549 = vmatprep.subr.bf16.mxu0 %v4802_v9  ;;  %v173_v8 = vld [vmem:[#allocation5 + $0x250] sm:$0xff] }
  0xba   :  { %1602 = vmatprep.subr.bf16.mxu1 %v4930_v11  ;;  %v177_v9 = vld [vmem:[#allocation5 + $0x270] sm:$0xff]  ;;  %v114_v11 = vld [vmem:[#allocation5 + $0x78] sm:$0xff] }
  0xbb   :  { %v4804_v15 = vcombine.high %v110_v10, %v114_v11  ;;  %v4865_v22 = vcombine.low %v173_v8, %v177_v9  ;;  %v4803_v23 = vcombine.low %v110_v10, %v114_v11  ;;  %v242_v10 = vld [vmem:[#allocation5 + $0x478] sm:$0xff] }
  0xbc   :  { %1550 = vmatpush1.bf16.msra.mxu0 %v4801_v17  ;;  %v165_v17 = vld [vmem:[#allocation5 + $0x210] sm:$0xff]  ;;  %v174_v11 = vld [vmem:[#allocation5 + $0x258] sm:$0xff] }
  0xbd   :  { %1603 = vmatpush1.bf16.msra.mxu1 %v4929_v18  ;;  %1551 = vmatprep.subr.bf16.mxu0 %v4794_v19  ;;  %v169_v18 = vld [vmem:[#allocation5 + $0x230] sm:$0xff]  ;;  %v102_v19 = vld [vmem:[#allocation5 + $0x18] sm:$0xff] }
  0xbe   :  { %1604 = vmatprep.subr.bf16.mxu1 %v4922_v21  ;;  %v106_v21 = vld [vmem:[#allocation5 + $0x38] sm:$0xff]  ;;  %v4858_v24 = vcombine.high %v165_v17, %v169_v18  ;;  %v4857_v30 = vcombine.low %v165_v17, %v169_v18 }
  0xbf   :  { %v4796_v25 = vcombine.high %v102_v19, %v106_v21  ;;  %v4795_v32 = vcombine.low %v102_v19, %v106_v21  ;;  %v230_v18 = vld [vmem:[#allocation5 + $0x418] sm:$0xff] }
  0xc0   :  { %1552 = vmatpush1.bf16.msra.mxu0 %v4793_v26  ;;  %v286_v26 = vld [vmem:[#allocation5 + $0x5d8] sm:$0xff] }
  0xc1   :  { %1605 = vmatpush1.bf16.msra.mxu1 %v4921_v27  ;;  %1553 = vmatprep.subr.bf16.mxu0 %v4914_v28  ;;  %v290_v27 = vld [vmem:[#allocation5 + $0x5f8] sm:$0xff] }
  0xc2   :  { %1643 = vmatprep.subr.bf16.mxu1 %v4852_v29  ;;  %v222_v28 = vld [vmem:[#allocation5 + $0x3d8] sm:$0xff]  ;;  %v4980_v33 = vcombine.high %v286_v26, %v290_v27  ;;  %v4979_v40 = vcombine.low %v286_v26, %v290_v27  ;;  %v1805_v27 = vld [vmem:[#allocation7 + $0x1c0] sm:$0xff] }
  0xc3   :  { %v226_v29 = vld [vmem:[#allocation5 + $0x3f8] sm:$0xff] }
  0xc4   :  { %1623 = vmatmul.mubr.bf16.vlgmr.msra.gmra.mxu1 %v5910_v13  ;;  %1554 = vmatpush2.bf16.msra.mxu0 %v4913_v35  ;;  %v4890_v13 = vcombine.high %v197_v48, %v201_v49  ;;  %v4916_v34 = vcombine.high %v222_v28, %v226_v29  ;;  %v278_v35 = vld [vmem:[#allocation5 + $0x598] sm:$0xff]  ;;  %v4915_v41 = vcombine.low %v222_v28, %v226_v29  ;;  %v1809_v28 = vld [vmem:[#allocation7 + $0x1e0] sm:$0xff]  ;;  %v1806_v29 = vld [vmem:[#allocation7 + $0x1c8] sm:$0xff] }
  0xc5   :  { %1644 = vmatpush1.bf16.msra.mxu1 %v4851_v36  ;;  %1555 = vmatprep.subr.bf16.mxu0 %v4906_v38  ;;  %v282_v36 = vld [vmem:[#allocation5 + $0x5b8] sm:$0xff] }
  0xc6   :  { %1645 = vmatprep.subr.bf16.mxu1 %v4844_v39  ;;  %1632 = vmatprep.mubr.bf16.mxu1 %v7791_v0  ;;  %v214_v38 = vld [vmem:[#allocation5 + $0x398] sm:$0xff]  ;;  %v4972_v42 = vcombine.high %v278_v35, %v282_v36  ;;  %v4971_v48 = vcombine.low %v278_v35, %v282_v36  ;;  %v1797_v36 = vld [vmem:[#allocation7 + $0x180] sm:$0xff] }
  0xc7   :  { %v218_v39 = vld [vmem:[#allocation5 + $0x3b8] sm:$0xff] }
  0xc8   :  { %1556 = vmatpush2.bf16.msra.mxu0 %v4905_v44  ;;  %v4908_v43 = vcombine.high %v214_v38, %v218_v39  ;;  %v270_v44 = vld [vmem:[#allocation5 + $0x558] sm:$0xff]  ;;  %v4907_v49 = vcombine.low %v214_v38, %v218_v39  ;;  %v1801_v38 = vld [vmem:[#allocation7 + $0x1a0] sm:$0xff]  ;;  %v1798_v39 = vld [vmem:[#allocation7 + $0x188] sm:$0xff] }
  0xc9   :  { %1646 = vmatpush1.bf16.msra.mxu1 %v4843_v45  ;;  %1557 = vmatprep.subr.bf16.mxu0 %v4898_v46  ;;  %v274_v45 = vld [vmem:[#allocation5 + $0x578] sm:$0xff] }
  0xca   :  { %1647 = vmatprep.subr.bf16.mxu1 %v4836_v47  ;;  %v206_v46 = vld [vmem:[#allocation5 + $0x358] sm:$0xff]  ;;  %v4964_v50 = vcombine.high %v270_v44, %v274_v45  ;;  %v4963_v55 = vcombine.low %v270_v44, %v274_v45  ;;  %v1789_v45 = vld [vmem:[#allocation7 + $0x140] sm:$0xff] }
  0xcb   :  { %v210_v47 = vld [vmem:[#allocation5 + $0x378] sm:$0xff] }
  0xcc   :  { %1558 = vmatpush2.bf16.msra.mxu0 %v4897_v52  ;;  %1633 = vmatmul.mubr.bf16.gmra.mxu1 %v5914_v31  ;;  %v4812_v31 = vcombine.high %v118_v3, %v122_v4  ;;  %v4900_v51 = vcombine.high %v206_v46, %v210_v47  ;;  %v262_v52 = vld [vmem:[#allocation5 + $0x518] sm:$0xff] }
  0xcd   :  { %1648 = vmatpush1.bf16.msra.mxu1 %v4835_v53  ;;  %1559 = vmatprep.subr.bf16.mxu0 %v4890_v13  ;;  %v266_v53 = vld [vmem:[#allocation5 + $0x538] sm:$0xff] }
  0xce   :  { %1649 = vmatprep.subr.bf16.mxu1 %v4828_v54  ;;  %1675 = vmatprep.mubr.bf16.mxu1 %v5907_v59  ;;  %v4866_v59 = vcombine.high %v173_v8, %v177_v9  ;;  %v198_v13 = vld [vmem:[#allocation5 + $0x318] sm:$0xff]  ;;  %v4956_v56 = vcombine.high %v262_v52, %v266_v53 }
  0xcf   :  { %v202_v54 = vld [vmem:[#allocation5 + $0x338] sm:$0xff] }
  0xd0   :  { %1560 = vmatpush2.bf16.msra.mxu0 %v4889_v60  ;;  %v4892_v57 = vcombine.high %v198_v13, %v202_v54  ;;  %v190_v60 = vld [vmem:[#allocation5 + $0x2d8] sm:$0xff] }
  0xd1   :  { %1650 = vmatpush1.bf16.msra.mxu1 %v4827_v61  ;;  %1561 = vmatprep.subr.bf16.mxu0 %v4882_v62  ;;  %v194_v61 = vld [vmem:[#allocation5 + $0x2f8] sm:$0xff]  ;;  %v4955_v62 = vcombine.low %v262_v52, %v266_v53 }
  0xd2   :  { %1651 = vmatprep.subr.bf16.mxu1 %v4820_v63  ;;  %v4891_v63 = vcombine.low %v198_v13, %v202_v54  ;;  %v4884_v2 = vcombine.high %v190_v60, %v194_v61  ;;  %v246_v3 = vld [vmem:[#allocation5 + $0x498] sm:$0xff]  ;;  %v1781_v54 = vld [vmem:[#allocation7 + $0x100] sm:$0xff] }
  0xd3   :  { %v250_v4 = vld [vmem:[#allocation5 + $0x4b8] sm:$0xff] }
  0xd4   :  { %1562 = vmatpush2.bf16.msra.mxu0 %v4881_v5  ;;  %v182_v5 = vld [vmem:[#allocation5 + $0x298] sm:$0xff] }
  0xd5   :  { %1652 = vmatpush1.bf16.msra.mxu1 %v4819_v6  ;;  %1563 = vmatprep.subr.bf16.mxu0 %v4874_v7  ;;  %v186_v6 = vld [vmem:[#allocation5 + $0x2b8] sm:$0xff] }
  0xd6   :  { %1653 = vmatprep.subr.bf16.mxu1 %v4812_v31  ;;  %v4883_v31 = vcombine.low %v190_v60, %v194_v61  ;;  %v4876_v8 = vcombine.high %v182_v5, %v186_v6  ;;  %v238_v9 = vld [vmem:[#allocation5 + $0x458] sm:$0xff] }
  0xd7   :  { %v234_v19 = vld [vmem:[#allocation5 + $0x438] sm:$0xff] }
  0xd8   :  { %1564 = vmatpush2.bf16.msra.mxu0 %v4873_v12  ;;  %v178_v12 = vld [vmem:[#allocation5 + $0x278] sm:$0xff] }
  0xd9   :  { %1654 = vmatpush1.bf16.msra.mxu1 %v4811_v14  ;;  %1565 = vmatprep.subr.bf16.mxu0 %v4866_v59  ;;  %v4939_v14 = vcombine.low %v246_v3, %v250_v4  ;;  %v4875_v59 = vcombine.low %v182_v5, %v186_v6  ;;  %v4868_v17 = vcombine.high %v174_v11, %v178_v12  ;;  %v166_v21 = vld [vmem:[#allocation5 + $0x218] sm:$0xff]  ;;  %v5605_v5 = vld [vmem:[#allocation2 + $0x18] ss:$12 sps:$4 sm:$0xff]  }
  0xda   :  { %1655 = vmatprep.subr.bf16.mxu1 %v4804_v15  ;;  %v4932_v15 = vcombine.high %v238_v9, %v242_v10 }
  0xdc   :  { %1566 = vmatpush2.bf16.msra.mxu0 %v4865_v22  ;;  %v170_v22 = vld [vmem:[#allocation5 + $0x238] sm:$0xff] }
  0xdd   :  { %1656 = vmatpush1.bf16.msra.mxu1 %v4803_v23  ;;  %1567 = vmatprep.subr.bf16.mxu0 %v4858_v24  ;;  %v4931_v23 = vcombine.low %v238_v9, %v242_v10  ;;  %v4867_v24 = vcombine.low %v174_v11, %v178_v12  ;;  %v4860_v26 = vcombine.high %v166_v21, %v170_v22  ;;  %v1766_v9 = vld [vmem:[#allocation7 + $0x88] sm:$0xff] }
  0xde   :  { %1657 = vmatprep.subr.bf16.mxu1 %v4796_v25  ;;  %v4924_v25 = vcombine.high %v230_v18, %v234_v19  ;;  %v1770_v10 = vld [vmem:[#allocation7 + $0xa8] sm:$0xff] }
  0xe0   :  { %1568 = vmatpush2.bf16.msra.mxu0 %v4857_v30  ;;  %v1810_v30 = vld [vmem:[#allocation7 + $0x1e8] sm:$0xff] }
  0xe1   :  { %1658 = vmatpush1.bf16.msra.mxu1 %v4795_v32  ;;  %1696 = vmatprep.subr.bf16.mxu0 %v4980_v33  ;;  %v4923_v32 = vcombine.low %v230_v18, %v234_v19  ;;  %v4859_v33 = vcombine.low %v166_v21, %v170_v22  ;;  %v5946_v35 = vcombine.high %v1806_v29, %v1810_v30  ;;  %v1758_v18 = vld [vmem:[#allocation7 + $0x48] sm:$0xff] }
  0xe2   :  { %1659 = vmatprep.subr.bf16.mxu1 %v4916_v34  ;;  %v5944_v34 = vcombine.high %v1805_v27, %v1809_v28  ;;  %v1762_v19 = vld [vmem:[#allocation7 + $0x68] sm:$0xff]  ;;  %v6014_v22 = vcombine.low %v1766_v9, %v1770_v10 }
  0xe3   :  { %1570 = vmatmul.mubr.bf16.vlgmr.msra.gmra.mxu0 %v5918_v16  ;;  %v4899_v16 = vcombine.low %v206_v46, %v210_v47  ;;  %8170 = vst [vmem:[#allocation16_spill] sm:$0xff] %v5946_v35  ;;  %v1793_v46 = vld [vmem:[#allocation7 + $0x160] sm:$0xff] }
  0xe4   :  { %1697 = vmatpush1.bf16.msra.mxu0 %v4979_v40  ;;  %1579 = vmatprep.mubr.bf16.mxu0 %v5920_v20  ;;  %v258_v20 = vld [vmem:[#allocation5 + $0x4f8] sm:$0xff]  ;;  %v1802_v40 = vld [vmem:[#allocation7 + $0x1a8] sm:$0xff]  ;;  %v5965_v53 = vcombine.high %v1789_v45, %v1793_v46 }
  0xe5   :  { %1660 = vmatpush2.bf16.msra.mxu1 %v4915_v41  ;;  %1698 = vmatprep.subr.bf16.mxu0 %v4972_v42  ;;  %v4948_v1 = vcombine.high %v254_v58, %v258_v20  ;;  %v4947_v7 = vcombine.low %v254_v58, %v258_v20  ;;  %v5948_v41 = vcombine.low %v1805_v27, %v1809_v28  ;;  %v5601_v47 = vld [vmem:[#allocation2 + $0x8] ss:$12 sps:$4 sm:$0xff]   ;;  %v1750_v27 = vld [vmem:[#allocation7 + $0x8] sm:$0xff] }
  0xe6   :  { %1661 = vmatprep.subr.bf16.mxu1 %v4908_v43  ;;  %v5951_v42 = vcombine.low %v1806_v29, %v1810_v30  ;;  %v5953_v43 = vcombine.high %v1797_v36, %v1801_v38  ;;  %v5956_v44 = vcombine.high %v1798_v39, %v1802_v40  ;;  %v5963_v52 = vcombine.low %v1798_v39, %v1802_v40  ;;  %v1754_v28 = vld [vmem:[#allocation7 + $0x28] sm:$0xff] }
  0xe7   :  { %8171 = vst [vmem:[#allocation17_spill] sm:$0xff] %v5965_v53  ;;  %v5972_v58 = vcombine.low %v1789_v45, %v1793_v46  ;;  %v6026_v30 = vcombine.low %v1758_v18, %v1762_v19  ;;  %v1870_v39 = vld [vmem:[#allocation7 + $0x3c8] sm:$0xff]  ;;  %v6038_v46 = vcombine.low %v1750_v27, %v1754_v28 }
  0xe8   :  { %1699 = vmatpush1.bf16.msra.mxu0 %v4971_v48  ;;  %v1790_v48 = vld [vmem:[#allocation7 + $0x148] sm:$0xff] }
  0xe9   :  { %1662 = vmatpush2.bf16.msra.mxu1 %v4907_v49  ;;  %1700 = vmatprep.subr.bf16.mxu0 %v4964_v50  ;;  %v1794_v49 = vld [vmem:[#allocation7 + $0x168] sm:$0xff]  ;;  %v5602_v50 = vld [vmem:[#allocation2] ss:$12 sps:$4 sm:$0xff]   ;;  %8172 = vst [vmem:[#allocation18_spill] sm:$0xff] %v5972_v58 }
  0xea   :  { %1663 = vmatprep.subr.bf16.mxu1 %v4900_v51  ;;  %v5959_v51 = vcombine.low %v1797_v36, %v1801_v38  ;;  %v5968_v13 = vcombine.high %v1790_v48, %v1794_v49  ;;  %v5976_v20 = vcombine.low %v1790_v48, %v1794_v49  ;;  %v1869_v36 = vld [vmem:[#allocation7 + $0x3c0] sm:$0xff]  ;;  %v1874_v40 = vld [vmem:[#allocation7 + $0x3e8] sm:$0xff] }
  0xeb   :  { %1580 = vmatmul.mubr.bf16.gmra.mxu0 %v5924_v37  ;;  %v4940_v37 = vcombine.high %v246_v3, %v250_v4  ;;  %v5604_v3 = vld [vmem:[#allocation2 + $0x20] ss:$12 sps:$4 sm:$0xff]   ;;  %v1873_v38 = vld [vmem:[#allocation7 + $0x3e0] sm:$0xff]  ;;  %v6043_v48 = vcombine.high %v1870_v39, %v1874_v40 }
  0xec   :  { %1701 = vmatpush1.bf16.msra.mxu0 %v4963_v55  ;;  %1728 = vmatprep.mubr.bf16.mxu0 %v7791_v0  ;;  %v1785_v55 = vld [vmem:[#allocation7 + $0x120] sm:$0xff] }
  0xed   :  { %1664 = vmatpush2.bf16.msra.mxu1 %v4899_v16  ;;  %1702 = vmatprep.subr.bf16.mxu0 %v4956_v56  ;;  %v5603_v16 = vld [vmem:[#allocation2 + $0x1c] ss:$12 sps:$4 sm:$0xff]   ;;  %v5978_v60 = vcombine.high %v1781_v54, %v1785_v55  ;;  %v5984_v4 = vcombine.low %v1781_v54, %v1785_v55  ;;  %v1861_v49 = vld [vmem:[#allocation7 + $0x380] sm:$0xff] }
  0xee   :  { %1665 = vmatprep.subr.bf16.mxu1 %v4892_v57  ;;  %v1782_v56 = vld [vmem:[#allocation7 + $0x108] sm:$0xff] }
  0xef   :  { %v1786_v57 = vld [vmem:[#allocation7 + $0x128] sm:$0xff]  ;;  %8173 = vst [vmem:[#allocation19_spill] sm:$0xff] %v5978_v60  ;;  %8174 = vst [vmem:[#allocation20_spill] sm:$0xff] %v5984_v4 }
  0xf0   :  { %1703 = vmatpush1.bf16.msra.mxu0 %v4955_v62  ;;  %v5981_v61 = vcombine.high %v1782_v56, %v1786_v57  ;;  %v1773_v62 = vld [vmem:[#allocation7 + $0xc0] sm:$0xff]  ;;  %v5988_v6 = vcombine.low %v1782_v56, %v1786_v57  ;;  %v1862_v54 = vld [vmem:[#allocation7 + $0x388] sm:$0xff]  ;;  %v6050_v56 = vcombine.low %v1870_v39, %v1874_v40 }
  0xf1   :  { %1666 = vmatpush2.bf16.msra.mxu1 %v4891_v63  ;;  %1704 = vmatprep.subr.bf16.mxu0 %v4948_v1  ;;  %v1777_v63 = vld [vmem:[#allocation7 + $0xe0] sm:$0xff]  ;;  %v1774_v1 = vld [vmem:[#allocation7 + $0xc8] sm:$0xff] }
  0xf2   :  { %1667 = vmatprep.subr.bf16.mxu1 %v4884_v2  ;;  %v1778_v2 = vld [vmem:[#allocation7 + $0xe8] sm:$0xff]  ;;  %v5998_v11 = vcombine.low %v1773_v62, %v1777_v63 }
  0xf3   :  { %v6002_v12 = vcombine.low %v1774_v1, %v1778_v2  ;;  %v1866_v55 = vld [vmem:[#allocation7 + $0x3a8] sm:$0xff] }
  0xf4   :  { %1705 = vmatpush1.bf16.msra.mxu0 %v4947_v7  ;;  %v5990_v7 = vcombine.high %v1773_v62, %v1777_v63  ;;  %8176 = vst [vmem:[#allocation22_spill] sm:$0xff] %v5998_v11  ;;  %v6055_v62 = vcombine.high %v1862_v54, %v1866_v55  ;;  %v1853_v63 = vld [vmem:[#allocation7 + $0x340] sm:$0xff]  ;;  %v1842_v39 = vld [vmem:[#allocation7 + $0x2e8] sm:$0xff] }
  0xf5   :  { %1668 = vmatpush2.bf16.msra.mxu1 %v4883_v31  ;;  %1706 = vmatprep.subr.bf16.mxu0 %v4940_v37  ;;  %v5993_v31 = vcombine.high %v1774_v1, %v1778_v2  ;;  %v1765_v37 = vld [vmem:[#allocation7 + $0x80] sm:$0xff]  ;;  %v1854_v2 = vld [vmem:[#allocation7 + $0x348] sm:$0xff] }
  0xf6   :  { %1669 = vmatprep.subr.bf16.mxu1 %v4876_v8  ;;  %8175 = vst [vmem:[#allocation21_spill] sm:$0xff] %v5990_v7  ;;  %v1769_v8 = vld [vmem:[#allocation7 + $0xa0] sm:$0xff] }
  0xf7   :  { %v6010_v21 = vcombine.low %v1765_v37, %v1769_v8  ;;  %v1857_v1 = vld [vmem:[#allocation7 + $0x360] sm:$0xff] }
  0xf8   :  { %1707 = vmatpush1.bf16.msra.mxu0 %v4939_v14  ;;  %v6004_v14 = vcombine.high %v1765_v37, %v1769_v8  ;;  %v6062_v37 = vcombine.low %v1862_v54, %v1866_v55  ;;  %v6064_v8 = vcombine.high %v1853_v63, %v1857_v1  ;;  %v1829_v55 = vld [vmem:[#allocation7 + $0x280] sm:$0xff] }
  0xf9   :  { %1670 = vmatpush2.bf16.msra.mxu1 %v4875_v59  ;;  %1708 = vmatprep.subr.bf16.mxu0 %v4932_v15  ;;  %v6007_v59 = vcombine.high %v1766_v9, %v1770_v10  ;;  %v1757_v15 = vld [vmem:[#allocation7 + $0x40] sm:$0xff]  ;;  %8178 = vst [vmem:[#allocation24_spill] sm:$0xff] %v6010_v21 }
  0xfa   :  { %1671 = vmatprep.subr.bf16.mxu1 %v4868_v17  ;;  %8177 = vst [vmem:[#allocation23_spill] sm:$0xff] %v6004_v14  ;;  %v1761_v17 = vld [vmem:[#allocation7 + $0x60] sm:$0xff]  ;;  %8187 = vst [vmem:[#allocation33_spill] sm:$0xff] %v6062_v37 }
  0xfb   :  { %v6022_v29 = vcombine.low %v1757_v15, %v1761_v17  ;;  %8188 = vst [vmem:[#allocation34_spill] sm:$0xff] %v6064_v8  ;;  %v1845_v10 = vld [vmem:[#allocation7 + $0x300] sm:$0xff] }
  0xfc   :  { %1709 = vmatpush1.bf16.msra.mxu0 %v4931_v23  ;;  %v6016_v23 = vcombine.high %v1757_v15, %v1761_v17  ;;  %v1849_v15 = vld [vmem:[#allocation7 + $0x320] sm:$0xff]  ;;  %v1846_v17 = vld [vmem:[#allocation7 + $0x308] sm:$0xff] }
  0xfd   :  { %1672 = vmatpush2.bf16.msra.mxu1 %v4867_v24  ;;  %1710 = vmatprep.subr.bf16.mxu0 %v4924_v25  ;;  %v6019_v24 = vcombine.high %v1758_v18, %v1762_v19  ;;  %v1749_v25 = vld [vmem:[#allocation7] sm:$0xff]  ;;  %8180 = vst [vmem:[#allocation26_spill] sm:$0xff] %v6022_v29  ;;  %v1850_v18 = vld [vmem:[#allocation7 + $0x328] sm:$0xff]  ;;  %v6070_v19 = vcombine.low %v1853_v63, %v1857_v1 }
  0xfe   :  { %1673 = vmatprep.subr.bf16.mxu1 %v4860_v26  ;;  %8179 = vst [vmem:[#allocation25_spill] sm:$0xff] %v6016_v23  ;;  %v1753_v26 = vld [vmem:[#allocation7 + $0x20] sm:$0xff]  ;;  %v6082_v40 = vcombine.low %v1845_v10, %v1849_v15  ;;  %v1830_v1 = vld [vmem:[#allocation7 + $0x288] sm:$0xff] }
  0xff   :  { %v6034_v45 = vcombine.low %v1749_v25, %v1753_v26  ;;  %8190 = vst [vmem:[#allocation36_spill] sm:$0xff] %v6070_v19  ;;  %v1833_v63 = vld [vmem:[#allocation7 + $0x2a0] sm:$0xff] }
 0x100   :  { %1711 = vmatpush1.bf16.msra.mxu0 %v4923_v32  ;;  %v6028_v32 = vcombine.high %v1749_v25, %v1753_v26  ;;  %v6076_v26 = vcombine.high %v1845_v10, %v1849_v15  ;;  %8194 = vst [vmem:[#allocation40_spill] sm:$0xff] %v6082_v40  ;;  %v6100_v15 = vcombine.high %v1829_v55, %v1833_v63 }
 0x101   :  { %1674 = vmatpush2.bf16.msra.mxu1 %v4859_v33  ;;  %2614 = vmatprep.subr.bf16.mxu0 %v5944_v34  ;;  %v6031_v33 = vcombine.high %v1750_v27, %v1754_v28  ;;  %8182 = vst [vmem:[#allocation28_spill] sm:$0xff] %v6034_v45  ;;  %v6079_v27 = vcombine.high %v1846_v17, %v1850_v18  ;;  %v1837_v28 = vld [vmem:[#allocation7 + $0x2c0] sm:$0xff] }
 0x102   :  { %2655 = vmatprep.subr.bf16.mxu1 %v5946_v35  ;;  %8181 = vst [vmem:[#allocation27_spill] sm:$0xff] %v6028_v32  ;;  %8192 = vst [vmem:[#allocation38_spill] sm:$0xff] %v6076_v26 }
 0x103   :  { %1729 = vmatmul.mubr.bf16.vlgmr.msra.gmra.mxu0 %v5601_v47  ;;  %v6040_v47 = vcombine.high %v1869_v36, %v1873_v38  ;;  %8193 = vst [vmem:[#allocation39_spill] sm:$0xff] %v6079_v27  ;;  %8200 = vst [vmem:[#allocation46_spill] sm:$0xff] %v6100_v15 }
 0x104   :  { %1676 = vmatmul.mubr.bf16.vlgmr.msra.gmra.mxu1 %v5602_v50  ;;  %2615 = vmatpush1.bf16.msra.mxu0 %v5948_v41  ;;  %v1865_v50 = vld [vmem:[#allocation7 + $0x3a0] sm:$0xff] }
 0x105   :  { %2656 = vmatpush1.bf16.msra.mxu1 %v5951_v42  ;;  %2616 = vmatprep.subr.bf16.mxu0 %v5953_v43  ;;  %8183 = vst [vmem:[#allocation29_spill] sm:$0xff] %v6040_v47  ;;  %v6052_v57 = vcombine.high %v1861_v49, %v1865_v50 }
 0x106   :  { %2657 = vmatprep.subr.bf16.mxu1 %v5956_v44  ;;  %1685 = vmatprep.mubr.bf16.mxu1 %v5603_v16  ;;  %v6046_v16 = vcombine.low %v1869_v36, %v1873_v38  ;;  %v1841_v36 = vld [vmem:[#allocation7 + $0x2e0] sm:$0xff]  ;;  %v1838_v38 = vld [vmem:[#allocation7 + $0x2c8] sm:$0xff] }
 0x107   :  { %1738 = vmatprep.mubr.bf16.mxu0 %v7791_v0  ;;  %8185 = vst [vmem:[#allocation31_spill] sm:$0xff] %v6052_v57  ;;  %v6091_v54 = vcombine.high %v1838_v38, %v1842_v39  ;;  %v6098_v10 = vcombine.low %v1838_v38, %v1842_v39 }
 0x108   :  { %2617 = vmatpush1.bf16.msra.mxu0 %v5959_v51  ;;  %8184 = vst [vmem:[#allocation30_spill] sm:$0xff] %v6046_v16 }
 0x109   :  { %2658 = vmatpush1.bf16.msra.mxu1 %v5963_v52  ;;  %2618 = vmatprep.subr.bf16.mxu0 %v5965_v53  ;;  %8197 = vst [vmem:[#allocation43_spill] sm:$0xff] %v6091_v54  ;;  %8199 = vst [vmem:[#allocation45_spill] sm:$0xff] %v6098_v10 }
 0x10a   :  { %2659 = vmatprep.subr.bf16.mxu1 %v5968_v13 }
 0x10b   :  { %1739 = vmatmul.mubr.bf16.gmra.mxu0 %v5604_v3  ;;  %v1858_v3 = vld [vmem:[#allocation7 + $0x368] sm:$0xff] }
 0x10c   :  { %2619 = vmatpush1.bf16.msra.mxu0 %v5972_v58  ;;  %1686 = vmatmul.mubr.bf16.gmra.mxu1 %v5605_v5  ;;  %v6058_v5 = vcombine.low %v1861_v49, %v1865_v50  ;;  %v6067_v9 = vcombine.high %v1854_v2, %v1858_v3  ;;  %v6074_v25 = vcombine.low %v1854_v2, %v1858_v3  ;;  %v1834_v2 = vld [vmem:[#allocation7 + $0x2a8] sm:$0xff] }
 0x10d   :  { %2660 = vmatpush1.bf16.msra.mxu1 %v5976_v20  ;;  %2620 = vmatprep.subr.bf16.mxu0 %v5978_v60  ;;  %v6086_v49 = vcombine.low %v1846_v17, %v1850_v18  ;;  %v6088_v50 = vcombine.high %v1837_v28, %v1841_v36  ;;  %v6094_v3 = vcombine.low %v1837_v28, %v1841_v36  ;;  %v1821_v18 = vld [vmem:[#allocation7 + $0x240] sm:$0xff]  ;;  %v293_v36 = vlaneseq }
 0x10e   :  { %2661 = vmatprep.subr.bf16.mxu1 %v5981_v61  ;;  %2646 = vmatprep.mubr.bf16.mxu0 %v7791_v0  ;;  %8186 = vst [vmem:[#allocation32_spill] sm:$0xff] %v6058_v5  ;;  %8189 = vst [vmem:[#allocation35_spill] sm:$0xff] %v6067_v9  ;;  %v6103_v17 = vcombine.high %v1830_v1, %v1834_v2  ;;  %v6106_v28 = vcombine.low %v1829_v55, %v1833_v63  ;;  %v1818_v55 = vld [vmem:[#allocation7 + $0x228] sm:$0xff] }
 0x10f   :  { %2687 = vmatprep.mubr.bf16.mxu1 %v7791_v0  ;;  %8191 = vst [vmem:[#allocation37_spill] sm:$0xff] %v6074_v25  ;;  %8195 = vst [vmem:[#allocation41_spill] sm:$0xff] %v6086_v49  ;;  %v1825_v0 = vld [vmem:[#allocation7 + $0x260] sm:$0xff]  ;;  %v6110_v38 = vcombine.low %v1830_v1, %v1834_v2 }
 0x110   :  { %2621 = vmatpush1.bf16.msra.mxu0 %v5984_v4  ;;  %8196 = vst [vmem:[#allocation42_spill] sm:$0xff] %v6088_v50  ;;  %8198 = vst [vmem:[#allocation44_spill] sm:$0xff] %v6094_v3  ;;  %v6112_v39 = vcombine.high %v1821_v18, %v1825_v0  ;;  %v6120_v63 = vcombine.low %v1821_v18, %v1825_v0  ;;  %v1812_v0 = vld [vmem:[#allocation7 + $0x1f8] sm:$0xff] }
 0x111   :  { %2662 = vmatpush1.bf16.msra.mxu1 %v5988_v6  ;;  %2622 = vmatprep.subr.bf16.mxu0 %v5990_v7  ;;  %8201 = vst [vmem:[#allocation47_spill] sm:$0xff] %v6103_v17  ;;  %8202 = vst [vmem:[#allocation48_spill] sm:$0xff] %v6106_v28 }
 0x112   :  { %2663 = vmatprep.subr.bf16.mxu1 %v5993_v31  ;;  %8203 = vst [vmem:[#allocation49_spill] sm:$0xff] %v6110_v38  ;;  %8204 = vst [vmem:[#allocation50_spill] sm:$0xff] %v6112_v39 }
 0x113   :  { %8206 = vst [vmem:[#allocation52_spill] sm:$0xff] %v6120_v63 }
 0x114   :  { %2623 = vmatpush1.bf16.msra.mxu0 %v5998_v11  ;;  %v1783_v11 = vld [vmem:[#allocation7 + $0x110] sm:$0xff] }
 0x115   :  { %2664 = vmatpush1.bf16.msra.mxu1 %v6002_v12  ;;  %2624 = vmatprep.subr.bf16.mxu0 %v6004_v14 }
 0x116   :  { %2665 = vmatprep.subr.bf16.mxu1 %v6007_v59 }
 0x118   :  { %2625 = vmatpush1.bf16.msra.mxu0 %v6010_v21 }
 0x119   :  { %2666 = vmatpush1.bf16.msra.mxu1 %v6014_v22  ;;  %2626 = vmatprep.subr.bf16.mxu0 %v6016_v23 }
 0x11a   :  { %2667 = vmatprep.subr.bf16.mxu1 %v6019_v24 }
 0x11c   :  { %2627 = vmatpush1.bf16.msra.mxu0 %v6022_v29 }
 0x11d   :  { %2668 = vmatpush1.bf16.msra.mxu1 %v6026_v30  ;;  %2628 = vmatprep.subr.bf16.mxu0 %v6028_v32 }
 0x11e   :  { %2669 = vmatprep.subr.bf16.mxu1 %v6031_v33 }
 0x120   :  { %2629 = vmatpush1.bf16.msra.mxu0 %v6034_v45 }
 0x121   :  { %2670 = vmatpush1.bf16.msra.mxu1 %v6038_v46  ;;  %2630 = vmatprep.subr.bf16.mxu0 %v6040_v47  ;;  %v1811_v47 = vld [vmem:[#allocation7 + $0x1f0] sm:$0xff] }
 0x122   :  { %2671 = vmatprep.subr.bf16.mxu1 %v6043_v48 }
 0x124   :  { %2631 = vmatpush2.bf16.msra.mxu0 %v6046_v16  ;;  %v1807_v16 = vld [vmem:[#allocation7 + $0x1d0] sm:$0xff] }
 0x125   :  { %2672 = vmatpush2.bf16.msra.mxu1 %v6050_v56  ;;  %2632 = vmatprep.subr.bf16.mxu0 %v6052_v57  ;;  %v6122_v57 = vshrl.u32 %v293_v36, 7  ;;  %v1800_v36 = vld [vmem:[#allocation7 + $0x198] sm:$0xff] }
 0x126   :  { %2673 = vmatprep.subr.bf16.mxu1 %v6055_v62 }
 0x127   :  { %8207 = vst [vmem:[#allocation53_spill] sm:$0xff] %v6122_v57 }
 0x128   :  { %2633 = vmatpush2.bf16.msra.mxu0 %v6058_v5  ;;  %v6117_v5 = vpop.f32.mrf.mxu1 }
 0x129   :  { %2674 = vmatpush2.bf16.msra.mxu1 %v6062_v37  ;;  %2634 = vmatprep.subr.bf16.mxu0 %v6064_v8  ;;  %v1817_v8 = vld [vmem:[#allocation7 + $0x220] sm:$0xff] }
 0x12a   :  { %2675 = vmatprep.subr.bf16.mxu1 %v6067_v9  ;;  %v1414_v45 = vpop.f32.mrf.mxu1 }
 0x12c   :  { %2635 = vmatpush2.bf16.msra.mxu0 %v6070_v19  ;;  %v1826_v19 = vld [vmem:[#allocation7 + $0x268] sm:$0xff]  ;;  %v1416_v29 = vpop.f32.mrf.mxu1 }
 0x12d   :  { %2676 = vmatpush2.bf16.msra.mxu1 %v6074_v25  ;;  %2636 = vmatprep.subr.bf16.mxu0 %v6076_v26  ;;  %v1822_v26 = vld [vmem:[#allocation7 + $0x248] sm:$0xff] }
 0x12e   :  { %2677 = vmatprep.subr.bf16.mxu1 %v6079_v27  ;;  %v6126_v1 = vcombine.low %v1822_v26, %v1826_v19 }
 0x130   :  { %2637 = vmatpush2.bf16.msra.mxu0 %v6082_v40  ;;  %v1813_v40 = vld [vmem:[#allocation7 + $0x200] sm:$0xff]  ;;  %8208 = vst [vmem:[#allocation54_spill] sm:$0xff] %v6126_v1 }
 0x131   :  { %2678 = vmatpush2.bf16.msra.mxu1 %v6086_v49  ;;  %2638 = vmatprep.subr.bf16.mxu0 %v6088_v50  ;;  %v6115_v50 = vcombine.high %v1822_v26, %v1826_v19  ;;  %v6128_v2 = vcombine.high %v1813_v40, %v1817_v8  ;;  %v6134_v18 = vcombine.low %v1813_v40, %v1817_v8  ;;  %v6141_v26 = vld [vmem:[#allocation8] sm:$0xff]  ;;  %v1799_v8 = vld [vmem:[#allocation7 + $0x190] sm:$0xff] }
 0x132   :  { %2679 = vmatprep.subr.bf16.mxu1 %v6091_v54  ;;  %v1803_v40 = vld [vmem:[#allocation7 + $0x1b0] sm:$0xff] }
 0x133   :  { %8205 = vst [vmem:[#allocation51_spill] sm:$0xff] %v6115_v50  ;;  %8209 = vst [vmem:[#allocation55_spill] sm:$0xff] %v6128_v2 }
 0x134   :  { %2639 = vmatpush2.bf16.msra.mxu0 %v6094_v3  ;;  %v1814_v3 = vld [vmem:[#allocation7 + $0x208] sm:$0xff]  ;;  %8211 = vst [vmem:[#allocation57_spill] sm:$0xff] %v6134_v18 }
 0x135   :  { %2680 = vmatpush2.bf16.msra.mxu1 %v6098_v10  ;;  %2640 = vmatprep.subr.bf16.mxu0 %v6100_v15  ;;  %v6131_v15 = vcombine.high %v1814_v3, %v1818_v55  ;;  %v6139_v19 = vcombine.low %v1814_v3, %v1818_v55  ;;  %v8215_v3 = vsub.s32 0, %v6122_v57 }
 0x136   :  { %2681 = vmatprep.subr.bf16.mxu1 %v6103_v17 }
 0x137   :  { %8210 = vst [vmem:[#allocation56_spill] sm:$0xff] %v6131_v15  ;;  %8212 = vst [vmem:[#allocation58_spill] sm:$0xff] %v6139_v19  ;;  %v6153_v55 = vrot.slane %v6141_v26, %v8215_v3  ;;  %v1791_v3 = vld [vmem:[#allocation7 + $0x150] sm:$0xff] }
 0x138   :  { %2641 = vmatpush2.bf16.msra.mxu0 %v6106_v28  ;;  %v1808_v28 = vld [vmem:[#allocation7 + $0x1d8] sm:$0xff] }
 0x139   :  { %2682 = vmatpush2.bf16.msra.mxu1 %v6110_v38  ;;  %2642 = vmatprep.subr.bf16.mxu0 %v6112_v39  ;;  %v6143_v39 = vcombine.high %v1807_v16, %v1811_v47  ;;  %v6146_v32 = vcombine.high %v1808_v28, %v1812_v0 }
 0x13a   :  { %2683 = vmatprep.subr.bf16.mxu1 %v6115_v50  ;;  %v1804_v50 = vld [vmem:[#allocation7 + $0x1b8] sm:$0xff] }
 0x13b   :  { %8213 = vst [vmem:[#allocation59_spill] sm:$0xff] %v6143_v39  ;;  %8214 = vst [vmem:[#allocation60_spill] sm:$0xff] %v6146_v32  ;;  %v6169_v23 = vcombine.high %v1800_v36, %v1804_v50  ;;  %v6179_v21 = vcombine.low %v1800_v36, %v1804_v50  ;;  %v1788_v50 = vld [vmem:[#allocation7 + $0x138] sm:$0xff] }
 0x13c   :  { %2643 = vmatpush2.bf16.msra.mxu0 %v6120_v63  ;;  %v6161_v63 = vcombine.high %v1799_v8, %v1803_v40 }
 0x13d   :  { %2684 = vmatpush2.bf16.msra.mxu1 %v6126_v1  ;;  %2644 = vmatprep.subr.bf16.mxu0 %v6128_v2  ;;  %v6155_v2 = vcombine.low %v1807_v16, %v1811_v47  ;;  %v8219_v1 = vsub.s32 1, %v6122_v57  ;;  %8220 = vst [vmem:[#allocation64_spill] sm:$0xff] %v6169_v23  ;;  %v1795_v47 = vld [vmem:[#allocation7 + $0x170] sm:$0xff]  ;;  %v1418_v16 = vpop.f32.mrf.mxu1  ;;  %8223 = vst [vmem:[#allocation66_spill] sm:$0xff] %v6179_v21 }
 0x13e   :  { %2685 = vmatprep.subr.bf16.mxu1 %v6131_v15  ;;  %v6159_v15 = vcombine.low %v1808_v28, %v1812_v0  ;;  %8218 = vst [vmem:[#allocation63_spill] sm:$0xff] %v6161_v63  ;;  %v1796_v28 = vld [vmem:[#allocation7 + $0x178] sm:$0xff]  ;;  %v6181_v17 = vcombine.high %v1791_v3, %v1795_v47 }
 0x13f   :  { %8216 = vst [vmem:[#allocation61_spill] sm:$0xff] %v6155_v2  ;;  %v1422_v14 = vpop.f32.mrf.mxu1 }
 0x140   :  { %2645 = vmatpush2.bf16.msra.mxu0 %v6134_v18  ;;  %8217 = vst [vmem:[#allocation62_spill] sm:$0xff] %v6159_v15  ;;  %v6167_v18 = vrot.slane %v6141_v26, %v8219_v1  ;;  %8224 = vst [vmem:[#allocation67_spill] sm:$0xff] %v6181_v17 }
 0x141   :  { %2686 = vmatpush2.bf16.msra.mxu1 %v6139_v19  ;;  %2696 = vmatprep.subr.bf16.mxu0 %v6143_v39  ;;  %v8221_v19 = vmov 0   ;;  %v1792_v39 = vld [vmem:[#allocation7 + $0x158] sm:$0xff]  ;;  %v1424_v54 = vpop.f32.mrf.mxu1 }
 0x142   :  { %2737 = vmatprep.subr.bf16.mxu1 %v6146_v32  ;;  %v6175_v32 = vcombine.low %v1799_v8, %v1803_v40 }
 0x143   :  { %v1359_v38 = vpop.f32.mrf.mxu0  ;;  %2647 = vmatmul.mubr.bf16.vlgmr.msra.gmra.mxu0 %v8221_v19 }
 0x144   :  { %v1360_v0 = vadd.f32 %v1359_v38, %v6153_v55  ;;  %2688 = vmatmul.mubr.bf16.vlgmr.msra.gmra.mxu1 %v8221_v19  ;;  %2697 = vmatpush1.bf16.msra.mxu0 %v6155_v2  ;;  %8222 = vst [vmem:[#allocation65_spill] sm:$0xff] %v6175_v32  ;;  %v6185_v38 = vcombine.high %v1792_v39, %v1796_v28  ;;  %v1787_v2 = vld [vmem:[#allocation7 + $0x130] sm:$0xff] }
 0x145   :  { %2738 = vmatpush1.bf16.msra.mxu1 %v6159_v15  ;;  %v1361_v1 = vpop.f32.mrf.mxu0  ;;  %2698 = vmatprep.subr.bf16.mxu0 %v6161_v63  ;;  %v1784_v63 = vld [vmem:[#allocation7 + $0x118] sm:$0xff] }
 0x146   :  { %v1362_v10 = vadd.f32 %v1361_v1, %v6167_v18  ;;  %2739 = vmatprep.subr.bf16.mxu1 %v6169_v23  ;;  %8225 = vst [vmem:[#allocation68_spill] sm:$0xff] %v6185_v38  ;;  %2728 = vmatprep.mubr.bf16.mxu0 %v8221_v19  ;;  %v6189_v8 = vadd.f32 %v6117_v5, %v1360_v0 }
 0x147   :  { %v1363_v40 = vpop.f32.mrf.mxu0  ;;  %2769 = vmatprep.mubr.bf16.mxu1 %v8221_v19  ;;  %v6194_v1 = vcombine.low %v1791_v3, %v1795_v47  ;;  %v6200_v5 = vcombine.low %v1792_v39, %v1796_v28  ;;  %v6202_v0 = vcombine.high %v1783_v11, %v1787_v2  ;;  %v1775_v3 = vld [vmem:[#allocation7 + $0xd0] sm:$0xff]  ;;  %v6211_v39 = vcombine.low %v1783_v11, %v1787_v2 }
 0x148   :  { %v1364_v36 = vadd.f32 %v1363_v40, %v6153_v55  ;;  %2699 = vmatpush1.bf16.msra.mxu0 %v6175_v32  ;;  %v6196_v23 = vadd.f32 %v1414_v45, %v1362_v10  ;;  %v6206_v40 = vcombine.high %v1784_v63, %v1788_v50  ;;  %v1779_v47 = vld [vmem:[#allocation7 + $0xf0] sm:$0xff]  ;;  %v1776_v10 = vld [vmem:[#allocation7 + $0xd8] sm:$0xff] }
 0x149   :  { %8226 = vst [vmem:[#allocation69_spill] sm:$0xff] %v6194_v1  ;;  %2740 = vmatpush1.bf16.msra.mxu1 %v6179_v21  ;;  %v1365_v15 = vpop.f32.mrf.mxu0  ;;  %2700 = vmatprep.subr.bf16.mxu0 %v6181_v17  ;;  %8227 = vst [vmem:[#allocation70_spill] sm:$0xff] %v6200_v5  ;;  %v1780_v32 = vld [vmem:[#allocation7 + $0xf8] sm:$0xff] }
 0x14a   :  { %8228 = vst [vmem:[#allocation71_spill] sm:$0xff] %v6202_v0  ;;  %v1366_v7 = vadd.f32 %v1365_v15, %v6167_v18  ;;  %2741 = vmatprep.subr.bf16.mxu1 %v6185_v38  ;;  %8229 = vst [vmem:[#allocation72_spill] sm:$0xff] %v6206_v40  ;;  %v6208_v45 = vadd.f32 %v1416_v29, %v1364_v36  ;;  %v6218_v15 = vcombine.low %v1784_v63, %v1788_v50  ;;  %v1426_v36 = vpop.f32.mrf.mxu1 }
 0x14b   :  { %v1369_v21 = vpop.f32.mrf.mxu0  ;;  %8231 = vst [vmem:[#allocation74_spill] sm:$0xff] %v6211_v39  ;;  %v6220_v38 = vcombine.high %v1775_v3, %v1779_v47  ;;  %v6229_v63 = vcombine.low %v1775_v3, %v1779_v47 }
 0x14c   :  { %8230 = vst [vmem:[#allocation73_spill] sm:$0xff] %v6208_v45  ;;  %2701 = vmatpush1.bf16.msra.mxu0 %v6194_v1  ;;  %v1370_v28 = vadd.f32 %v1369_v21, %v6153_v55  ;;  %v6214_v17 = vadd.f32 %v1418_v16, %v1366_v7  ;;  %8233 = vst [vmem:[#allocation76_spill] sm:$0xff] %v6218_v15  ;;  %v6223_v45 = vcombine.high %v1776_v10, %v1780_v32  ;;  %v1767_v7 = vld [vmem:[#allocation7 + $0x90] sm:$0xff]  ;;  %v1768_v16 = vld [vmem:[#allocation7 + $0x98] sm:$0xff] }
 0x14d   :  { %2742 = vmatpush1.bf16.msra.mxu1 %v6200_v5  ;;  %2702 = vmatprep.subr.bf16.mxu0 %v6202_v0  ;;  %8234 = vst [vmem:[#allocation77_spill] sm:$0xff] %v6220_v38  ;;  %v1371_v29 = vpop.f32.mrf.mxu0  ;;  %v1771_v21 = vld [vmem:[#allocation7 + $0xb0] sm:$0xff]  ;;  %8237 = vst [vmem:[#allocation80_spill] sm:$0xff] %v6229_v63 }
 0x14e   :  { %8232 = vst [vmem:[#allocation75_spill] sm:$0xff] %v6214_v17  ;;  %2743 = vmatprep.subr.bf16.mxu1 %v6206_v40  ;;  %8235 = vst [vmem:[#allocation78_spill] sm:$0xff] %v6223_v45  ;;  %v1372_v11 = vadd.f32 %v1371_v29, %v6167_v18  ;;  %v6226_v2 = vadd.f32 %v1422_v14, %v1370_v28  ;;  %v1772_v17 = vld [vmem:[#allocation7 + $0xb8] sm:$0xff]  ;;  %v6236_v29 = vcombine.low %v1776_v10, %v1780_v32 }
 0x14f   :  { %v1373_v1 = vpop.f32.mrf.mxu0  ;;  %v6238_v14 = vcombine.high %v1767_v7, %v1771_v21  ;;  %v6241_v40 = vcombine.high %v1768_v16, %v1772_v17  ;;  %v6247_v32 = vcombine.low %v1767_v7, %v1771_v21 }
 0x150   :  { %8236 = vst [vmem:[#allocation79_spill] sm:$0xff] %v6226_v2  ;;  %2703 = vmatpush1.bf16.msra.mxu0 %v6211_v39  ;;  %v1374_v50 = vadd.f32 %v1373_v1, %v6153_v55  ;;  %v6232_v0 = vadd.f32 %v1424_v54, %v1372_v11  ;;  %8239 = vst [vmem:[#allocation82_spill] sm:$0xff] %v6236_v29  ;;  %v1428_v2 = vpop.f32.mrf.mxu1  ;;  %v1759_v54 = vld [vmem:[#allocation7 + $0x50] sm:$0xff]  ;;  %v1760_v1 = vld [vmem:[#allocation7 + $0x58] sm:$0xff] }
 0x151   :  { %2744 = vmatpush1.bf16.msra.mxu1 %v6218_v15  ;;  %2704 = vmatprep.subr.bf16.mxu0 %v6220_v38  ;;  %8240 = vst [vmem:[#allocation83_spill] sm:$0xff] %v6238_v14  ;;  %v1375_v28 = vpop.f32.mrf.mxu0  ;;  %8241 = vst [vmem:[#allocation84_spill] sm:$0xff] %v6241_v40  ;;  %v1763_v55 = vld [vmem:[#allocation7 + $0x70] sm:$0xff]  ;;  %v1764_v11 = vld [vmem:[#allocation7 + $0x78] sm:$0xff] }
 0x152   :  { %8238 = vst [vmem:[#allocation81_spill] sm:$0xff] %v6232_v0  ;;  %2745 = vmatprep.subr.bf16.mxu1 %v6223_v45  ;;  %v1376_v3 = vadd.f32 %v1375_v28, %v6167_v18  ;;  %v6244_v47 = vadd.f32 %v1426_v36, %v1374_v50  ;;  %8243 = vst [vmem:[#allocation86_spill] sm:$0xff] %v6247_v32  ;;  %v6253_v0 = vcombine.low %v1768_v16, %v1772_v17  ;;  %v1751_v36 = vld [vmem:[#allocation7 + $0x10] sm:$0xff]  ;;  %v1752_v28 = vld [vmem:[#allocation7 + $0x18] sm:$0xff] }
 0x153   :  { %v6255_v38 = vcombine.high %v1759_v54, %v1763_v55  ;;  %v6258_v18 = vcombine.high %v1760_v1, %v1764_v11  ;;  %v1755_v50 = vld [vmem:[#allocation7 + $0x30] sm:$0xff]  ;;  %v6265_v17 = vcombine.low %v1760_v1, %v1764_v11  ;;  %v7905_v1 = vsub.s32 2, %v6122_v57  ;;  %v1852_v45 = vld [vmem:[#allocation7 + $0x338] sm:$0xff] }
 0x154   :  { %8242 = vst [vmem:[#allocation85_spill] sm:$0xff] %v6244_v47  ;;  %2705 = vmatpush1.bf16.msra.mxu0 %v6229_v63  ;;  %v6249_v10 = vadd.f32 %v1428_v2, %v1376_v3  ;;  %8245 = vst [vmem:[#allocation88_spill] sm:$0xff] %v6253_v0  ;;  %v1756_v47 = vld [vmem:[#allocation7 + $0x38] sm:$0xff]  ;;  %v6261_v2 = vcombine.low %v1759_v54, %v1763_v55  ;;  %v6267_v7 = vcombine.high %v1751_v36, %v1755_v50  ;;  %v1871_v16 = vld [vmem:[#allocation7 + $0x3d0] sm:$0xff] }
 0x155   :  { %2746 = vmatpush1.bf16.msra.mxu1 %v6236_v29  ;;  %2706 = vmatprep.subr.bf16.mxu0 %v6238_v14  ;;  %8246 = vst [vmem:[#allocation89_spill] sm:$0xff] %v6255_v38  ;;  %8247 = vst [vmem:[#allocation90_spill] sm:$0xff] %v6258_v18  ;;  %v6270_v21 = vcombine.high %v1752_v28, %v1756_v47  ;;  %v1875_v3 = vld [vmem:[#allocation7 + $0x3f0] sm:$0xff]  ;;  %v1876_v14 = vld [vmem:[#allocation7 + $0x3f8] sm:$0xff]  ;;  %v6273_v54 = vcombine.low %v1751_v36, %v1755_v50 }
 0x156   :  { %8244 = vst [vmem:[#allocation87_spill] sm:$0xff] %v6249_v10  ;;  %2747 = vmatprep.subr.bf16.mxu1 %v6241_v40  ;;  %8248 = vst [vmem:[#allocation91_spill] sm:$0xff] %v6261_v2  ;;  %v1872_v10 = vld [vmem:[#allocation7 + $0x3d8] sm:$0xff]  ;;  %v6277_v55 = vcombine.low %v1752_v28, %v1756_v47  ;;  %v6280_v11 = vcombine.high %v1871_v16, %v1875_v3  ;;  %v1867_v63 = vld [vmem:[#allocation7 + $0x3b0] sm:$0xff]  ;;  %v6287_v39 = vcombine.low %v1871_v16, %v1875_v3 }
 0x157   :  { %8249 = vst [vmem:[#allocation92_spill] sm:$0xff] %v6265_v17  ;;  %8250 = vst [vmem:[#allocation93_spill] sm:$0xff] %v6267_v7  ;;  %v1864_v36 = vld [vmem:[#allocation7 + $0x398] sm:$0xff]  ;;  %v6293_v47 = vrot.slane %v6141_v26, %v7905_v1  ;;  %v6296_v28 = vcombine.low %v1872_v10, %v1876_v14  ;;  %v1859_v16 = vld [vmem:[#allocation7 + $0x370] sm:$0xff] }
 0x158   :  { %2707 = vmatpush1.bf16.msra.mxu0 %v6247_v32  ;;  %8251 = vst [vmem:[#allocation94_spill] sm:$0xff] %v6270_v21  ;;  %8252 = vst [vmem:[#allocation95_spill] sm:$0xff] %v6273_v54  ;;  %v1863_v32 = vld [vmem:[#allocation7 + $0x390] sm:$0xff]  ;;  %v1868_v50 = vld [vmem:[#allocation7 + $0x3b8] sm:$0xff] }
 0x159   :  { %2748 = vmatpush1.bf16.msra.mxu1 %v6253_v0  ;;  %2708 = vmatprep.subr.bf16.mxu0 %v6255_v38  ;;  %8253 = vst [vmem:[#allocation96_spill] sm:$0xff] %v6277_v55  ;;  %8254 = vst [vmem:[#allocation97_spill] sm:$0xff] %v6280_v11  ;;  %v6283_v38 = vcombine.high %v1872_v10, %v1876_v14  ;;  %v1856_v1 = vld [vmem:[#allocation7 + $0x358] sm:$0xff]  ;;  %v6309_v14 = vcombine.low %v1863_v32, %v1867_v63  ;;  %v1847_v29 = vld [vmem:[#allocation7 + $0x310] sm:$0xff] }
 0x15a   :  { %2749 = vmatprep.subr.bf16.mxu1 %v6258_v18  ;;  %8256 = vst [vmem:[#allocation99_spill] sm:$0xff] %v6287_v39  ;;  %8257 = vst [vmem:[#allocation100_spill] sm:$0xff] %v6296_v28 }
 0x15b   :  { %8255 = vst [vmem:[#allocation98_spill] sm:$0xff] %v6283_v38  ;;  %8261 = vst [vmem:[#allocation103_spill] sm:$0xff] %v6309_v14 }
 0x15c   :  { %2709 = vmatpush1.bf16.msra.mxu0 %v6261_v2  ;;  %v6301_v2 = vcombine.high %v1864_v36, %v1868_v50 }
 0x15d   :  { %2750 = vmatpush1.bf16.msra.mxu1 %v6265_v17  ;;  %2710 = vmatprep.subr.bf16.mxu0 %v6267_v7  ;;  %v6298_v7 = vcombine.high %v1863_v32, %v1867_v63  ;;  %v1860_v17 = vld [vmem:[#allocation7 + $0x378] sm:$0xff] }
 0x15e   :  { %2751 = vmatprep.subr.bf16.mxu1 %v6270_v21  ;;  %8259 = vst [vmem:[#allocation102_spill] sm:$0xff] %v6301_v2  ;;  %v6319_v40 = vcombine.high %v1856_v1, %v1860_v17 }
 0x15f   :  { %8258 = vst [vmem:[#allocation101_spill] sm:$0xff] %v6298_v7 }
 0x160   :  { %2711 = vmatpush1.bf16.msra.mxu0 %v6273_v54  ;;  %v1855_v54 = vld [vmem:[#allocation7 + $0x350] sm:$0xff]  ;;  %8264 = vst [vmem:[#allocation106_spill] sm:$0xff] %v6319_v40 }
 0x161   :  { %2752 = vmatpush1.bf16.msra.mxu1 %v6277_v55  ;;  %2712 = vmatprep.subr.bf16.mxu0 %v6280_v11  ;;  %v8260_v55 = vsub.s32 3, %v6122_v57  ;;  %v6316_v0 = vcombine.high %v1855_v54, %v1859_v16 }
 0x162   :  { %2753 = vmatprep.subr.bf16.mxu1 %v6283_v38  ;;  %v6314_v38 = vcombine.low %v1864_v36, %v1868_v50  ;;  %v6325_v36 = vcombine.low %v1855_v54, %v1859_v16  ;;  %v6327_v50 = vcombine.low %v1856_v1, %v1860_v17  ;;  %v1839_v54 = vld [vmem:[#allocation7 + $0x2d0] sm:$0xff] }
 0x163   :  { %v1518_v3 = vpop.f32.mrf.mxu0  ;;  %v6306_v21 = vrot.slane %v6141_v26, %v8260_v55  ;;  %8263 = vst [vmem:[#allocation105_spill] sm:$0xff] %v6316_v0  ;;  %v1843_v16 = vld [vmem:[#allocation7 + $0x2f0] sm:$0xff] }
 0x164   :  { %v1465_v18 = vpop.f32.mrf.mxu1  ;;  %2713 = vmatpush2.bf16.msra.mxu0 %v6287_v39  ;;  %8262 = vst [vmem:[#allocation104_spill] sm:$0xff] %v6314_v38  ;;  %v1851_v39 = vld [vmem:[#allocation7 + $0x330] sm:$0xff]  ;;  %8265 = vst [vmem:[#allocation107_spill] sm:$0xff] %v6325_v36 }
 0x165   :  { %v1466_v10 = vadd.f32 %v1465_v18, %v6293_v47  ;;  %2754 = vmatpush2.bf16.msra.mxu1 %v6296_v28  ;;  %v1520_v11 = vpop.f32.mrf.mxu0  ;;  %2714 = vmatprep.subr.bf16.mxu0 %v6298_v7  ;;  %v1848_v28 = vld [vmem:[#allocation7 + $0x318] sm:$0xff]  ;;  %8266 = vst [vmem:[#allocation108_spill] sm:$0xff] %v6327_v50 }
 0x166   :  { %v1467_v55 = vpop.f32.mrf.mxu1  ;;  %2755 = vmatprep.subr.bf16.mxu1 %v6301_v2  ;;  %v6337_v5 = vcombine.high %v1848_v28, %v1852_v45 }
 0x167   :  { %v6321_v63 = vadd.f32 %v1518_v3, %v1466_v10  ;;  %v1468_v32 = vadd.f32 %v1467_v55, %v6306_v21  ;;  %v1522_v18 = vpop.f32.mrf.mxu0  ;;  %v6334_v10 = vcombine.high %v1847_v29, %v1851_v39 }
 0x168   :  { %v1469_v15 = vpop.f32.mrf.mxu1  ;;  %2715 = vmatpush2.bf16.msra.mxu0 %v6309_v14  ;;  %8268 = vst [vmem:[#allocation110_spill] sm:$0xff] %v6337_v5  ;;  %v6343_v14 = vcombine.low %v1847_v29, %v1851_v39  ;;  %v1831_v39 = vld [vmem:[#allocation7 + $0x290] sm:$0xff] }
 0x169   :  { %v6329_v7 = vadd.f32 %v1520_v11, %v1468_v32  ;;  %v1470_v2 = vadd.f32 %v1469_v15, %v6293_v47  ;;  %2756 = vmatpush2.bf16.msra.mxu1 %v6314_v38  ;;  %v1524_v3 = vpop.f32.mrf.mxu0  ;;  %2716 = vmatprep.subr.bf16.mxu0 %v6316_v0  ;;  %8267 = vst [vmem:[#allocation109_spill] sm:$0xff] %v6334_v10  ;;  %v1840_v11 = vld [vmem:[#allocation7 + $0x2d8] sm:$0xff]  ;;  %v1835_v29 = vld [vmem:[#allocation7 + $0x2b0] sm:$0xff] }
 0x16a   :  { %v1471_v55 = vpop.f32.mrf.mxu1  ;;  %2757 = vmatprep.subr.bf16.mxu1 %v6319_v40  ;;  %v1844_v15 = vld [vmem:[#allocation7 + $0x2f8] sm:$0xff]  ;;  %8270 = vst [vmem:[#allocation112_spill] sm:$0xff] %v6343_v14  ;;  %v6345_v0 = vcombine.low %v1848_v28, %v1852_v45 }
 0x16b   :  { %v6339_v17 = vadd.f32 %v1522_v18, %v1470_v2  ;;  %v1472_v1 = vadd.f32 %v1471_v55, %v6306_v21  ;;  %v1528_v32 = vpop.f32.mrf.mxu0  ;;  %v6351_v2 = vcombine.high %v1839_v54, %v1843_v16  ;;  %v1832_v28 = vld [vmem:[#allocation7 + $0x298] sm:$0xff] }
 0x16c   :  { %2717 = vmatpush2.bf16.msra.mxu0 %v6325_v36  ;;  %8271 = vst [vmem:[#allocation113_spill] sm:$0xff] %v6345_v0  ;;  %v1475_v38 = vpop.f32.mrf.mxu1  ;;  %v1836_v36 = vld [vmem:[#allocation7 + $0x2b8] sm:$0xff] }
 0x16d   :  { %8269 = vst [vmem:[#allocation111_spill] sm:$0xff] %v6339_v17  ;;  %v6347_v49 = vadd.f32 %v1524_v3, %v1472_v1  ;;  %2758 = vmatpush2.bf16.msra.mxu1 %v6327_v50  ;;  %2718 = vmatprep.subr.bf16.mxu0 %v6334_v10  ;;  %8273 = vst [vmem:[#allocation115_spill] sm:$0xff] %v6351_v2  ;;  %v1476_v18 = vadd.f32 %v1475_v38, %v6293_v47  ;;  %v1530_v55 = vpop.f32.mrf.mxu0 }
 0x16e   :  { %2759 = vmatprep.subr.bf16.mxu1 %v6337_v5  ;;  %v6355_v17 = vcombine.high %v1840_v11, %v1844_v15  ;;  %v1477_v45 = vpop.f32.mrf.mxu1  ;;  %v6361_v10 = vcombine.low %v1839_v54, %v1843_v16  ;;  %v6363_v38 = vcombine.low %v1840_v11, %v1844_v15  ;;  %v6367_v5 = vcombine.high %v1831_v39, %v1835_v29  ;;  %v1827_v54 = vld [vmem:[#allocation7 + $0x270] sm:$0xff]  ;;  %v1824_v15 = vld [vmem:[#allocation7 + $0x258] sm:$0xff] }
 0x16f   :  { %8272 = vst [vmem:[#allocation114_spill] sm:$0xff] %v6347_v49  ;;  %v1478_v3 = vadd.f32 %v1477_v45, %v6306_v21  ;;  %v6358_v1 = vadd.f32 %v1528_v32, %v1476_v18  ;;  %v1532_v49 = vpop.f32.mrf.mxu0  ;;  %v6373_v32 = vcombine.high %v1832_v28, %v1836_v36  ;;  %v1823_v18 = vld [vmem:[#allocation7 + $0x250] sm:$0xff]  ;;  %v1828_v45 = vld [vmem:[#allocation7 + $0x278] sm:$0xff] }
 0x170   :  { %8274 = vst [vmem:[#allocation116_spill] sm:$0xff] %v6355_v17  ;;  %2719 = vmatpush2.bf16.msra.mxu0 %v6343_v14  ;;  %8276 = vst [vmem:[#allocation118_spill] sm:$0xff] %v6361_v10  ;;  %v1479_v50 = vpop.f32.mrf.mxu1 }
 0x171   :  { %8275 = vst [vmem:[#allocation117_spill] sm:$0xff] %v6358_v1  ;;  %8277 = vst [vmem:[#allocation119_spill] sm:$0xff] %v6363_v38  ;;  %2760 = vmatpush2.bf16.msra.mxu1 %v6345_v0  ;;  %2720 = vmatprep.subr.bf16.mxu0 %v6351_v2  ;;  %v1480_v40 = vadd.f32 %v1479_v50, %v6293_v47  ;;  %v6370_v4 = vadd.f32 %v1530_v55, %v1478_v3  ;;  %v1534_v11 = vpop.f32.mrf.mxu0 }
 0x172   :  { %8278 = vst [vmem:[#allocation120_spill] sm:$0xff] %v6367_v5  ;;  %2761 = vmatprep.subr.bf16.mxu1 %v6355_v17  ;;  %8280 = vst [vmem:[#allocation122_spill] sm:$0xff] %v6373_v32  ;;  %v1481_v16 = vpop.f32.mrf.mxu1  ;;  %v6379_v2 = vcombine.low %v1831_v39, %v1835_v29  ;;  %v6383_v47 = vcombine.low %v1832_v28, %v1836_v36  ;;  %v6385_v50 = vcombine.high %v1823_v18, %v1827_v54 }
 0x173   :  { %8279 = vst [vmem:[#allocation121_spill] sm:$0xff] %v6370_v4  ;;  %v1482_v1 = vadd.f32 %v1481_v16, %v6306_v21  ;;  %v6376_v14 = vadd.f32 %v1532_v49, %v1480_v40  ;;  %v6390_v3 = vcombine.high %v1824_v15, %v1828_v45  ;;  %v1815_v49 = vld [vmem:[#allocation7 + $0x210] sm:$0xff]  ;;  %v1816_v21 = vld [vmem:[#allocation7 + $0x218] sm:$0xff]  ;;  %v6393_v39 = vcombine.low %v1823_v18, %v1827_v54 }
 0x174   :  { %2721 = vmatpush2.bf16.msra.mxu0 %v6361_v10  ;;  %8282 = vst [vmem:[#allocation124_spill] sm:$0xff] %v6379_v2  ;;  %8283 = vst [vmem:[#allocation125_spill] sm:$0xff] %v6383_v47  ;;  %v1819_v40 = vld [vmem:[#allocation7 + $0x230] sm:$0xff]  ;;  %v1820_v16 = vld [vmem:[#allocation7 + $0x238] sm:$0xff]  ;;  %v6397_v36 = vcombine.low %v1824_v15, %v1828_v45 }
 0x175   :  { %8281 = vst [vmem:[#allocation123_spill] sm:$0xff] %v6376_v14  ;;  %2762 = vmatpush2.bf16.msra.mxu1 %v6363_v38  ;;  %2722 = vmatprep.subr.bf16.mxu0 %v6367_v5  ;;  %8284 = vst [vmem:[#allocation126_spill] sm:$0xff] %v6385_v50  ;;  %v6387_v55 = vadd.f32 %v1534_v11, %v1482_v1  ;;  %v6399_v29 = vcombine.high %v1815_v49, %v1819_v40  ;;  %v6417_v54 = vld [vmem:[#allocation10 + $0x2e4] ss:$16 sps:$4 sm:$0xff]   ;;  %v6419_v11 = vld [vmem:[#allocation10 + $0x2e0] ss:$16 sps:$4 sm:$0xff]  }
 0x176   :  { %2763 = vmatprep.subr.bf16.mxu1 %v6373_v32  ;;  %8286 = vst [vmem:[#allocation128_spill] sm:$0xff] %v6390_v3  ;;  %8287 = vst [vmem:[#allocation129_spill] sm:$0xff] %v6393_v39  ;;  %v6402_v28 = vcombine.high %v1816_v21, %v1820_v16  ;;  %v6405_v1 = vcombine.low %v1815_v49, %v1819_v40  ;;  %v6409_v18 = vcombine.low %v1816_v21, %v1820_v16  ;;  %v6423_v15 = vld [vmem:[#allocation10 + $0x2c4] ss:$16 sps:$4 sm:$0xff]   ;;  %v6425_v45 = vld [vmem:[#allocation10 + $0x2c0] ss:$16 sps:$4 sm:$0xff]  }
 0x177   :  { %8285 = vst [vmem:[#allocation127_spill] sm:$0xff] %v6387_v55  ;;  %8288 = vst [vmem:[#allocation130_spill] sm:$0xff] %v6397_v36  ;;  %v6429_v49 = vld [vmem:[#allocation10 + $0x2a4] ss:$16 sps:$4 sm:$0xff]   ;;  %v6431_v40 = vld [vmem:[#allocation10 + $0x2a0] ss:$16 sps:$4 sm:$0xff]  }
 0x178   :  { %2723 = vmatpush2.bf16.msra.mxu0 %v6379_v2  ;;  %8289 = vst [vmem:[#allocation131_spill] sm:$0xff] %v6399_v29  ;;  %8290 = vst [vmem:[#allocation132_spill] sm:$0xff] %v6402_v28  ;;  %v6435_v16 = vld [vmem:[#allocation10 + $0x284] ss:$16 sps:$4 sm:$0xff]   ;;  %v6437_v55 = vld [vmem:[#allocation10 + $0x280] ss:$16 sps:$4 sm:$0xff]  }
 0x179   :  { %2764 = vmatpush2.bf16.msra.mxu1 %v6383_v47  ;;  %2724 = vmatprep.subr.bf16.mxu0 %v6385_v50  ;;  %8291 = vst [vmem:[#allocation133_spill] sm:$0xff] %v6405_v1  ;;  %8292 = vst [vmem:[#allocation134_spill] sm:$0xff] %v6409_v18  ;;  %v6441_v4 = vld [vmem:[#allocation10 + $0x264] ss:$16 sps:$4 sm:$0xff]   ;;  %v6452_v10 = vld [vmem:[#allocation10 + $0x240] ss:$16 sps:$4 sm:$0xff]  }
 0x17a   :  { %2765 = vmatprep.subr.bf16.mxu1 %v6390_v3  ;;  %8293 = vst [vmem:[#allocation135_spill] sm:$0xff] %v6417_v54  ;;  %8294 = vst [vmem:[#allocation136_spill] sm:$0xff] %v6419_v11  ;;  %v6449_v2 = vld [vmem:[#allocation10 + $0x244] ss:$16 sps:$4 sm:$0xff]   ;;  %v6486_v3 = vld [vmem:[#allocation10 + $0xc0] ss:$16 sps:$4 sm:$0xff]  }
 0x17b   :  { %8295 = vst [vmem:[#allocation137_spill] sm:$0xff] %v6423_v15  ;;  %8296 = vst [vmem:[#allocation138_spill] sm:$0xff] %v6425_v45  ;;  %v8003_v32 = vmov 0.0|0.0  }
 0x17c   :  { %2725 = vmatpush2.bf16.msra.mxu0 %v6393_v39  ;;  %8297 = vst [vmem:[#allocation139_spill] sm:$0xff] %v6429_v49  ;;  %8298 = vst [vmem:[#allocation140_spill] sm:$0xff] %v6431_v40  ;;  %v315_v39 = vsub.s32 5, %v6122_v57 }
 0x17d   :  { %2766 = vmatpush2.bf16.msra.mxu1 %v6397_v36  ;;  %2726 = vmatprep.subr.bf16.mxu0 %v6399_v29  ;;  %8299 = vst [vmem:[#allocation141_spill] sm:$0xff] %v6435_v16  ;;  %8300 = vst [vmem:[#allocation142_spill] sm:$0xff] %v6437_v55  ;;  %v6444_v29 = vld [vmem:[#allocation10 + $0x260] ss:$16 sps:$4 sm:$0xff]   ;;  %v6472_v36 = vld [vmem:[#allocation10 + $0xe4] ss:$16 sps:$4 sm:$0xff]  }
 0x17e   :  { %2767 = vmatprep.subr.bf16.mxu1 %v6402_v28  ;;  %8301 = vst [vmem:[#allocation143_spill] sm:$0xff] %v6441_v4  ;;  %8302 = vst [vmem:[#allocation144_spill] sm:$0xff] %v6444_v29 }
 0x17f   :  { %8303 = vst [vmem:[#allocation145_spill] sm:$0xff] %v6449_v2  ;;  %8304 = vst [vmem:[#allocation146_spill] sm:$0xff] %v6452_v10 }
 0x180   :  { %2727 = vmatpush2.bf16.msra.mxu0 %v6405_v1  ;;  %v311_v1 = vsub.s32 4, %v6122_v57  ;;  %8309 = vst [vmem:[#allocation151_spill] sm:$0xff] %v6472_v36 }
 0x181   :  { %2768 = vmatpush2.bf16.msra.mxu1 %v6409_v18  ;;  %3338 = vmatprep.subr.bf16.mxu0 %v6472_v36 }
 0x182   :  { %3379 = vmatprep.subr.bf16.mxu1 %v6417_v54  ;;  %v312_v5 = vrot.slane %v6141_v26, %v311_v1  ;;  %v6467_v54 = vld [vmem:[#allocation10 + $0x200] ss:$16 sps:$4 sm:$0xff]  }
 0x183   :  { %2729 = vmatmul.mubr.bf16.vlgmr.msra.gmra.mxu0 %v8221_v19  ;;  %8308 = vst [vmem:[#allocation150_spill] sm:$0xff] %v6467_v54 }
 0x184   :  { %2770 = vmatmul.mubr.bf16.vlgmr.msra.gmra.mxu1 %v8221_v19  ;;  %v1624_v21 = vpop.f32.mrf.mxu1 }
 0x185   :  { %3411 = vmatprep.mubr.bf16.mxu1 %v8221_v19  ;;  %3380 = vmatpush1.bf16.msra.mxu1 %v6419_v11 }
 0x186   :  { %3381 = vmatprep.subr.bf16.mxu1 %v6423_v15  ;;  %v1626_v14 = vpop.f32.mrf.mxu1 }
 0x188   :  { %v1628_v50 = vpop.f32.mrf.mxu1 }
 0x189   :  { %3382 = vmatpush1.bf16.msra.mxu1 %v6425_v45  ;;  %v6459_v45 = vld [vmem:[#allocation10 + $0x220] ss:$16 sps:$4 sm:$0xff]  }
 0x18a   :  { %3383 = vmatprep.subr.bf16.mxu1 %v6429_v49  ;;  %8306 = vst [vmem:[#allocation148_spill] sm:$0xff] %v6459_v45 }
 0x18d   :  { %3384 = vmatpush1.bf16.msra.mxu1 %v6431_v40 }
 0x18e   :  { %3385 = vmatprep.subr.bf16.mxu1 %v6435_v16  ;;  %v1630_v16 = vpop.f32.mrf.mxu1 }
 0x190   :  { %v1634_v15 = vpop.f32.mrf.mxu1 }
 0x191   :  { %3386 = vmatpush1.bf16.msra.mxu1 %v6437_v55  ;;  %v316_v55 = vrot.slane %v6141_v26, %v315_v39  ;;  %v6465_v39 = vld [vmem:[#allocation10 + $0x204] ss:$16 sps:$4 sm:$0xff]  }
 0x192   :  { %3387 = vmatprep.subr.bf16.mxu1 %v6441_v4  ;;  %v6457_v4 = vld [vmem:[#allocation10 + $0x224] ss:$16 sps:$4 sm:$0xff]   ;;  %8307 = vst [vmem:[#allocation149_spill] sm:$0xff] %v6465_v39  ;;  %v1636_v28 = vpop.f32.mrf.mxu1 }
 0x193   :  { %8305 = vst [vmem:[#allocation147_spill] sm:$0xff] %v6457_v4 }
 0x195   :  { %3388 = vmatpush1.bf16.msra.mxu1 %v6444_v29 }
 0x196   :  { %3389 = vmatprep.subr.bf16.mxu1 %v6449_v2 }
 0x199   :  { %3390 = vmatpush1.bf16.msra.mxu1 %v6452_v10 }
 0x19a   :  { %3391 = vmatprep.subr.bf16.mxu1 %v6457_v4  ;;  %v6474_v4 = vld [vmem:[#allocation10 + $0xec] ss:$16 sps:$4 sm:$0xff]  }
 0x19b   :  { %8310 = vst [vmem:[#allocation152_spill] sm:$0xff] %v6474_v4 }
 0x19d   :  { %3392 = vmatpush1.bf16.msra.mxu1 %v6459_v45  ;;  %v6479_v45 = vld [vmem:[#allocation10 + $0xc4] ss:$16 sps:$4 sm:$0xff]  }
 0x19e   :  { %3393 = vmatprep.subr.bf16.mxu1 %v6465_v39  ;;  %8312 = vst [vmem:[#allocation154_spill] sm:$0xff] %v6479_v45 }
 0x1a1   :  { %3394 = vmatpush1.bf16.msra.mxu1 %v6467_v54  ;;  %v1638_v54 = vpop.f32.mrf.mxu1 }
 0x1a2   :  { %3420 = vmatprep.subr.bf16.mxu1 %v6474_v4 }
 0x1a3   :  { %v1571_v40 = vpop.f32.mrf.mxu0 }
 0x1a4   :  { %v1572_v49 = vadd.f32 %v1571_v40, %v312_v5  ;;  %3412 = vmatmul.mubr.bf16.vlgmr.msra.gmra.mxu1 %v8003_v32 }
 0x1a5   :  { %v1573_v29 = vpop.f32.mrf.mxu0 }
 0x1a6   :  { %v1574_v1 = vadd.f32 %v1573_v29, %v316_v55  ;;  %v6463_v11 = vadd.f32 %v1624_v21, %v1572_v49  ;;  %v6476_v29 = vld [vmem:[#allocation10 + $0xe0] ss:$16 sps:$4 sm:$0xff]   ;;  %v5292_v21 = vld [vmem:[#allocation10 + $0xe8] ss:$16 sps:$4 sm:$0xff]  }
 0x1a7   :  { %v1575_v2 = vpop.f32.mrf.mxu0  ;;  %8311 = vst [vmem:[#allocation153_spill] sm:$0xff] %v6476_v29  ;;  %3339 = vmatpush1.bf16.msra.mxu0 %v6476_v29  ;;  %3421 = vmatpush1.bf16.msra.mxu1 %v5292_v21  ;;  %v5301_v29 = vld [vmem:[#allocation10 + $0xac] ss:$16 sps:$4 sm:$0xff]   ;;  %v5304_v21 = vld [vmem:[#allocation10 + $0xa8] ss:$16 sps:$4 sm:$0xff]  }
 0x1a8   :  { %v1576_v10 = vadd.f32 %v1575_v2, %v312_v5  ;;  %v6469_v18 = vadd.f32 %v1626_v14, %v1574_v1  ;;  %v5295_v1 = vld [vmem:[#allocation10 + $0xcc] ss:$16 sps:$4 sm:$0xff]   ;;  %3340 = vmatprep.subr.bf16.mxu0 %v6479_v45  ;;  %v6502_v45 = vld [vmem:[#allocation10 + $0x84] ss:$16 sps:$4 sm:$0xff]  }
 0x1a9   :  { %v1577_v40 = vpop.f32.mrf.mxu0  ;;  %3422 = vmatprep.subr.bf16.mxu1 %v5295_v1  ;;  %8317 = vst [vmem:[#allocation159_spill] sm:$0xff] %v6502_v45  ;;  %v5307_v1 = vld [vmem:[#allocation10 + $0x8c] ss:$16 sps:$4 sm:$0xff]  }
 0x1aa   :  { %v1578_v49 = vadd.f32 %v1577_v40, %v316_v55  ;;  %v6481_v2 = vadd.f32 %v1628_v50, %v1576_v10  ;;  %v6492_v10 = vld [vmem:[#allocation10 + $0xa4] ss:$16 sps:$4 sm:$0xff]  }
 0x1ab   :  { %v1581_v14 = vpop.f32.mrf.mxu0  ;;  %3341 = vmatpush1.bf16.msra.mxu0 %v6486_v3 }
 0x1ac   :  { %8313 = vst [vmem:[#allocation155_spill] sm:$0xff] %v6481_v2  ;;  %v1582_v39 = vadd.f32 %v1581_v14, %v312_v5  ;;  %v6488_v47 = vadd.f32 %v1630_v16, %v1578_v49  ;;  %v5298_v14 = vld [vmem:[#allocation10 + $0xc8] ss:$16 sps:$4 sm:$0xff]   ;;  %v6499_v49 = vld [vmem:[#allocation10 + $0xa0] ss:$16 sps:$4 sm:$0xff]   ;;  %3342 = vmatprep.subr.bf16.mxu0 %v6492_v10 }
 0x1ad   :  { %v1583_v40 = vpop.f32.mrf.mxu0  ;;  %3423 = vmatpush1.bf16.msra.mxu1 %v5298_v14  ;;  %v6536_v14 = vld [vmem:[#allocation10 + $0x48] ss:$16 sps:$4 sm:$0xff]  }
 0x1ae   :  { %8314 = vst [vmem:[#allocation156_spill] sm:$0xff] %v6488_v47  ;;  %v1584_v50 = vadd.f32 %v1583_v40, %v316_v55  ;;  %v6494_v2 = vadd.f32 %v1634_v15, %v1582_v39  ;;  %v1640_v47 = vpop.f32.mrf.mxu1  ;;  %3424 = vmatprep.subr.bf16.mxu1 %v5301_v29  ;;  %v6514_v40 = vld [vmem:[#allocation10 + $0x88] ss:$16 sps:$4 sm:$0xff]   ;;  %v6531_v29 = vld [vmem:[#allocation10 + $0x40] ss:$16 sps:$4 sm:$0xff]   ;;  %8329 = vst [vmem:[#allocation171_spill] sm:$0xff] %v6536_v14 }
 0x1af   :  { %v1585_v4 = vpop.f32.mrf.mxu0  ;;  %3343 = vmatpush1.bf16.msra.mxu0 %v6499_v49  ;;  %8322 = vst [vmem:[#allocation164_spill] sm:$0xff] %v6514_v40  ;;  %8328 = vst [vmem:[#allocation170_spill] sm:$0xff] %v6531_v29 }
 0x1b0   :  { %8315 = vst [vmem:[#allocation157_spill] sm:$0xff] %v6494_v2  ;;  %v1586_v36 = vadd.f32 %v1585_v4, %v312_v5  ;;  %v6496_v16 = vadd.f32 %v1636_v28, %v1584_v50  ;;  %v6509_v5 = vld [vmem:[#allocation10 + $0x80] ss:$16 sps:$4 sm:$0xff]   ;;  %3344 = vmatprep.subr.bf16.mxu0 %v6502_v45  ;;  %v6512_v28 = vld [vmem:[#allocation10 + $0x64] ss:$16 sps:$4 sm:$0xff]   ;;  %v319_v50 = vsub.s32 6, %v6122_v57 }
 0x1b1   :  { %v1587_v32 = vpop.f32.mrf.mxu0  ;;  %8320 = vst [vmem:[#allocation162_spill] sm:$0xff] %v6509_v5  ;;  %8321 = vst [vmem:[#allocation163_spill] sm:$0xff] %v6512_v28  ;;  %3425 = vmatpush1.bf16.msra.mxu1 %v5304_v21 }
 0x1b2   :  { %8316 = vst [vmem:[#allocation158_spill] sm:$0xff] %v6496_v16  ;;  %v1588_v15 = vadd.f32 %v1587_v32, %v316_v55  ;;  %v6504_v39 = vadd.f32 %v1638_v54, %v1586_v36  ;;  %3426 = vmatprep.subr.bf16.mxu1 %v5307_v1  ;;  %v6516_v32 = vld [vmem:[#allocation10 + $0x6c] ss:$16 sps:$4 sm:$0xff]   ;;  %v6519_v55 = vld [vmem:[#allocation10 + $0x60] ss:$16 sps:$4 sm:$0xff]   ;;  %v320_v21 = vrot.slane %v6141_v26, %v319_v50 }
 0x1b3   :  { %8323 = vst [vmem:[#allocation165_spill] sm:$0xff] %v6516_v32  ;;  %3345 = vmatpush1.bf16.msra.mxu0 %v6509_v5  ;;  %8324 = vst [vmem:[#allocation166_spill] sm:$0xff] %v6519_v55  ;;  %v6525_v36 = vld [vmem:[#allocation10 + $0x68] ss:$16 sps:$4 sm:$0xff]   ;;  %v6528_v54 = vld [vmem:[#allocation10 + $0x4c] ss:$16 sps:$4 sm:$0xff]  }
 0x1b4   :  { %8318 = vst [vmem:[#allocation160_spill] sm:$0xff] %v6504_v39  ;;  %v6506_v4 = vadd.f32 %v1640_v47, %v1588_v15  ;;  %3346 = vmatprep.subr.bf16.mxu0 %v6512_v28  ;;  %v6522_v47 = vld [vmem:[#allocation10 + $0x44] ss:$16 sps:$4 sm:$0xff]   ;;  %8326 = vst [vmem:[#allocation168_spill] sm:$0xff] %v6525_v36  ;;  %v323_v15 = vsub.s32 7, %v6122_v57 }
 0x1b5   :  { %8325 = vst [vmem:[#allocation167_spill] sm:$0xff] %v6522_v47  ;;  %3427 = vmatpush1.bf16.msra.mxu1 %v6514_v40  ;;  %8327 = vst [vmem:[#allocation169_spill] sm:$0xff] %v6528_v54  ;;  %v6544_v39 = vld [vmem:[#allocation10 + $0x24] ss:$16 sps:$4 sm:$0xff]   ;;  %v6546_v16 = vld [vmem:[#allocation10 + $0x2c] ss:$16 sps:$4 sm:$0xff]  }
 0x1b6   :  { %8319 = vst [vmem:[#allocation161_spill] sm:$0xff] %v6506_v4  ;;  %3428 = vmatprep.subr.bf16.mxu1 %v6516_v32  ;;  %v324_v4 = vrot.slane %v6141_v26, %v323_v15  ;;  %8330 = vst [vmem:[#allocation172_spill] sm:$0xff] %v6544_v39  ;;  %v6550_v32 = vld [vmem:[#allocation10 + $0x28] ss:$16 sps:$4 sm:$0xff]   ;;  %v6558_v57 = vld [vmem:[#allocation10 + $0x4] ss:$16 sps:$4 sm:$0xff]  }
 0x1b7   :  { %3347 = vmatpush1.bf16.msra.mxu0 %v6519_v55  ;;  %8331 = vst [vmem:[#allocation173_spill] sm:$0xff] %v6546_v16  ;;  %8333 = vst [vmem:[#allocation175_spill] sm:$0xff] %v6550_v32  ;;  %v6564_v55 = vld [vmem:[#allocation10 + $0x8] ss:$16 sps:$4 sm:$0xff]   ;;  %v6576_v5 = vld [vmem:[#allocation10 + $0x1ec] ss:$16 sps:$4 sm:$0xff]  }
 0x1b8   :  { %3348 = vmatprep.subr.bf16.mxu0 %v6522_v47  ;;  %8334 = vst [vmem:[#allocation176_spill] sm:$0xff] %v6558_v57  ;;  %8337 = vst [vmem:[#allocation179_spill] sm:$0xff] %v6564_v55 }
 0x1b9   :  { %3429 = vmatpush1.bf16.msra.mxu1 %v6525_v36  ;;  %v6548_v36 = vld [vmem:[#allocation10 + $0x20] ss:$16 sps:$4 sm:$0xff]   ;;  %8339 = vst [vmem:[#allocation181_spill] sm:$0xff] %v6576_v5 }
 0x1ba   :  { %3430 = vmatprep.subr.bf16.mxu1 %v6528_v54  ;;  %8332 = vst [vmem:[#allocation174_spill] sm:$0xff] %v6548_v36 }
 0x1bb   :  { %3349 = vmatpush1.bf16.msra.mxu0 %v6531_v29  ;;  %v6560_v29 = vld [vmem:[#allocation10 + $0xc] ss:$16 sps:$4 sm:$0xff]  }
 0x1bc   :  { %3350 = vmatprep.subr.bf16.mxu0 %v6544_v39  ;;  %8335 = vst [vmem:[#allocation177_spill] sm:$0xff] %v6560_v29 }
 0x1bd   :  { %3431 = vmatpush1.bf16.msra.mxu1 %v6536_v14 }
 0x1be   :  { %3432 = vmatprep.subr.bf16.mxu1 %v6546_v16 }
 0x1bf   :  { %3351 = vmatpush1.bf16.msra.mxu0 %v6548_v36  ;;  %v6574_v36 = vld [vmem:[#allocation10 + $0x1e4] ss:$16 sps:$4 sm:$0xff]  }
 0x1c0   :  { %3352 = vmatprep.subr.bf16.mxu0 %v6558_v57 }
 0x1c1   :  { %3433 = vmatpush1.bf16.msra.mxu1 %v6550_v32 }
 0x1c2   :  { %3434 = vmatprep.subr.bf16.mxu1 %v6560_v29 }
 0x1c3   :  { %v1730_v1 = vpop.f32.mrf.mxu0 }
 0x1c4   :  { %v1677_v2 = vpop.f32.mrf.mxu1 }
 0x1c5   :  { %v1678_v40 = vadd.f32 %v1677_v2, %v320_v21  ;;  %v1732_v54 = vpop.f32.mrf.mxu0  ;;  %v6562_v2 = vld [vmem:[#allocation10] ss:$16 sps:$4 sm:$0xff]   ;;  %3435 = vmatpush1.bf16.msra.mxu1 %v6564_v55  ;;  %v6590_v55 = vld [vmem:[#allocation10 + $0x1c4] ss:$16 sps:$4 sm:$0xff]  }
 0x1c6   :  { %v1679_v50 = vpop.f32.mrf.mxu1  ;;  %8336 = vst [vmem:[#allocation178_spill] sm:$0xff] %v6562_v2  ;;  %3353 = vmatpush1.bf16.msra.mxu0 %v6562_v2  ;;  %3436 = vmatprep.subr.bf16.mxu1 %v6576_v5  ;;  %v6592_v2 = vld [vmem:[#allocation10 + $0x1cc] ss:$16 sps:$4 sm:$0xff]  }
 0x1c7   :  { %v6556_v26 = vadd.f32 %v1730_v1, %v1678_v40  ;;  %v1680_v15 = vadd.f32 %v1679_v50, %v324_v4  ;;  %v1734_v14 = vpop.f32.mrf.mxu0  ;;  %3354 = vmatprep.subr.bf16.mxu0 %v6574_v36  ;;  %8344 = vst [vmem:[#allocation186_spill] sm:$0xff] %v6592_v2 }
 0x1c8   :  { %v1681_v47 = vpop.f32.mrf.mxu1 }
 0x1c9   :  { %v6566_v39 = vadd.f32 %v1732_v54, %v1680_v15  ;;  %v1682_v16 = vadd.f32 %v1681_v47, %v320_v21  ;;  %v1736_v28 = vpop.f32.mrf.mxu0  ;;  %v6578_v47 = vld [vmem:[#allocation10 + $0x1e0] ss:$16 sps:$4 sm:$0xff]   ;;  %v6580_v15 = vld [vmem:[#allocation10 + $0x1e8] ss:$16 sps:$4 sm:$0xff]  }
 0x1ca   :  { %v1683_v40 = vpop.f32.mrf.mxu1  ;;  %8340 = vst [vmem:[#allocation182_spill] sm:$0xff] %v6578_v47  ;;  %8341 = vst [vmem:[#allocation183_spill] sm:$0xff] %v6580_v15  ;;  %3355 = vmatpush2.bf16.msra.mxu0 %v6578_v47  ;;  %3437 = vmatpush2.bf16.msra.mxu1 %v6580_v15  ;;  %v6606_v15 = vld [vmem:[#allocation10 + $0x1a4] ss:$16 sps:$4 sm:$0xff]   ;;  %v6608_v47 = vld [vmem:[#allocation10 + $0x1ac] ss:$16 sps:$4 sm:$0xff]  }
 0x1cb   :  { %v6572_v1 = vadd.f32 %v1734_v14, %v1682_v16  ;;  %v1684_v50 = vadd.f32 %v1683_v40, %v324_v4  ;;  %v1740_v32 = vpop.f32.mrf.mxu0  ;;  %3356 = vmatprep.subr.bf16.mxu0 %v6590_v55  ;;  %3438 = vmatprep.subr.bf16.mxu1 %v6592_v2  ;;  %8348 = vst [vmem:[#allocation190_spill] sm:$0xff] %v6606_v15  ;;  %8349 = vst [vmem:[#allocation191_spill] sm:$0xff] %v6608_v47  ;;  %v6668_v2 = vld [vmem:[#allocation10 + $0x10c] ss:$16 sps:$4 sm:$0xff]  }
 0x1cc   :  { %v1687_v54 = vpop.f32.mrf.mxu1  ;;  %8370 = vst [vmem:[#allocation212_spill] sm:$0xff] %v6668_v2 }
 0x1cd   :  { %8338 = vst [vmem:[#allocation180_spill] sm:$0xff] %v6572_v1  ;;  %v6582_v57 = vadd.f32 %v1736_v28, %v1684_v50  ;;  %v1688_v29 = vadd.f32 %v1687_v54, %v320_v21  ;;  %v1742_v45 = vpop.f32.mrf.mxu0  ;;  %v6594_v50 = vld [vmem:[#allocation10 + $0x1c0] ss:$16 sps:$4 sm:$0xff]   ;;  %v6596_v54 = vld [vmem:[#allocation10 + $0x1c8] ss:$16 sps:$4 sm:$0xff]  }
 0x1ce   :  { %v1689_v16 = vpop.f32.mrf.mxu1  ;;  %8345 = vst [vmem:[#allocation187_spill] sm:$0xff] %v6596_v54  ;;  %3357 = vmatpush2.bf16.msra.mxu0 %v6594_v50  ;;  %3439 = vmatpush2.bf16.msra.mxu1 %v6596_v54  ;;  %v6662_v54 = vld [vmem:[#allocation10 + $0x128] ss:$16 sps:$4 sm:$0xff]  }
 0x1cf   :  { %8342 = vst [vmem:[#allocation184_spill] sm:$0xff] %v6582_v57  ;;  %v1690_v14 = vadd.f32 %v1689_v16, %v324_v4  ;;  %v6588_v40 = vadd.f32 %v1740_v32, %v1688_v29  ;;  %v1744_v1 = vpop.f32.mrf.mxu0  ;;  %3358 = vmatprep.subr.bf16.mxu0 %v6606_v15  ;;  %3440 = vmatprep.subr.bf16.mxu1 %v6608_v47  ;;  %v6656_v47 = vld [vmem:[#allocation10 + $0x12c] ss:$16 sps:$4 sm:$0xff]   ;;  %8368 = vst [vmem:[#allocation210_spill] sm:$0xff] %v6662_v54 }
 0x1d0   :  { %v1691_v28 = vpop.f32.mrf.mxu1  ;;  %8366 = vst [vmem:[#allocation208_spill] sm:$0xff] %v6656_v47 }
 0x1d1   :  { %8343 = vst [vmem:[#allocation185_spill] sm:$0xff] %v6588_v40  ;;  %v1692_v57 = vadd.f32 %v1691_v28, %v320_v21  ;;  %v6598_v5 = vadd.f32 %v1742_v45, %v1690_v14  ;;  %v1746_v32 = vpop.f32.mrf.mxu0  ;;  %v6610_v21 = vld [vmem:[#allocation10 + $0x1a0] ss:$16 sps:$4 sm:$0xff]   ;;  %v6612_v45 = vld [vmem:[#allocation10 + $0x1a8] ss:$16 sps:$4 sm:$0xff]  }
 0x1d2   :  { %v1693_v16 = vpop.f32.mrf.mxu1  ;;  %8350 = vst [vmem:[#allocation192_spill] sm:$0xff] %v6610_v21  ;;  %8351 = vst [vmem:[#allocation193_spill] sm:$0xff] %v6612_v45  ;;  %3359 = vmatpush2.bf16.msra.mxu0 %v6610_v21  ;;  %3441 = vmatpush2.bf16.msra.mxu1 %v6612_v45  ;;  %v6626_v28 = vld [vmem:[#allocation10 + $0x188] ss:$16 sps:$4 sm:$0xff]   ;;  %v6654_v45 = vld [vmem:[#allocation10 + $0x124] ss:$16 sps:$4 sm:$0xff]  }
 0x1d3   :  { %8346 = vst [vmem:[#allocation188_spill] sm:$0xff] %v6598_v5  ;;  %v1694_v29 = vadd.f32 %v1693_v16, %v324_v4  ;;  %v6604_v40 = vadd.f32 %v1744_v1, %v1692_v57  ;;  %v6620_v57 = vld [vmem:[#allocation10 + $0x184] ss:$16 sps:$4 sm:$0xff]   ;;  %v6622_v4 = vld [vmem:[#allocation10 + $0x18c] ss:$16 sps:$4 sm:$0xff]   ;;  %8356 = vst [vmem:[#allocation198_spill] sm:$0xff] %v6626_v28 }
 0x1d4   :  { %8353 = vst [vmem:[#allocation195_spill] sm:$0xff] %v6620_v57  ;;  %8354 = vst [vmem:[#allocation196_spill] sm:$0xff] %v6622_v4  ;;  %v6624_v1 = vld [vmem:[#allocation10 + $0x180] ss:$16 sps:$4 sm:$0xff]   ;;  %3360 = vmatprep.subr.bf16.mxu0 %v6620_v57  ;;  %3442 = vmatprep.subr.bf16.mxu1 %v6622_v4  ;;  %v6632_v16 = vld [vmem:[#allocation10 + $0x164] ss:$16 sps:$4 sm:$0xff]  }
 0x1d5   :  { %8347 = vst [vmem:[#allocation189_spill] sm:$0xff] %v6604_v40  ;;  %v6614_v14 = vadd.f32 %v1746_v32, %v1694_v29  ;;  %8355 = vst [vmem:[#allocation197_spill] sm:$0xff] %v6624_v1  ;;  %v6634_v32 = vld [vmem:[#allocation10 + $0x16c] ss:$16 sps:$4 sm:$0xff]   ;;  %v6636_v29 = vld [vmem:[#allocation10 + $0x160] ss:$16 sps:$4 sm:$0xff]  }
 0x1d6   :  { %3361 = vmatpush2.bf16.msra.mxu0 %v6624_v1  ;;  %3443 = vmatpush2.bf16.msra.mxu1 %v6626_v28  ;;  %8357 = vst [vmem:[#allocation199_spill] sm:$0xff] %v6632_v16  ;;  %8358 = vst [vmem:[#allocation200_spill] sm:$0xff] %v6634_v32  ;;  %v6640_v40 = vld [vmem:[#allocation10 + $0x144] ss:$16 sps:$4 sm:$0xff]   ;;  %v6642_v5 = vld [vmem:[#allocation10 + $0x14c] ss:$16 sps:$4 sm:$0xff]  }
 0x1d7   :  { %8352 = vst [vmem:[#allocation194_spill] sm:$0xff] %v6614_v14  ;;  %8359 = vst [vmem:[#allocation201_spill] sm:$0xff] %v6636_v29  ;;  %v6638_v14 = vld [vmem:[#allocation10 + $0x168] ss:$16 sps:$4 sm:$0xff]   ;;  %3362 = vmatprep.subr.bf16.mxu0 %v6632_v16  ;;  %3444 = vmatprep.subr.bf16.mxu1 %v6634_v32  ;;  %v6648_v28 = vld [vmem:[#allocation10 + $0x140] ss:$16 sps:$4 sm:$0xff]  }
 0x1d8   :  { %8360 = vst [vmem:[#allocation202_spill] sm:$0xff] %v6638_v14  ;;  %8361 = vst [vmem:[#allocation203_spill] sm:$0xff] %v6640_v40  ;;  %v6650_v4 = vld [vmem:[#allocation10 + $0x148] ss:$16 sps:$4 sm:$0xff]   ;;  %v6660_v32 = vld [vmem:[#allocation10 + $0x120] ss:$16 sps:$4 sm:$0xff]  }
 0x1d9   :  { %8362 = vst [vmem:[#allocation204_spill] sm:$0xff] %v6642_v5  ;;  %8363 = vst [vmem:[#allocation205_spill] sm:$0xff] %v6648_v28 }
 0x1da   :  { %3363 = vmatpush2.bf16.msra.mxu0 %v6636_v29  ;;  %3445 = vmatpush2.bf16.msra.mxu1 %v6638_v14  ;;  %8364 = vst [vmem:[#allocation206_spill] sm:$0xff] %v6650_v4  ;;  %8365 = vst [vmem:[#allocation207_spill] sm:$0xff] %v6654_v45  ;;  %v6666_v14 = vld [vmem:[#allocation10 + $0x104] ss:$16 sps:$4 sm:$0xff]  }
 0x1db   :  { %3364 = vmatprep.subr.bf16.mxu0 %v6640_v40  ;;  %3446 = vmatprep.subr.bf16.mxu1 %v6642_v5  ;;  %8367 = vst [vmem:[#allocation209_spill] sm:$0xff] %v6660_v32  ;;  %8369 = vst [vmem:[#allocation211_spill] sm:$0xff] %v6666_v14  ;;  %v6672_v5 = vld [vmem:[#allocation10 + $0x100] ss:$16 sps:$4 sm:$0xff]  }
 0x1dc   :  { %8371 = vst [vmem:[#allocation213_spill] sm:$0xff] %v6672_v5 }
 0x1de   :  { %3365 = vmatpush2.bf16.msra.mxu0 %v6648_v28  ;;  %3447 = vmatpush2.bf16.msra.mxu1 %v6650_v4  ;;  %v6674_v28 = vld [vmem:[#allocation10 + $0x108] ss:$16 sps:$4 sm:$0xff]  }
 0x1df   :  { %3366 = vmatprep.subr.bf16.mxu0 %v6654_v45  ;;  %3448 = vmatprep.subr.bf16.mxu1 %v6656_v47  ;;  %8372 = vst [vmem:[#allocation214_spill] sm:$0xff] %v6674_v28  ;;  %v6680_v47 = vld [vmem:[#allocation10 + $0x2ec] ss:$16 sps:$4 sm:$0xff]  }
 0x1e0   :  { %8373 = vst [vmem:[#allocation215_spill] sm:$0xff] %v6680_v47 }
 0x1e2   :  { %3367 = vmatpush2.bf16.msra.mxu0 %v6660_v32  ;;  %3449 = vmatpush2.bf16.msra.mxu1 %v6662_v54 }
 0x1e3   :  { %3368 = vmatprep.subr.bf16.mxu0 %v6666_v14  ;;  %3450 = vmatprep.subr.bf16.mxu1 %v6668_v2 }
 0x1e6   :  { %3369 = vmatpush2.bf16.msra.mxu0 %v6672_v5  ;;  %3451 = vmatpush2.bf16.msra.mxu1 %v6674_v28 }
 0x1e7   :  { %3567 = vmatprep.subr.bf16.mxu1 %v5946_v35  ;;  %3461 = vmatprep.subr.bf16.mxu0 %v6680_v47 }
 0x203   :  { %v2648_v4 = vpop.f32.mrf.mxu0 }
 0x204   :  { %v2689_v54 = vpop.f32.mrf.mxu1  ;;  %v2778_v2 = vadd.f32 %v2648_v4, %v6189_v8 }
 0x205   :  { %v2650_v32 = vpop.f32.mrf.mxu0  ;;  %v2780_v5 = vadd.f32 %v2689_v54, %v6321_v63 }
 0x206   :  { %v2691_v45 = vpop.f32.mrf.mxu1  ;;  %v5109_v1 = vmul.f32 -1.442695, %v2778_v2  ;;  %v2779_v57 = vadd.f32 %v2650_v32, %v6196_v23 }
 0x207   :  { %v2652_v40 = vpop.f32.mrf.mxu0  ;;  %v2781_v28 = vadd.f32 %v2691_v45, %v6329_v7  ;;  %v5111_v35 = vmul.f32 -1.442695, %v2780_v5 }
 0x208   :  { %v2693_v29 = vpop.f32.mrf.mxu1  ;;  %5407 = vpow2.f32 %v5109_v1  ;;  %v5110_v47 = vmul.f32 -1.442695, %v2779_v57 }
 0x209   :  { %v2653_v16 = vpop.f32.mrf.mxu0  ;;  %v5112_v21 = vmul.f32 -1.442695, %v2781_v28  ;;  %5409 = vpow2.f32 %v5111_v35 }
 0x20a   :  { %v2694_v14 = vpop.f32.mrf.mxu1 }
 0x20b   :  { %5411 = vpow2.f32 %v5112_v21 }
 0x20c   :  { %5413 = vpow2.f32 %v5110_v47 }
 0x215   :  { %v5408_v40 = vpop.eup %5407 }
 0x216   :  { %v5410_v29 = vpop.eup %5409  ;;  %v2792_v14 = vadd.f32 1.0, %v5408_v40 }
 0x217   :  { %v2804_v8 = vadd.f32 1.0, %v5410_v29 }
 0x218   :  { %v5412_v16 = vpop.eup %5411  ;;  %5415 = vrcp.f32 %v2792_v14 }
 0x219   :  { %v5414_v15 = vpop.eup %5413  ;;  %v2805_v4 = vadd.f32 1.0, %v5412_v16  ;;  %5417 = vrcp.f32 %v2804_v8 }
 0x21a   :  { %v2793_v63 = vadd.f32 1.0, %v5414_v15 }
 0x21b   :  { %5419 = vrcp.f32 %v2805_v4 }
 0x225   :  { %v5416_v32 = vpop.eup %5415 }
 0x226   :  { %v5418_v40 = vpop.eup %5417 }
 0x227   :  { %v2824_v14 = vmul.f32 0.0, %v5418_v40  ;;  %v6712_v40 = vld [vmem:[#allocation10 + $0x2c8] ss:$16 sps:$4 sm:$0xff]  }
 0x243   :  { %v2730_v7 = vpop.f32.mrf.mxu0 }
 0x244   :  { %v2782_v23 = vadd.f32 %v2730_v7, %v6463_v11  ;;  %v2771_v5 = vpop.f32.mrf.mxu1 }
 0x245   :  { %v2784_v2 = vadd.f32 %v2771_v5, %v6556_v26  ;;  %v2732_v35 = vpop.f32.mrf.mxu0  ;;  %v5420_v26 = vpop.eup %5419 }
 0x246   :  { %5421 = vtanh.f32 %v2782_v23  ;;  %v2783_v47 = vadd.f32 %v2732_v35, %v6469_v18  ;;  %v2773_v54 = vpop.f32.mrf.mxu1 }
 0x247   :  { %5423 = vrcp.f32 %v2793_v63  ;;  %v5113_v21 = vmul.f32 -1.442695, %v2784_v2  ;;  %v2785_v45 = vadd.f32 %v2773_v54, %v6566_v39  ;;  %v2734_v57 = vpop.f32.mrf.mxu0  ;;  %v2825_v63 = vmul.f32 0.0, %v5420_v26  ;;  %v6716_v26 = vld [vmem:[#allocation10 + $0x2ac] ss:$16 sps:$4 sm:$0xff]  }
 0x248   :  { %5425 = vtanh.f32 %v2783_v47  ;;  %v2775_v15 = vpop.f32.mrf.mxu1 }
 0x249   :  { %5427 = vpow2.f32 %v5113_v21  ;;  %v5114_v1 = vmul.f32 -1.442695, %v2785_v45  ;;  %v2735_v28 = vpop.f32.mrf.mxu0 }
 0x24a   :  { %v2776_v11 = vpop.f32.mrf.mxu1  ;;  %v6700_v28 = vld [vmem:[#allocation10 + $0x2e8] ss:$16 sps:$4 sm:$0xff]  }
 0x24b   :  { %5429 = vpow2.f32 %v5114_v1 }
 0x253   :  { %v5422_v29 = vpop.eup %5421 }
 0x254   :  { %v5424_v16 = vpop.eup %5423  ;;  %v2826_v18 = vmul.f32 %v5422_v29, %v5416_v32  ;;  %v6704_v32 = vld [vmem:[#allocation10 + $0x2cc] ss:$16 sps:$4 sm:$0xff]   ;;  %v6722_v29 = vld [vmem:[#allocation10 + $0x2a8] ss:$16 sps:$4 sm:$0xff]  }
 0x255   :  { %v5426_v8 = vpop.eup %5425 }
 0x256   :  { %v5428_v4 = vpop.eup %5427  ;;  %v6692_v7 = vadd.f32 %v2826_v18, %v2824_v14  ;;  %v2827_v39 = vmul.f32 %v5426_v8, %v5424_v16  ;;  %v6726_v16 = vld [vmem:[#allocation10 + $0x28c] ss:$16 sps:$4 sm:$0xff]   ;;  %v6730_v14 = vld [vmem:[#allocation10 + $0x288] ss:$16 sps:$4 sm:$0xff]  }
 0x257   :  { %v2818_v23 = vadd.f32 1.0, %v5428_v4  ;;  %v6734_v18 = vld [vmem:[#allocation10 + $0x26c] ss:$16 sps:$4 sm:$0xff]   ;;  %v6738_v8 = vld [vmem:[#allocation10 + $0x268] ss:$16 sps:$4 sm:$0xff]  }
 0x258   :  { %v5430_v5 = vpop.eup %5429  ;;  %5431 = vtanh.f32 %v6692_v7  ;;  %v6695_v2 = vadd.f32 %v2827_v39, %v2825_v63  ;;  %v6742_v4 = vld [vmem:[#allocation10 + $0x24c] ss:$16 sps:$4 sm:$0xff]   ;;  %v6746_v63 = vld [vmem:[#allocation10 + $0x248] ss:$16 sps:$4 sm:$0xff]  }
 0x259   :  { %5433 = vrcp.f32 %v2818_v23  ;;  %v2819_v35 = vadd.f32 1.0, %v5430_v5  ;;  %v6750_v39 = vld [vmem:[#allocation10 + $0x22c] ss:$16 sps:$4 sm:$0xff]   ;;  %v6754_v23 = vld [vmem:[#allocation10 + $0x228] ss:$16 sps:$4 sm:$0xff]  }
 0x25a   :  { %5435 = vtanh.f32 %v6695_v2  ;;  %v6758_v5 = vld [vmem:[#allocation10 + $0x20c] ss:$16 sps:$4 sm:$0xff]  }
 0x25b   :  { %5437 = vrcp.f32 %v2819_v35  ;;  %v6762_v35 = vld [vmem:[#allocation10 + $0x208] ss:$16 sps:$4 sm:$0xff]  }
 0x265   :  { %v5432_v47 = vpop.eup %5431 }
 0x266   :  { %v5434_v54 = vpop.eup %5433 }
 0x267   :  { %v5436_v21 = vpop.eup %5435  ;;  %v2832_v57 = vmul.f32 %v5434_v54, %v5432_v47  ;;  %v6764_v47 = vpop.f32.mrf.mxu1 }
 0x268   :  { %v5438_v45 = vpop.eup %5437 }
 0x269   :  { %v2833_v15 = vmul.f32 %v5438_v45, %v5436_v21  ;;  %v6702_v11 = vpack.c.bf16 %v2832_v57, %v2832_v57  ;;  %v6768_v54 = vpop.f32.mrf.mxu1  ;;  %v8374_v57 = vmov 0.0|0.0  }
 0x26b   :  { %v6698_v1 = vpack.c.bf16 %v2833_v15, %v2833_v15  ;;  %v3417_v21 = vpop.f32.mrf.mxu1  ;;  %v8375_v15 = vld [vmem:[#allocation20_spill] sm:$0xff] }
 0x26c   :  { %v8376_v21 = vld [vmem:[#allocation41_spill] sm:$0xff] }
 0x26d   :  { %3370 = vmatprep.mubr.bf16.mxu0 %v6698_v1  ;;  %3452 = vmatprep.mubr.bf16.mxu1 %v6698_v1  ;;  %v3418_v45 = vpop.f32.mrf.mxu1 }
 0x26e   :  { %3371 = vmatmul.mubr.bf16.vlgmr.msra.gmra.mxu0 %v6702_v11  ;;  %3453 = vmatmul.mubr.bf16.vlgmr.msra.gmra.mxu1 %v6702_v11  ;;  %v8377_v45 = vld [vmem:[#allocation21_spill] sm:$0xff] }
 0x26f   :  { %3462 = vmatpush1.bf16.msra.mxu0 %v6700_v28  ;;  %3568 = vmatpush1.bf16.msra.mxu1 %v5951_v42 }
 0x270   :  { %3599 = vmatprep.mubr.bf16.mxu1 %v6698_v1  ;;  %3463 = vmatprep.subr.bf16.mxu0 %v6704_v32 }
 0x271   :  { %3569 = vmatprep.subr.bf16.mxu1 %v5956_v44  ;;  %3493 = vmatprep.mubr.bf16.mxu0 %v8221_v19 }
 0x273   :  { %3464 = vmatpush1.bf16.msra.mxu0 %v6712_v40  ;;  %3570 = vmatpush1.bf16.msra.mxu1 %v5963_v52 }
 0x274   :  { %3465 = vmatprep.subr.bf16.mxu0 %v6716_v26  ;;  %3571 = vmatprep.subr.bf16.mxu1 %v5968_v13 }
 0x277   :  { %3466 = vmatpush1.bf16.msra.mxu0 %v6722_v29  ;;  %3572 = vmatpush1.bf16.msra.mxu1 %v5976_v20 }
 0x278   :  { %3467 = vmatprep.subr.bf16.mxu0 %v6726_v16  ;;  %3573 = vmatprep.subr.bf16.mxu1 %v5981_v61 }
 0x27b   :  { %3468 = vmatpush1.bf16.msra.mxu0 %v6730_v14  ;;  %3574 = vmatpush1.bf16.msra.mxu1 %v5988_v6 }
 0x27c   :  { %3469 = vmatprep.subr.bf16.mxu0 %v6734_v18  ;;  %3575 = vmatprep.subr.bf16.mxu1 %v5993_v31 }
 0x27f   :  { %3470 = vmatpush1.bf16.msra.mxu0 %v6738_v8  ;;  %3576 = vmatpush1.bf16.msra.mxu1 %v6002_v12 }
 0x280   :  { %3471 = vmatprep.subr.bf16.mxu0 %v6742_v4  ;;  %3577 = vmatprep.subr.bf16.mxu1 %v6007_v59 }
 0x283   :  { %3472 = vmatpush1.bf16.msra.mxu0 %v6746_v63  ;;  %3578 = vmatpush1.bf16.msra.mxu1 %v6014_v22 }
 0x284   :  { %3473 = vmatprep.subr.bf16.mxu0 %v6750_v39  ;;  %3579 = vmatprep.subr.bf16.mxu1 %v6019_v24 }
 0x287   :  { %3474 = vmatpush1.bf16.msra.mxu0 %v6754_v23  ;;  %3580 = vmatpush1.bf16.msra.mxu1 %v6026_v30 }
 0x288   :  { %3475 = vmatprep.subr.bf16.mxu0 %v6758_v5  ;;  %3581 = vmatprep.subr.bf16.mxu1 %v6031_v33 }
 0x28b   :  { %3476 = vmatpush1.bf16.msra.mxu0 %v6762_v35  ;;  %3582 = vmatpush1.bf16.msra.mxu1 %v6038_v46 }
 0x28c   :  { %3526 = vmatprep.subr.bf16.mxu0 %v5944_v34  ;;  %3583 = vmatprep.subr.bf16.mxu1 %v6043_v48 }
 0x28e   :  { %3494 = vmatmul.mubr.bf16.vlgmr.msra.gmra.mxu0 %v8374_v57  ;;  %v8378_v57 = vld [vmem:[#allocation43_spill] sm:$0xff] }
 0x28f   :  { %3527 = vmatpush1.bf16.msra.mxu0 %v5948_v41  ;;  %3558 = vmatprep.mubr.bf16.mxu0 %v6698_v1 }
 0x290   :  { %3584 = vmatpush2.bf16.msra.mxu1 %v6050_v56  ;;  %3528 = vmatprep.subr.bf16.mxu0 %v5953_v43 }
 0x291   :  { %3585 = vmatprep.subr.bf16.mxu1 %v6055_v62 }
 0x293   :  { %3529 = vmatpush1.bf16.msra.mxu0 %v5959_v51 }
 0x294   :  { %3586 = vmatpush2.bf16.msra.mxu1 %v6062_v37  ;;  %3530 = vmatprep.subr.bf16.mxu0 %v5965_v53  ;;  %v8379_v37 = vld [vmem:[#allocation22_spill] sm:$0xff]  ;;  %v8380_v53 = vld [vmem:[#allocation45_spill] sm:$0xff] }
 0x295   :  { %3587 = vmatprep.subr.bf16.mxu1 %v6067_v9  ;;  %v8381_v9 = vld [vmem:[#allocation23_spill] sm:$0xff] }
 0x297   :  { %3531 = vmatpush1.bf16.msra.mxu0 %v5972_v58  ;;  %v8382_v58 = vld [vmem:[#allocation47_spill] sm:$0xff] }
 0x298   :  { %3588 = vmatpush2.bf16.msra.mxu1 %v6074_v25  ;;  %3532 = vmatprep.subr.bf16.mxu0 %v5978_v60  ;;  %v8383_v25 = vld [vmem:[#allocation24_spill] sm:$0xff]  ;;  %v8384_v60 = vld [vmem:[#allocation49_spill] sm:$0xff] }
 0x299   :  { %3589 = vmatprep.subr.bf16.mxu1 %v6079_v27  ;;  %v8385_v27 = vld [vmem:[#allocation25_spill] sm:$0xff] }
 0x29b   :  { %3533 = vmatpush1.bf16.msra.mxu0 %v8375_v15  ;;  %v8386_v15 = vld [vmem:[#allocation51_spill] sm:$0xff] }
 0x29c   :  { %3590 = vmatpush2.bf16.msra.mxu1 %v8376_v21  ;;  %3534 = vmatprep.subr.bf16.mxu0 %v8377_v45  ;;  %v8387_v21 = vld [vmem:[#allocation26_spill] sm:$0xff] }
 0x29d   :  { %3591 = vmatprep.subr.bf16.mxu1 %v8378_v57  ;;  %v8388_v45 = vld [vmem:[#allocation54_spill] sm:$0xff]  ;;  %v8389_v57 = vld [vmem:[#allocation27_spill] sm:$0xff] }
 0x29f   :  { %3535 = vmatpush1.bf16.msra.mxu0 %v8379_v37  ;;  %v8390_v37 = vld [vmem:[#allocation56_spill] sm:$0xff] }
 0x2a0   :  { %3592 = vmatpush2.bf16.msra.mxu1 %v8380_v53  ;;  %3536 = vmatprep.subr.bf16.mxu0 %v8381_v9  ;;  %v8391_v53 = vld [vmem:[#allocation28_spill] sm:$0xff]  ;;  %v8392_v9 = vld [vmem:[#allocation58_spill] sm:$0xff] }
 0x2a1   :  { %3593 = vmatprep.subr.bf16.mxu1 %v8382_v58  ;;  %v8393_v58 = vld [vmem:[#allocation29_spill] sm:$0xff] }
 0x2a3   :  { %3537 = vmatpush1.bf16.msra.mxu0 %v8383_v25  ;;  %v8394_v25 = vld [vmem:[#allocation60_spill] sm:$0xff] }
 0x2a4   :  { %3594 = vmatpush2.bf16.msra.mxu1 %v8384_v60  ;;  %3538 = vmatprep.subr.bf16.mxu0 %v8385_v27  ;;  %v8395_v27 = vld [vmem:[#allocation30_spill] sm:$0xff]  ;;  %v8407_v60 = vld [vmem:[#allocation40_spill] sm:$0xff] }
 0x2a5   :  { %3595 = vmatprep.subr.bf16.mxu1 %v8386_v15  ;;  %v8396_v15 = vld [vmem:[#allocation62_spill] sm:$0xff] }
 0x2a7   :  { %3539 = vmatpush1.bf16.msra.mxu0 %v8387_v21  ;;  %v8404_v21 = vld [vmem:[#allocation70_spill] sm:$0xff] }
 0x2a8   :  { %3596 = vmatpush2.bf16.msra.mxu1 %v8388_v45  ;;  %3540 = vmatprep.subr.bf16.mxu0 %v8389_v57  ;;  %v8397_v45 = vld [vmem:[#allocation31_spill] sm:$0xff]  ;;  %v8398_v57 = vld [vmem:[#allocation64_spill] sm:$0xff] }
 0x2a9   :  { %3597 = vmatprep.subr.bf16.mxu1 %v8390_v37  ;;  %v8399_v37 = vld [vmem:[#allocation32_spill] sm:$0xff] }
 0x2ab   :  { %3541 = vmatpush1.bf16.msra.mxu0 %v8391_v53  ;;  %v8400_v53 = vld [vmem:[#allocation66_spill] sm:$0xff] }
 0x2ac   :  { %3598 = vmatpush2.bf16.msra.mxu1 %v8392_v9  ;;  %3542 = vmatprep.subr.bf16.mxu0 %v8393_v58  ;;  %v8401_v9 = vld [vmem:[#allocation34_spill] sm:$0xff]  ;;  %v8402_v58 = vld [vmem:[#allocation68_spill] sm:$0xff] }
 0x2ad   :  { %3649 = vmatprep.subr.bf16.mxu1 %v8394_v25  ;;  %v8403_v25 = vld [vmem:[#allocation36_spill] sm:$0xff] }
 0x2af   :  { %3600 = vmatmul.mubr.bf16.vlgmr.msra.gmra.mxu1 %v6702_v11  ;;  %3543 = vmatpush2.bf16.msra.mxu0 %v8395_v27  ;;  %v8405_v27 = vld [vmem:[#allocation38_spill] sm:$0xff] }
 0x2b0   :  { %3650 = vmatpush1.bf16.msra.mxu1 %v8396_v15  ;;  %3681 = vmatprep.mubr.bf16.mxu1 %v6698_v1  ;;  %v8406_v15 = vld [vmem:[#allocation72_spill] sm:$0xff] }
 0x2b1   :  { %3544 = vmatprep.subr.bf16.mxu0 %v8397_v45  ;;  %3651 = vmatprep.subr.bf16.mxu1 %v8398_v57  ;;  %v8408_v45 = vld [vmem:[#allocation76_spill] sm:$0xff]  ;;  %v8409_v57 = vld [vmem:[#allocation42_spill] sm:$0xff] }
 0x2b3   :  { %3545 = vmatpush2.bf16.msra.mxu0 %v8399_v37  ;;  %v8410_v37 = vld [vmem:[#allocation78_spill] sm:$0xff] }
 0x2b4   :  { %3652 = vmatpush1.bf16.msra.mxu1 %v8400_v53  ;;  %3546 = vmatprep.subr.bf16.mxu0 %v8401_v9  ;;  %v8411_v53 = vld [vmem:[#allocation44_spill] sm:$0xff]  ;;  %v8412_v9 = vld [vmem:[#allocation82_spill] sm:$0xff] }
 0x2b5   :  { %3653 = vmatprep.subr.bf16.mxu1 %v8402_v58  ;;  %v8413_v58 = vld [vmem:[#allocation46_spill] sm:$0xff] }
 0x2b7   :  { %3547 = vmatpush2.bf16.msra.mxu0 %v8403_v25  ;;  %v8414_v25 = vld [vmem:[#allocation84_spill] sm:$0xff] }
 0x2b8   :  { %3654 = vmatpush1.bf16.msra.mxu1 %v8404_v21  ;;  %3548 = vmatprep.subr.bf16.mxu0 %v8405_v27  ;;  %v8415_v21 = vld [vmem:[#allocation48_spill] sm:$0xff] }
 0x2b9   :  { %3655 = vmatprep.subr.bf16.mxu1 %v8406_v15  ;;  %v8416_v27 = vld [vmem:[#allocation88_spill] sm:$0xff]  ;;  %v8417_v15 = vld [vmem:[#allocation50_spill] sm:$0xff] }
 0x2bb   :  { %3549 = vmatpush2.bf16.msra.mxu0 %v8407_v60  ;;  %v8418_v60 = vld [vmem:[#allocation90_spill] sm:$0xff] }
 0x2bc   :  { %3656 = vmatpush1.bf16.msra.mxu1 %v8408_v45  ;;  %3550 = vmatprep.subr.bf16.mxu0 %v8409_v57  ;;  %v8419_v45 = vld [vmem:[#allocation52_spill] sm:$0xff] }
 0x2bd   :  { %3657 = vmatprep.subr.bf16.mxu1 %v8410_v37  ;;  %v8420_v57 = vld [vmem:[#allocation92_spill] sm:$0xff]  ;;  %v8421_v37 = vld [vmem:[#allocation55_spill] sm:$0xff] }
 0x2bf   :  { %3551 = vmatpush2.bf16.msra.mxu0 %v8411_v53  ;;  %v8422_v53 = vld [vmem:[#allocation94_spill] sm:$0xff] }
 0x2c0   :  { %3658 = vmatpush1.bf16.msra.mxu1 %v8412_v9  ;;  %3552 = vmatprep.subr.bf16.mxu0 %v8413_v58  ;;  %v8423_v9 = vld [vmem:[#allocation57_spill] sm:$0xff]  ;;  %v8424_v58 = vld [vmem:[#allocation96_spill] sm:$0xff] }
 0x2c1   :  { %3659 = vmatprep.subr.bf16.mxu1 %v8414_v25  ;;  %v8425_v25 = vld [vmem:[#allocation59_spill] sm:$0xff] }
 0x2c3   :  { %3553 = vmatpush2.bf16.msra.mxu0 %v8415_v21  ;;  %v8426_v21 = vld [vmem:[#allocation98_spill] sm:$0xff] }
 0x2c4   :  { %3660 = vmatpush1.bf16.msra.mxu1 %v8416_v27  ;;  %3554 = vmatprep.subr.bf16.mxu0 %v8417_v15  ;;  %v8427_v15 = vld [vmem:[#allocation61_spill] sm:$0xff] }
 0x2c5   :  { %3661 = vmatprep.subr.bf16.mxu1 %v8418_v60  ;;  %v8436_v60 = vld [vmem:[#allocation108_spill] sm:$0xff] }
 0x2c7   :  { %3555 = vmatpush2.bf16.msra.mxu0 %v8419_v45  ;;  %v8428_v45 = vld [vmem:[#allocation100_spill] sm:$0xff] }
 0x2c8   :  { %3662 = vmatpush1.bf16.msra.mxu1 %v8420_v57  ;;  %3556 = vmatprep.subr.bf16.mxu0 %v8421_v37  ;;  %v8429_v57 = vld [vmem:[#allocation63_spill] sm:$0xff]  ;;  %v8430_v37 = vld [vmem:[#allocation102_spill] sm:$0xff] }
 0x2c9   :  { %3663 = vmatprep.subr.bf16.mxu1 %v8422_v53  ;;  %v8431_v53 = vld [vmem:[#allocation65_spill] sm:$0xff] }
 0x2cb   :  { %3557 = vmatpush2.bf16.msra.mxu0 %v8423_v9  ;;  %v8432_v9 = vld [vmem:[#allocation104_spill] sm:$0xff] }
 0x2cc   :  { %3664 = vmatpush1.bf16.msra.mxu1 %v8424_v58  ;;  %3608 = vmatprep.subr.bf16.mxu0 %v8425_v25  ;;  %v8433_v58 = vld [vmem:[#allocation67_spill] sm:$0xff]  ;;  %v8434_v25 = vld [vmem:[#allocation106_spill] sm:$0xff] }
 0x2cd   :  { %3665 = vmatprep.subr.bf16.mxu1 %v8426_v21  ;;  %v8435_v21 = vld [vmem:[#allocation69_spill] sm:$0xff] }
 0x2ce   :  { %3559 = vmatmul.mubr.bf16.vlgmr.msra.gmra.mxu0 %v6702_v11 }
 0x2cf   :  { %3609 = vmatpush1.bf16.msra.mxu0 %v8427_v15  ;;  %3640 = vmatprep.mubr.bf16.mxu0 %v6698_v1  ;;  %v8437_v15 = vld [vmem:[#allocation71_spill] sm:$0xff]  ;;  %v8438_v1 = vld [vmem:[#allocation110_spill] sm:$0xff] }
 0x2d0   :  { %3666 = vmatpush2.bf16.msra.mxu1 %v8428_v45  ;;  %3610 = vmatprep.subr.bf16.mxu0 %v8429_v57  ;;  %v8439_v45 = vld [vmem:[#allocation74_spill] sm:$0xff]  ;;  %v8508_v57 = vld [vmem:[#allocation195_spill] sm:$0xff] }
 0x2d1   :  { %3667 = vmatprep.subr.bf16.mxu1 %v8430_v37  ;;  %v8440_v37 = vld [vmem:[#allocation77_spill] sm:$0xff] }
 0x2d3   :  { %3611 = vmatpush1.bf16.msra.mxu0 %v8431_v53  ;;  %v8506_v53 = vld [vmem:[#allocation190_spill] sm:$0xff] }
 0x2d4   :  { %3668 = vmatpush2.bf16.msra.mxu1 %v8432_v9  ;;  %3612 = vmatprep.subr.bf16.mxu0 %v8433_v58  ;;  %v8441_v9 = vld [vmem:[#allocation80_spill] sm:$0xff] }
 0x2d5   :  { %3669 = vmatprep.subr.bf16.mxu1 %v8434_v25  ;;  %v8442_v25 = vld [vmem:[#allocation83_spill] sm:$0xff] }
 0x2d7   :  { %3613 = vmatpush1.bf16.msra.mxu0 %v8435_v21  ;;  %v8443_v21 = vld [vmem:[#allocation122_spill] sm:$0xff] }
 0x2d8   :  { %3670 = vmatpush2.bf16.msra.mxu1 %v8436_v60  ;;  %3614 = vmatprep.subr.bf16.mxu0 %v8437_v15  ;;  %v8444_v60 = vld [vmem:[#allocation86_spill] sm:$0xff]  ;;  %v8445_v15 = vld [vmem:[#allocation125_spill] sm:$0xff] }
 0x2d9   :  { %3671 = vmatprep.subr.bf16.mxu1 %v8438_v1  ;;  %v8446_v1 = vld [vmem:[#allocation89_spill] sm:$0xff] }
 0x2db   :  { %3615 = vmatpush1.bf16.msra.mxu0 %v8439_v45  ;;  %v8447_v45 = vld [vmem:[#allocation128_spill] sm:$0xff] }
 0x2dc   :  { %3672 = vmatpush2.bf16.msra.mxu1 %v6345_v0  ;;  %3616 = vmatprep.subr.bf16.mxu0 %v8440_v37  ;;  %v8448_v0 = vld [vmem:[#allocation91_spill] sm:$0xff]  ;;  %v8449_v37 = vld [vmem:[#allocation130_spill] sm:$0xff] }
 0x2dd   :  { %3673 = vmatprep.subr.bf16.mxu1 %v6355_v17  ;;  %v8450_v17 = vld [vmem:[#allocation93_spill] sm:$0xff] }
 0x2df   :  { %3617 = vmatpush1.bf16.msra.mxu0 %v8441_v9  ;;  %v8451_v9 = vld [vmem:[#allocation132_spill] sm:$0xff] }
 0x2e0   :  { %3674 = vmatpush2.bf16.msra.mxu1 %v6363_v38  ;;  %3618 = vmatprep.subr.bf16.mxu0 %v8442_v25  ;;  %v8452_v38 = vld [vmem:[#allocation95_spill] sm:$0xff]  ;;  %v8453_v25 = vld [vmem:[#allocation134_spill] sm:$0xff] }
 0x2e1   :  { %3675 = vmatprep.subr.bf16.mxu1 %v8443_v21  ;;  %v8454_v21 = vld [vmem:[#allocation97_spill] sm:$0xff] }
 0x2e3   :  { %3619 = vmatpush1.bf16.msra.mxu0 %v8444_v60  ;;  %v8455_v60 = vld [vmem:[#allocation135_spill] sm:$0xff] }
 0x2e4   :  { %3676 = vmatpush2.bf16.msra.mxu1 %v8445_v15  ;;  %3620 = vmatprep.subr.bf16.mxu0 %v8446_v1  ;;  %v8456_v1 = vld [vmem:[#allocation99_spill] sm:$0xff]  ;;  %v8470_v15 = vld [vmem:[#allocation142_spill] sm:$0xff] }
 0x2e5   :  { %3677 = vmatprep.subr.bf16.mxu1 %v8447_v45  ;;  %v8457_v45 = vld [vmem:[#allocation101_spill] sm:$0xff] }
 0x2e7   :  { %3621 = vmatpush1.bf16.msra.mxu0 %v8448_v0  ;;  %v8458_v0 = vld [vmem:[#allocation136_spill] sm:$0xff] }
 0x2e8   :  { %3678 = vmatpush2.bf16.msra.mxu1 %v8449_v37  ;;  %3622 = vmatprep.subr.bf16.mxu0 %v8450_v17  ;;  %v8459_v37 = vld [vmem:[#allocation137_spill] sm:$0xff] }
 0x2e9   :  { %3679 = vmatprep.subr.bf16.mxu1 %v8451_v9  ;;  %v8460_v9 = vld [vmem:[#allocation103_spill] sm:$0xff]  ;;  %v8465_v17 = vld [vmem:[#allocation109_spill] sm:$0xff] }
 0x2eb   :  { %3623 = vmatpush1.bf16.msra.mxu0 %v8452_v38  ;;  %v8461_v38 = vld [vmem:[#allocation105_spill] sm:$0xff] }
 0x2ec   :  { %3680 = vmatpush2.bf16.msra.mxu1 %v8453_v25  ;;  %3624 = vmatprep.subr.bf16.mxu0 %v8454_v21  ;;  %v8462_v25 = vld [vmem:[#allocation138_spill] sm:$0xff]  ;;  %v8463_v21 = vld [vmem:[#allocation139_spill] sm:$0xff] }
 0x2ed   :  { %3790 = vmatprep.subr.bf16.mxu1 %v8455_v60  ;;  %v8464_v60 = vld [vmem:[#allocation107_spill] sm:$0xff] }
 0x2ef   :  { %3682 = vmatmul.mubr.bf16.vlgmr.msra.gmra.mxu1 %v6702_v11  ;;  %3625 = vmatpush2.bf16.msra.mxu0 %v8456_v1  ;;  %v8466_v1 = vld [vmem:[#allocation140_spill] sm:$0xff] }
 0x2f0   :  { %3626 = vmatprep.subr.bf16.mxu0 %v8457_v45  ;;  %3791 = vmatpush1.bf16.msra.mxu1 %v8458_v0  ;;  %v8467_v45 = vld [vmem:[#allocation141_spill] sm:$0xff]  ;;  %v8468_v0 = vld [vmem:[#allocation112_spill] sm:$0xff] }
 0x2f1   :  { %3792 = vmatprep.subr.bf16.mxu1 %v8459_v37  ;;  %3822 = vmatprep.mubr.bf16.mxu1 %v8221_v19  ;;  %v8469_v37 = vld [vmem:[#allocation115_spill] sm:$0xff] }
 0x2f3   :  { %3627 = vmatpush2.bf16.msra.mxu0 %v8460_v9  ;;  %v8471_v9 = vld [vmem:[#allocation143_spill] sm:$0xff] }
 0x2f4   :  { %3628 = vmatprep.subr.bf16.mxu0 %v8461_v38  ;;  %3793 = vmatpush1.bf16.msra.mxu1 %v8462_v25  ;;  %v8472_v38 = vld [vmem:[#allocation118_spill] sm:$0xff]  ;;  %v8473_v25 = vld [vmem:[#allocation120_spill] sm:$0xff] }
 0x2f5   :  { %3794 = vmatprep.subr.bf16.mxu1 %v8463_v21  ;;  %v8474_v21 = vld [vmem:[#allocation144_spill] sm:$0xff] }
 0x2f7   :  { %3629 = vmatpush2.bf16.msra.mxu0 %v8464_v60  ;;  %v8475_v60 = vld [vmem:[#allocation145_spill] sm:$0xff] }
 0x2f8   :  { %3630 = vmatprep.subr.bf16.mxu0 %v8465_v17  ;;  %3795 = vmatpush1.bf16.msra.mxu1 %v8466_v1  ;;  %v8476_v17 = vld [vmem:[#allocation124_spill] sm:$0xff]  ;;  %v8477_v1 = vld [vmem:[#allocation126_spill] sm:$0xff] }
 0x2f9   :  { %3796 = vmatprep.subr.bf16.mxu1 %v8467_v45  ;;  %v8478_v45 = vld [vmem:[#allocation146_spill] sm:$0xff] }
 0x2fb   :  { %3631 = vmatpush2.bf16.msra.mxu0 %v8468_v0  ;;  %v8479_v0 = vld [vmem:[#allocation147_spill] sm:$0xff] }
 0x2fc   :  { %3632 = vmatprep.subr.bf16.mxu0 %v8469_v37  ;;  %3797 = vmatpush1.bf16.msra.mxu1 %v8470_v15  ;;  %v8480_v37 = vld [vmem:[#allocation129_spill] sm:$0xff]  ;;  %v8481_v15 = vld [vmem:[#allocation131_spill] sm:$0xff] }
 0x2fd   :  { %3798 = vmatprep.subr.bf16.mxu1 %v8471_v9  ;;  %v8482_v9 = vld [vmem:[#allocation148_spill] sm:$0xff] }
 0x2ff   :  { %3633 = vmatpush2.bf16.msra.mxu0 %v8472_v38  ;;  %v8483_v38 = vld [vmem:[#allocation149_spill] sm:$0xff] }
 0x300   :  { %3634 = vmatprep.subr.bf16.mxu0 %v8473_v25  ;;  %3799 = vmatpush1.bf16.msra.mxu1 %v8474_v21  ;;  %v8484_v25 = vld [vmem:[#allocation133_spill] sm:$0xff]  ;;  %v8485_v21 = vld [vmem:[#allocation150_spill] sm:$0xff] }
 0x301   :  { %3800 = vmatprep.subr.bf16.mxu1 %v8475_v60  ;;  %v8486_v60 = vld [vmem:[#allocation151_spill] sm:$0xff] }
 0x303   :  { %3635 = vmatpush2.bf16.msra.mxu0 %v8476_v17  ;;  %v8487_v17 = vld [vmem:[#allocation152_spill] sm:$0xff] }
 0x304   :  { %3636 = vmatprep.subr.bf16.mxu0 %v8477_v1  ;;  %3801 = vmatpush1.bf16.msra.mxu1 %v8478_v45  ;;  %v8488_v45 = vld [vmem:[#allocation153_spill] sm:$0xff] }
 0x305   :  { %3802 = vmatprep.subr.bf16.mxu1 %v8479_v0  ;;  %v8489_v0 = vld [vmem:[#allocation154_spill] sm:$0xff] }
 0x307   :  { %3637 = vmatpush2.bf16.msra.mxu0 %v8480_v37 }
 0x308   :  { %3638 = vmatprep.subr.bf16.mxu0 %v8481_v15  ;;  %3803 = vmatpush1.bf16.msra.mxu1 %v8482_v9  ;;  %v8491_v9 = vld [vmem:[#allocation162_spill] sm:$0xff] }
 0x309   :  { %3804 = vmatprep.subr.bf16.mxu1 %v8483_v38  ;;  %v8490_v38 = vld [vmem:[#allocation159_spill] sm:$0xff] }
 0x30b   :  { %3639 = vmatpush2.bf16.msra.mxu0 %v8484_v25 }
 0x30c   :  { %3805 = vmatpush1.bf16.msra.mxu1 %v8485_v21  ;;  %3749 = vmatprep.subr.bf16.mxu0 %v8486_v60  ;;  %v8492_v21 = vld [vmem:[#allocation163_spill] sm:$0xff]  ;;  %v8493_v60 = vld [vmem:[#allocation166_spill] sm:$0xff] }
 0x30d   :  { %3831 = vmatprep.subr.bf16.mxu1 %v8487_v17  ;;  %v8494_v17 = vld [vmem:[#allocation167_spill] sm:$0xff] }
 0x30e   :  { %3641 = vmatmul.mubr.bf16.vlgmr.msra.gmra.mxu0 %v6702_v11  ;;  %v8495_v11 = vld [vmem:[#allocation170_spill] sm:$0xff] }
 0x30f   :  { %3750 = vmatpush1.bf16.msra.mxu0 %v8488_v45  ;;  %v8496_v45 = vld [vmem:[#allocation172_spill] sm:$0xff] }
 0x310   :  { %3751 = vmatprep.subr.bf16.mxu0 %v8489_v0  ;;  %v8497_v0 = vld [vmem:[#allocation174_spill] sm:$0xff] }
 0x313   :  { %3752 = vmatpush1.bf16.msra.mxu0 %v6486_v3  ;;  %v8498_v3 = vld [vmem:[#allocation176_spill] sm:$0xff] }
 0x314   :  { %3753 = vmatprep.subr.bf16.mxu0 %v6492_v10  ;;  %v1973_v10 = vld [vmem:[%s7789_s5] sm:$0xf]  ;;  %s5849_s5 = smov [#allocation11]  }
 0x315   :  { %s4772_s24 = sshll.u32 %s5849_s5, 4  ;;  %s4773_s24 = int_to_ptr.vmem [resolvable:$true] %s4772_s24 }
 0x316   :  { %s5808_s25 = scalar_lea.vmem %s4773_s24, 128  ;;  %p5813_p12 = scmp.lt.s32.totalorder %s4773_s24, %s4773_s24 }
 0x317   :  { %3754 = vmatpush1.bf16.msra.mxu0 %v6499_v49  ;;  %v8499_v49 = vld [vmem:[#allocation178_spill] sm:$0xff]  ;;  %p5809_p11 = scmp.ne.s32.totalorder %s4773_s24, %s5808_s25  ;;  %p5814_p13 = scmp.lt.s32.totalorder %s5808_s25, %s5808_s25 }
 0x318   :  { %3755 = vmatprep.subr.bf16.mxu0 %v8490_v38  ;;  %v8500_v38 = vld [vmem:[#allocation53_spill] sm:$0xff] }
 0x319   :  { %p5815_p0 = por %p5814_p13, %p5813_p12 }
 0x31b   :  { %3756 = vmatpush1.bf16.msra.mxu0 %v8491_v9  ;;  %v8501_v9 = vsub.s32 0, %v8500_v38  ;;  %p5816_p1 = pnand %p5815_p0, %p5809_p11 }
 0x31c   :  { %3757 = vmatprep.subr.bf16.mxu0 %v8492_v21 }
 0x31d   :  { %v6931_v21 = vrot.slane %v1973_v10, %v8501_v9 }
 0x31f   :  { %3758 = vmatpush1.bf16.msra.mxu0 %v8493_v60  ;;  %8502 = vst [vmem:[#allocation135_spill] sm:$0xff] %v6931_v21  ;;  %v8503_v60 = vsub.s32 1, %v8500_v38 }
 0x320   :  { %3759 = vmatprep.subr.bf16.mxu0 %v8494_v17 }
 0x321   :  { %v6936_v17 = vrot.slane %v1973_v10, %v8503_v60 }
 0x323   :  { %3760 = vmatpush1.bf16.msra.mxu0 %v8495_v11  ;;  %8504 = vst [vmem:[#allocation136_spill] sm:$0xff] %v6936_v17 }
 0x324   :  { %3761 = vmatprep.subr.bf16.mxu0 %v8496_v45 }
 0x327   :  { %3762 = vmatpush1.bf16.msra.mxu0 %v8497_v0  ;;  %v8505_v0 = vld [vmem:[#allocation182_spill] sm:$0xff] }
 0x328   :  { %3763 = vmatprep.subr.bf16.mxu0 %v8498_v3 }
 0x32b   :  { %3764 = vmatpush1.bf16.msra.mxu0 %v8499_v49 }
 0x32c   :  { %3765 = vmatprep.subr.bf16.mxu0 %v6574_v36 }
 0x32e   :  { %v3372_v11 = vpop.f32.mrf.mxu0  ;;  %v3454_v45 = vpop.f32.mrf.mxu1 }
 0x32f   :  { %3766 = vmatpush2.bf16.msra.mxu0 %v8505_v0  ;;  %v3373_v3 = vadd.f32 %v3372_v11, %v6931_v21  ;;  %v8507_v11 = vld [vmem:[#allocation192_spill] sm:$0xff] }
 0x330   :  { %v3374_v25 = vpop.f32.mrf.mxu0  ;;  %v3456_v15 = vpop.f32.mrf.mxu1  ;;  %3767 = vmatprep.subr.bf16.mxu0 %v6590_v55  ;;  %v8509_v55 = vld [vmem:[#allocation197_spill] sm:$0xff] }
 0x331   :  { %v3375_v49 = vadd.f32 %v3374_v25, %v6936_v17  ;;  %v3414_v60 = vadd.f32 %v6764_v47, %v3373_v3  ;;  %v8513_v47 = vld [vmem:[#allocation205_spill] sm:$0xff]  ;;  %v8517_v3 = vsub.s32 2, %v8500_v38 }
 0x332   :  { %v3376_v9 = vpop.f32.mrf.mxu0  ;;  %v3458_v37 = vpop.f32.mrf.mxu1 }
 0x333   :  { %v3416_v36 = vadd.f32 %v6768_v54, %v3375_v49  ;;  %3768 = vmatpush2.bf16.msra.mxu0 %v6594_v50  ;;  %v5211_v21 = vmul.f32 -1.442695, %v3414_v60  ;;  %v8510_v37 = vld [vmem:[#allocation199_spill] sm:$0xff]  ;;  %v8511_v54 = vld [vmem:[#allocation201_spill] sm:$0xff]  ;;  %v6958_v49 = vrot.slane %v1973_v10, %v8517_v3  ;;  %v8519_v9 = vsub.s32 3, %v8500_v38 }
 0x334   :  { %v3377_v1 = vpop.f32.mrf.mxu0  ;;  %v3459_v58 = vpop.f32.mrf.mxu1  ;;  %3769 = vmatprep.subr.bf16.mxu0 %v8506_v53  ;;  %v8512_v50 = vld [vmem:[#allocation203_spill] sm:$0xff]  ;;  %v8515_v53 = vld [vmem:[#allocation209_spill] sm:$0xff] }
 0x335   :  { %v5212_v0 = vmul.f32 -1.442695, %v3416_v36  ;;  %v8514_v58 = vld [vmem:[#allocation207_spill] sm:$0xff]  ;;  %8518 = vst [vmem:[#allocation137_spill] sm:$0xff] %v6958_v49  ;;  %v6962_v36 = vrot.slane %v1973_v10, %v8519_v9  ;;  %v8521_v60 = vld [vmem:[#allocation213_spill] sm:$0xff] }
 0x336   :  { %v8516_v1 = vld [vmem:[#allocation211_spill] sm:$0xff] }
 0x337   :  { %3770 = vmatpush2.bf16.msra.mxu0 %v8507_v11  ;;  %5439 = vpow2.f32 %v5212_v0  ;;  %8520 = vst [vmem:[#allocation138_spill] sm:$0xff] %v6962_v36  ;;  %v8522_v11 = vld [vmem:[#allocation215_spill] sm:$0xff] }
 0x338   :  { %3771 = vmatprep.subr.bf16.mxu0 %v8508_v57  ;;  %5441 = vpow2.f32 %v5211_v21 }
 0x33b   :  { %3772 = vmatpush2.bf16.msra.mxu0 %v8509_v55  ;;  %v3455_v55 = vadd.f32 %v3454_v45, %v6958_v49  ;;  %v8560_v49 = vld [vmem:[#allocation180_spill] sm:$0xff] }
 0x33c   :  { %3773 = vmatprep.subr.bf16.mxu0 %v8510_v37 }
 0x33f   :  { %3774 = vmatpush2.bf16.msra.mxu0 %v8511_v54  ;;  %v3457_v54 = vadd.f32 %v3456_v15, %v6962_v36 }
 0x340   :  { %3775 = vmatprep.subr.bf16.mxu0 %v8512_v50 }
 0x343   :  { %3776 = vmatpush2.bf16.msra.mxu0 %v8513_v47 }
 0x344   :  { %3777 = vmatprep.subr.bf16.mxu0 %v8514_v58  ;;  %v5440_v25 = vpop.eup %5439 }
 0x345   :  { %v5442_v57 = vpop.eup %5441  ;;  %v3511_v21 = vadd.f32 1.0, %v5440_v25 }
 0x346   :  { %v3505_v0 = vadd.f32 1.0, %v5442_v57 }
 0x347   :  { %3778 = vmatpush2.bf16.msra.mxu0 %v8515_v53  ;;  %5443 = vrcp.f32 %v3511_v21 }
 0x348   :  { %3779 = vmatprep.subr.bf16.mxu0 %v8516_v1  ;;  %5445 = vrcp.f32 %v3505_v0  ;;  %v8524_v0 = vld [vmem:[#allocation111_spill] sm:$0xff] }
 0x34b   :  { %3780 = vmatpush2.bf16.msra.mxu0 %v8521_v60 }
 0x34c   :  { %3872 = vmatprep.subr.bf16.mxu0 %v8522_v11 }
 0x34e   :  { %v3495_v37 = vpop.f32.mrf.mxu0 }
 0x34f   :  { %v3496_v50 = vadd.f32 %v3495_v37, %v3455_v55 }
 0x350   :  { %v3497_v47 = vpop.f32.mrf.mxu0 }
 0x351   :  { %5447 = vtanh.f32 %v3496_v50  ;;  %v3498_v58 = vadd.f32 %v3497_v47, %v3457_v54  ;;  %v8525_v50 = vld [vmem:[#allocation114_spill] sm:$0xff] }
 0x352   :  { %v3499_v53 = vpop.f32.mrf.mxu0 }
 0x353   :  { %v5213_v38 = vmul.f32 -1.442695, %v3498_v58 }
 0x354   :  { %v3500_v10 = vpop.f32.mrf.mxu0  ;;  %v5444_v25 = vpop.eup %5443 }
 0x355   :  { %5449 = vpow2.f32 %v5213_v38  ;;  %v5446_v1 = vpop.eup %5445  ;;  %v3521_v3 = vmul.f32 0.0, %v5444_v25  ;;  %v6976_v25 = vld [vmem:[#allocation10 + $0xe8] ss:$16 sps:$4 sm:$0xff]  }
 0x356   :  { %8526 = vst [vmem:[#allocation140_spill] sm:$0xff] %v6976_v25 }
 0x35e   :  { %v5448_v57 = vpop.eup %5447 }
 0x35f   :  { %v3522_v9 = vmul.f32 %v5448_v57, %v5446_v1  ;;  %v6979_v1 = vld [vmem:[#allocation10 + $0xcc] ss:$16 sps:$4 sm:$0xff]   ;;  %v6982_v57 = vld [vmem:[#allocation10 + $0xc8] ss:$16 sps:$4 sm:$0xff]  }
 0x360   :  { %8527 = vst [vmem:[#allocation141_spill] sm:$0xff] %v6979_v1  ;;  %8528 = vst [vmem:[#allocation142_spill] sm:$0xff] %v6982_v57 }
 0x361   :  { %v6968_v60 = vadd.f32 %v3522_v9, %v3521_v3  ;;  %v6985_v3 = vld [vmem:[#allocation10 + $0xac] ss:$16 sps:$4 sm:$0xff]   ;;  %v6988_v9 = vld [vmem:[#allocation10 + $0xa8] ss:$16 sps:$4 sm:$0xff]  }
 0x362   :  { %v5450_v45 = vpop.eup %5449  ;;  %8529 = vst [vmem:[#allocation143_spill] sm:$0xff] %v6985_v3  ;;  %8530 = vst [vmem:[#allocation144_spill] sm:$0xff] %v6988_v9 }
 0x363   :  { %8523 = vst [vmem:[#allocation139_spill] sm:$0xff] %v6968_v60  ;;  %v3518_v21 = vadd.f32 1.0, %v5450_v45  ;;  %5451 = vtanh.f32 %v6968_v60  ;;  %v6991_v45 = vld [vmem:[#allocation10 + $0x8c] ss:$16 sps:$4 sm:$0xff]  }
 0x364   :  { %8531 = vst [vmem:[#allocation145_spill] sm:$0xff] %v6991_v45  ;;  %v8558_v60 = vld [vmem:[#allocation16_spill] sm:$0xff] }
 0x365   :  { %5453 = vrcp.f32 %v3518_v21  ;;  %v8532_v21 = vld [vmem:[#allocation164_spill] sm:$0xff] }
 0x36f   :  { %v3601_v15 = vpop.f32.mrf.mxu1 }
 0x370   :  { %v3692_v11 = vadd.f32 %v3601_v15, %v8524_v0  ;;  %v5452_v55 = vpop.eup %5451  ;;  %v8533_v15 = vld [vmem:[#allocation165_spill] sm:$0xff]  ;;  %v8534_v0 = vld [vmem:[#allocation168_spill] sm:$0xff] }
 0x371   :  { %v3603_v37 = vpop.f32.mrf.mxu1 }
 0x372   :  { %v5454_v54 = vpop.eup %5453  ;;  %v3693_v47 = vadd.f32 %v3603_v37, %v8525_v50  ;;  %v8536_v37 = vld [vmem:[#allocation171_spill] sm:$0xff] }
 0x373   :  { %v3605_v58 = vpop.f32.mrf.mxu1  ;;  %v3525_v53 = vmul.f32 %v5454_v54, %v5452_v55  ;;  %v8535_v55 = vld [vmem:[#allocation169_spill] sm:$0xff] }
 0x374   :  { %v8537_v54 = vld [vmem:[#allocation173_spill] sm:$0xff] }
 0x375   :  { %v3606_v38 = vpop.f32.mrf.mxu1  ;;  %v6973_v10 = vpack.c.bf16 %v3525_v53, %v3525_v53  ;;  %v8538_v53 = vld [vmem:[#allocation175_spill] sm:$0xff] }
 0x376   :  { %v8539_v38 = vld [vmem:[#allocation177_spill] sm:$0xff] }
 0x377   :  { %3823 = vmatmul.mubr.bf16.vlgmr.msra.gmra.mxu1 %v6973_v10 }
 0x378   :  { %3832 = vmatpush1.bf16.msra.mxu1 %v6976_v25  ;;  %v8557_v25 = vld [vmem:[#allocation214_spill] sm:$0xff] }
 0x379   :  { %3833 = vmatprep.subr.bf16.mxu1 %v6979_v1 }
 0x37c   :  { %3834 = vmatpush1.bf16.msra.mxu1 %v6982_v57  ;;  %v8547_v57 = vld [vmem:[#allocation196_spill] sm:$0xff] }
 0x37d   :  { %3835 = vmatprep.subr.bf16.mxu1 %v6985_v3  ;;  %v8540_v3 = vld [vmem:[#allocation179_spill] sm:$0xff] }
 0x380   :  { %3836 = vmatpush1.bf16.msra.mxu1 %v6988_v9 }
 0x381   :  { %3837 = vmatprep.subr.bf16.mxu1 %v6991_v45 }
 0x384   :  { %3838 = vmatpush1.bf16.msra.mxu1 %v8532_v21  ;;  %v8541_v21 = vld [vmem:[#allocation181_spill] sm:$0xff] }
 0x385   :  { %3839 = vmatprep.subr.bf16.mxu1 %v8533_v15  ;;  %v8542_v15 = vld [vmem:[#allocation183_spill] sm:$0xff] }
 0x388   :  { %3840 = vmatpush1.bf16.msra.mxu1 %v8534_v0  ;;  %v8543_v0 = vld [vmem:[#allocation186_spill] sm:$0xff] }
 0x389   :  { %3841 = vmatprep.subr.bf16.mxu1 %v8535_v55  ;;  %v8544_v55 = vld [vmem:[#allocation187_spill] sm:$0xff] }
 0x38c   :  { %3842 = vmatpush1.bf16.msra.mxu1 %v8536_v37  ;;  %v8545_v37 = vld [vmem:[#allocation191_spill] sm:$0xff] }
 0x38d   :  { %3843 = vmatprep.subr.bf16.mxu1 %v8537_v54  ;;  %v8546_v54 = vld [vmem:[#allocation193_spill] sm:$0xff] }
 0x38e   :  { %v3560_v50 = vpop.f32.mrf.mxu0 }
 0x390   :  { %v3562_v58 = vpop.f32.mrf.mxu0  ;;  %3844 = vmatpush1.bf16.msra.mxu1 %v8538_v53  ;;  %v8548_v53 = vld [vmem:[#allocation198_spill] sm:$0xff] }
 0x391   :  { %3845 = vmatprep.subr.bf16.mxu1 %v8539_v38  ;;  %v8552_v38 = vld [vmem:[#allocation206_spill] sm:$0xff] }
 0x392   :  { %v3564_v9 = vpop.f32.mrf.mxu0 }
 0x393   :  { %v8549_v9 = vld [vmem:[#allocation200_spill] sm:$0xff] }
 0x394   :  { %v3565_v45 = vpop.f32.mrf.mxu0  ;;  %3846 = vmatpush1.bf16.msra.mxu1 %v8540_v3  ;;  %v8551_v3 = vld [vmem:[#allocation204_spill] sm:$0xff] }
 0x395   :  { %3847 = vmatprep.subr.bf16.mxu1 %v8541_v21  ;;  %v8550_v45 = vld [vmem:[#allocation202_spill] sm:$0xff]  ;;  %v8553_v21 = vld [vmem:[#allocation208_spill] sm:$0xff] }
 0x398   :  { %3848 = vmatpush2.bf16.msra.mxu1 %v8542_v15 }
 0x399   :  { %3849 = vmatprep.subr.bf16.mxu1 %v8543_v0  ;;  %v8554_v0 = vld [vmem:[#allocation210_spill] sm:$0xff] }
 0x39c   :  { %3850 = vmatpush2.bf16.msra.mxu1 %v8544_v55 }
 0x39d   :  { %3851 = vmatprep.subr.bf16.mxu1 %v8545_v37  ;;  %v8555_v37 = vld [vmem:[#allocation212_spill] sm:$0xff] }
 0x3a0   :  { %3852 = vmatpush2.bf16.msra.mxu1 %v8546_v54  ;;  %v8556_v54 = vld [vmem:[#allocation73_spill] sm:$0xff] }
 0x3a1   :  { %3853 = vmatprep.subr.bf16.mxu1 %v8547_v57  ;;  %v3690_v57 = vadd.f32 %v3560_v50, %v8556_v54  ;;  %v8561_v54 = vld [vmem:[#allocation184_spill] sm:$0xff] }
 0x3a3   :  { %v5214_v36 = vmul.f32 -1.442695, %v3690_v57 }
 0x3a4   :  { %3854 = vmatpush2.bf16.msra.mxu1 %v8548_v53  ;;  %v5216_v53 = vmul.f32 -1.442695, %v3692_v11 }
 0x3a5   :  { %3855 = vmatprep.subr.bf16.mxu1 %v8549_v9  ;;  %v5217_v9 = vmul.f32 -1.442695, %v3693_v47 }
 0x3a6   :  { %5455 = vpow2.f32 %v5216_v53 }
 0x3a7   :  { %5457 = vpow2.f32 %v5217_v9 }
 0x3a8   :  { %3856 = vmatpush2.bf16.msra.mxu1 %v8550_v45  ;;  %5459 = vpow2.f32 %v5214_v36  ;;  %v8562_v36 = vld [vmem:[#allocation155_spill] sm:$0xff] }
 0x3a9   :  { %3857 = vmatprep.subr.bf16.mxu1 %v8551_v3  ;;  %v8559_v3 = vld [vmem:[#allocation75_spill] sm:$0xff] }
 0x3ac   :  { %3858 = vmatpush2.bf16.msra.mxu1 %v8552_v38  ;;  %v3691_v38 = vadd.f32 %v3562_v58, %v8559_v3 }
 0x3ad   :  { %3859 = vmatprep.subr.bf16.mxu1 %v8553_v21 }
 0x3ae   :  { %v5215_v21 = vmul.f32 -1.442695, %v3691_v38 }
 0x3af   :  { %v3683_v15 = vpop.f32.mrf.mxu1 }
 0x3b0   :  { %3860 = vmatpush2.bf16.msra.mxu1 %v8554_v0  ;;  %5461 = vpow2.f32 %v5215_v21  ;;  %v3696_v50 = vadd.f32 %v3683_v15, %v8560_v49  ;;  %v8563_v49 = vld [vmem:[#allocation156_spill] sm:$0xff] }
 0x3b1   :  { %v3685_v55 = vpop.f32.mrf.mxu1  ;;  %3861 = vmatprep.subr.bf16.mxu1 %v8555_v37 }
 0x3b3   :  { %v3687_v1 = vpop.f32.mrf.mxu1  ;;  %v5456_v0 = vpop.eup %5455 }
 0x3b4   :  { %3862 = vmatpush2.bf16.msra.mxu1 %v8557_v25  ;;  %v5458_v37 = vpop.eup %5457  ;;  %v3716_v11 = vadd.f32 1.0, %v5456_v0  ;;  %v3697_v25 = vadd.f32 %v3685_v55, %v8561_v54 }
 0x3b5   :  { %v3688_v45 = vpop.f32.mrf.mxu1  ;;  %3978 = vmatprep.subr.bf16.mxu1 %v8558_v60  ;;  %v5460_v1 = vpop.eup %5459  ;;  %v3717_v47 = vadd.f32 1.0, %v5458_v37 }
 0x3b6   :  { %v5218_v45 = vmul.f32 -1.442695, %v3696_v50  ;;  %v3704_v60 = vadd.f32 1.0, %v5460_v1  ;;  %5463 = vrcp.f32 %v3716_v11  ;;  %v5219_v58 = vmul.f32 -1.442695, %v3697_v25 }
 0x3b7   :  { %5465 = vrcp.f32 %v3717_v47 }
 0x3b8   :  { %5467 = vpow2.f32 %v5218_v45 }
 0x3b9   :  { %5469 = vrcp.f32 %v3704_v60 }
 0x3ba   :  { %5471 = vpow2.f32 %v5219_v58 }
 0x3bd   :  { %v5462_v17 = vpop.eup %5461 }
 0x3be   :  { %v3705_v57 = vadd.f32 1.0, %v5462_v17 }
 0x3c3   :  { %v5464_v21 = vpop.eup %5463 }
 0x3c4   :  { %v5466_v0 = vpop.eup %5465  ;;  %v3736_v60 = vmul.f32 %v5464_v21, %v6692_v7 }
 0x3c5   :  { %v5468_v37 = vpop.eup %5467 }
 0x3c6   :  { %v5470_v50 = vpop.eup %5469  ;;  %v3730_v11 = vadd.f32 1.0, %v5468_v37  ;;  %v8582_v37 = vld [vmem:[#allocation51_spill] sm:$0xff] }
 0x3c7   :  { %v5472_v1 = vpop.eup %5471 }
 0x3c8   :  { %v3731_v45 = vadd.f32 1.0, %v5472_v1  ;;  %v8584_v1 = vld [vmem:[#allocation54_spill] sm:$0xff] }
 0x3ce   :  { %v3642_v53 = vpop.f32.mrf.mxu0 }
 0x3cf   :  { %v3694_v9 = vadd.f32 %v3642_v53, %v8562_v36 }
 0x3d0   :  { %v3644_v3 = vpop.f32.mrf.mxu0 }
 0x3d1   :  { %5473 = vtanh.f32 %v3694_v9  ;;  %v3695_v15 = vadd.f32 %v3644_v3, %v8563_v49 }
 0x3d2   :  { %5475 = vrcp.f32 %v3705_v57  ;;  %v3646_v55 = vpop.f32.mrf.mxu0  ;;  %v3737_v57 = vmul.f32 %v5466_v0, %v6695_v2  ;;  %v8564_v2 = vld [vmem:[#allocation33_spill] sm:$0xff] }
 0x3d3   :  { %5477 = vtanh.f32 %v3695_v15  ;;  %v8581_v0 = vld [vmem:[#allocation25_spill] sm:$0xff] }
 0x3d4   :  { %v3647_v38 = vpop.f32.mrf.mxu0  ;;  %5479 = vrcp.f32 %v3730_v11  ;;  %v8586_v11 = vld [vmem:[#allocation56_spill] sm:$0xff] }
 0x3de   :  { %v5474_v17 = vpop.eup %5473 }
 0x3df   :  { %v5476_v54 = vpop.eup %5475  ;;  %v3738_v25 = vmul.f32 %v5474_v17, %v5470_v50  ;;  %v8583_v50 = vld [vmem:[#allocation26_spill] sm:$0xff]  ;;  %v8585_v17 = vld [vmem:[#allocation27_spill] sm:$0xff] }
 0x3e0   :  { %v5478_v47 = vpop.eup %5477 }
 0x3e1   :  { %v7027_v58 = vadd.f32 %v3738_v25, %v3736_v60  ;;  %v3739_v53 = vmul.f32 %v5478_v47, %v5476_v54  ;;  %v5480_v9 = vpop.eup %5479  ;;  %v8587_v54 = vld [vmem:[#allocation28_spill] sm:$0xff]  ;;  %v8588_v60 = vld [vmem:[#allocation58_spill] sm:$0xff]  ;;  %v8589_v25 = vld [vmem:[#allocation29_spill] sm:$0xff] }
 0x3e3   :  { %5481 = vtanh.f32 %v7027_v58  ;;  %v7031_v36 = vadd.f32 %v3739_v53, %v3737_v57  ;;  %v8591_v57 = vld [vmem:[#allocation30_spill] sm:$0xff] }
 0x3e4   :  { %5483 = vrcp.f32 %v3731_v45  ;;  %v8590_v45 = vld [vmem:[#allocation60_spill] sm:$0xff] }
 0x3e5   :  { %5485 = vtanh.f32 %v7031_v36 }
 0x3f0   :  { %v5482_v3 = vpop.eup %5481 }
 0x3f1   :  { %v5484_v49 = vpop.eup %5483  ;;  %v3744_v15 = vmul.f32 %v5482_v3, %v5480_v9  ;;  %v8592_v9 = vld [vmem:[#allocation62_spill] sm:$0xff] }
 0x3f2   :  { %v5486_v7 = vpop.eup %5485 }
 0x3f3   :  { %v3745_v55 = vmul.f32 %v5486_v7, %v5484_v49  ;;  %v7036_v21 = vpack.c.bf16 %v3744_v15, %v3744_v15  ;;  %v8593_v49 = vld [vmem:[#allocation31_spill] sm:$0xff]  ;;  %v8594_v7 = vld [vmem:[#allocation64_spill] sm:$0xff] }
 0x3f4   :  { %v8595_v15 = vld [vmem:[#allocation32_spill] sm:$0xff] }
 0x3f5   :  { %v7034_v38 = vpack.c.bf16 %v3745_v55, %v3745_v55 }
 0x3f7   :  { %3781 = vmatprep.mubr.bf16.mxu0 %v7034_v38  ;;  %3863 = vmatprep.mubr.bf16.mxu1 %v7034_v38 }
 0x3f8   :  { %3782 = vmatmul.mubr.bf16.vlgmr.msra.gmra.mxu0 %v7036_v21  ;;  %3864 = vmatmul.mubr.bf16.vlgmr.msra.gmra.mxu1 %v7036_v21 }
 0x3f9   :  { %3873 = vmatpush1.bf16.msra.mxu0 %v6700_v28  ;;  %3979 = vmatpush1.bf16.msra.mxu1 %v5951_v42  ;;  %v8565_v28 = vld [vmem:[#allocation17_spill] sm:$0xff] }
 0x3fa   :  { %4010 = vmatprep.mubr.bf16.mxu1 %v7034_v38  ;;  %3874 = vmatprep.subr.bf16.mxu0 %v6704_v32  ;;  %v8566_v32 = vld [vmem:[#allocation35_spill] sm:$0xff] }
 0x3fb   :  { %3980 = vmatprep.subr.bf16.mxu1 %v5956_v44  ;;  %3904 = vmatprep.mubr.bf16.mxu0 %v8221_v19 }
 0x3fd   :  { %3875 = vmatpush1.bf16.msra.mxu0 %v6712_v40  ;;  %3981 = vmatpush1.bf16.msra.mxu1 %v5963_v52  ;;  %v8567_v40 = vld [vmem:[#allocation18_spill] sm:$0xff] }
 0x3fe   :  { %3876 = vmatprep.subr.bf16.mxu0 %v6716_v26  ;;  %3982 = vmatprep.subr.bf16.mxu1 %v5968_v13  ;;  %v8568_v26 = vld [vmem:[#allocation37_spill] sm:$0xff] }
 0x401   :  { %3877 = vmatpush1.bf16.msra.mxu0 %v6722_v29  ;;  %3983 = vmatpush1.bf16.msra.mxu1 %v5976_v20  ;;  %v8569_v29 = vld [vmem:[#allocation19_spill] sm:$0xff] }
 0x402   :  { %3878 = vmatprep.subr.bf16.mxu0 %v6726_v16  ;;  %3984 = vmatprep.subr.bf16.mxu1 %v5981_v61  ;;  %v8570_v16 = vld [vmem:[#allocation39_spill] sm:$0xff] }
 0x405   :  { %3879 = vmatpush1.bf16.msra.mxu0 %v6730_v14  ;;  %3985 = vmatpush1.bf16.msra.mxu1 %v5988_v6  ;;  %v8571_v14 = vld [vmem:[#allocation20_spill] sm:$0xff] }
 0x406   :  { %3880 = vmatprep.subr.bf16.mxu0 %v6734_v18  ;;  %3986 = vmatprep.subr.bf16.mxu1 %v5993_v31  ;;  %v8572_v18 = vld [vmem:[#allocation41_spill] sm:$0xff] }
 0x409   :  { %3881 = vmatpush1.bf16.msra.mxu0 %v6738_v8  ;;  %3987 = vmatpush1.bf16.msra.mxu1 %v6002_v12  ;;  %v8573_v8 = vld [vmem:[#allocation21_spill] sm:$0xff] }
 0x40a   :  { %3882 = vmatprep.subr.bf16.mxu0 %v6742_v4  ;;  %3988 = vmatprep.subr.bf16.mxu1 %v6007_v59  ;;  %v8574_v4 = vld [vmem:[#allocation43_spill] sm:$0xff] }
 0x40d   :  { %3883 = vmatpush1.bf16.msra.mxu0 %v6746_v63  ;;  %3989 = vmatpush1.bf16.msra.mxu1 %v6014_v22  ;;  %v8575_v63 = vld [vmem:[#allocation22_spill] sm:$0xff] }
 0x40e   :  { %3884 = vmatprep.subr.bf16.mxu0 %v6750_v39  ;;  %3990 = vmatprep.subr.bf16.mxu1 %v6019_v24  ;;  %v8576_v39 = vld [vmem:[#allocation45_spill] sm:$0xff] }
 0x411   :  { %3885 = vmatpush1.bf16.msra.mxu0 %v6754_v23  ;;  %3991 = vmatpush1.bf16.msra.mxu1 %v6026_v30  ;;  %v8577_v23 = vld [vmem:[#allocation23_spill] sm:$0xff] }
 0x412   :  { %3886 = vmatprep.subr.bf16.mxu0 %v6758_v5  ;;  %3992 = vmatprep.subr.bf16.mxu1 %v6031_v33  ;;  %v8578_v5 = vld [vmem:[#allocation47_spill] sm:$0xff] }
 0x415   :  { %3887 = vmatpush1.bf16.msra.mxu0 %v6762_v35  ;;  %3993 = vmatpush1.bf16.msra.mxu1 %v6038_v46  ;;  %v8579_v35 = vld [vmem:[#allocation24_spill] sm:$0xff] }
 0x416   :  { %3937 = vmatprep.subr.bf16.mxu0 %v5944_v34  ;;  %3994 = vmatprep.subr.bf16.mxu1 %v6043_v48 }
 0x418   :  { %3905 = vmatmul.mubr.bf16.vlgmr.msra.gmra.mxu0 %v6973_v10  ;;  %v8580_v10 = vld [vmem:[#allocation49_spill] sm:$0xff] }
 0x419   :  { %3938 = vmatpush1.bf16.msra.mxu0 %v5948_v41  ;;  %3969 = vmatprep.mubr.bf16.mxu0 %v7034_v38 }
 0x41a   :  { %3995 = vmatpush2.bf16.msra.mxu1 %v6050_v56  ;;  %3939 = vmatprep.subr.bf16.mxu0 %v5953_v43 }
 0x41b   :  { %3996 = vmatprep.subr.bf16.mxu1 %v6055_v62 }
 0x41d   :  { %3940 = vmatpush1.bf16.msra.mxu0 %v5959_v51 }
 0x41e   :  { %3997 = vmatpush2.bf16.msra.mxu1 %v8564_v2  ;;  %3941 = vmatprep.subr.bf16.mxu0 %v8565_v28 }
 0x41f   :  { %3998 = vmatprep.subr.bf16.mxu1 %v8566_v32 }
 0x421   :  { %3942 = vmatpush1.bf16.msra.mxu0 %v8567_v40 }
 0x422   :  { %3999 = vmatpush2.bf16.msra.mxu1 %v8568_v26  ;;  %3943 = vmatprep.subr.bf16.mxu0 %v8569_v29 }
 0x423   :  { %4000 = vmatprep.subr.bf16.mxu1 %v8570_v16 }
 0x425   :  { %3944 = vmatpush1.bf16.msra.mxu0 %v8571_v14 }
 0x426   :  { %4001 = vmatpush2.bf16.msra.mxu1 %v8572_v18  ;;  %3945 = vmatprep.subr.bf16.mxu0 %v8573_v8 }
 0x427   :  { %4002 = vmatprep.subr.bf16.mxu1 %v8574_v4 }
 0x429   :  { %3946 = vmatpush1.bf16.msra.mxu0 %v8575_v63 }
 0x42a   :  { %4003 = vmatpush2.bf16.msra.mxu1 %v8576_v39  ;;  %3947 = vmatprep.subr.bf16.mxu0 %v8577_v23 }
 0x42b   :  { %4004 = vmatprep.subr.bf16.mxu1 %v8578_v5 }
 0x42d   :  { %3948 = vmatpush1.bf16.msra.mxu0 %v8579_v35 }
 0x42e   :  { %4005 = vmatpush2.bf16.msra.mxu1 %v8580_v10  ;;  %3949 = vmatprep.subr.bf16.mxu0 %v8581_v0 }
 0x42f   :  { %4006 = vmatprep.subr.bf16.mxu1 %v8582_v37 }
 0x431   :  { %3950 = vmatpush1.bf16.msra.mxu0 %v8583_v50  ;;  %v8722_v50 = vld [vmem:[#allocation139_spill] sm:$0xff] }
 0x432   :  { %4007 = vmatpush2.bf16.msra.mxu1 %v8584_v1  ;;  %3951 = vmatprep.subr.bf16.mxu0 %v8585_v17 }
 0x433   :  { %4008 = vmatprep.subr.bf16.mxu1 %v8586_v11 }
 0x435   :  { %3952 = vmatpush1.bf16.msra.mxu0 %v8587_v54  ;;  %v8600_v54 = vld [vmem:[#allocation70_spill] sm:$0xff] }
 0x436   :  { %4009 = vmatpush2.bf16.msra.mxu1 %v8588_v60  ;;  %3953 = vmatprep.subr.bf16.mxu0 %v8589_v25  ;;  %v8596_v25 = vld [vmem:[#allocation66_spill] sm:$0xff]  ;;  %v8598_v60 = vld [vmem:[#allocation68_spill] sm:$0xff] }
 0x437   :  { %v7109_v47 = vpop.f32.mrf.mxu1  ;;  %4060 = vmatprep.subr.bf16.mxu1 %v8590_v45  ;;  %v8597_v45 = vld [vmem:[#allocation34_spill] sm:$0xff] }
 0x439   :  { %4011 = vmatmul.mubr.bf16.vlgmr.msra.gmra.mxu1 %v7036_v21  ;;  %3954 = vmatpush2.bf16.msra.mxu0 %v8591_v57  ;;  %v7114_v53 = vpop.f32.mrf.mxu1  ;;  %v8599_v57 = vld [vmem:[#allocation36_spill] sm:$0xff] }
 0x43a   :  { %4061 = vmatpush1.bf16.msra.mxu1 %v8592_v9  ;;  %4092 = vmatprep.mubr.bf16.mxu1 %v7034_v38  ;;  %v8601_v9 = vld [vmem:[#allocation38_spill] sm:$0xff] }
 0x43b   :  { %v3828_v3 = vpop.f32.mrf.mxu1  ;;  %3955 = vmatprep.subr.bf16.mxu0 %v8593_v49  ;;  %4062 = vmatprep.subr.bf16.mxu1 %v8594_v7  ;;  %v8603_v49 = vld [vmem:[#allocation40_spill] sm:$0xff] }
 0x43c   :  { %v8602_v3 = vld [vmem:[#allocation72_spill] sm:$0xff] }
 0x43d   :  { %3956 = vmatpush2.bf16.msra.mxu0 %v8595_v15  ;;  %v3829_v55 = vpop.f32.mrf.mxu1  ;;  %v8604_v7 = vld [vmem:[#allocation76_spill] sm:$0xff]  ;;  %v8605_v15 = vld [vmem:[#allocation42_spill] sm:$0xff] }
 0x43e   :  { %4063 = vmatpush1.bf16.msra.mxu1 %v8596_v25  ;;  %3957 = vmatprep.subr.bf16.mxu0 %v8597_v45  ;;  %v8606_v55 = vld [vmem:[#allocation78_spill] sm:$0xff]  ;;  %v8607_v25 = vld [vmem:[#allocation44_spill] sm:$0xff] }
 0x43f   :  { %4064 = vmatprep.subr.bf16.mxu1 %v8598_v60  ;;  %v8608_v45 = vld [vmem:[#allocation82_spill] sm:$0xff] }
 0x440   :  { %v8609_v60 = vld [vmem:[#allocation46_spill] sm:$0xff] }
 0x441   :  { %3958 = vmatpush2.bf16.msra.mxu0 %v8599_v57  ;;  %v8610_v57 = vld [vmem:[#allocation84_spill] sm:$0xff] }
 0x442   :  { %4065 = vmatpush1.bf16.msra.mxu1 %v8600_v54  ;;  %3959 = vmatprep.subr.bf16.mxu0 %v8601_v9  ;;  %v8611_v54 = vld [vmem:[#allocation48_spill] sm:$0xff]  ;;  %v7310_v9 = vld [vmem:[#allocation10 + $0x1c0] ss:$16 sps:$4 sm:$0xff]  }
 0x443   :  { %4066 = vmatprep.subr.bf16.mxu1 %v8602_v3  ;;  %v8612_v3 = vld [vmem:[#allocation50_spill] sm:$0xff]  ;;  %8706 = vst [vmem:[#allocation164_spill] sm:$0xff] %v7310_v9 }
 0x445   :  { %3960 = vmatpush2.bf16.msra.mxu0 %v8603_v49  ;;  %v8613_v49 = vld [vmem:[#allocation90_spill] sm:$0xff] }
 0x446   :  { %4067 = vmatpush1.bf16.msra.mxu1 %v8604_v7  ;;  %3961 = vmatprep.subr.bf16.mxu0 %v8605_v15  ;;  %v8614_v7 = vld [vmem:[#allocation52_spill] sm:$0xff] }
 0x447   :  { %4068 = vmatprep.subr.bf16.mxu1 %v8606_v55  ;;  %v8615_v15 = vld [vmem:[#allocation92_spill] sm:$0xff]  ;;  %v8616_v55 = vld [vmem:[#allocation55_spill] sm:$0xff] }
 0x449   :  { %3962 = vmatpush2.bf16.msra.mxu0 %v8607_v25  ;;  %v8617_v25 = vld [vmem:[#allocation94_spill] sm:$0xff] }
 0x44a   :  { %4069 = vmatpush1.bf16.msra.mxu1 %v8608_v45  ;;  %3963 = vmatprep.subr.bf16.mxu0 %v8609_v60  ;;  %v8618_v45 = vld [vmem:[#allocation57_spill] sm:$0xff]  ;;  %v8619_v60 = vld [vmem:[#allocation96_spill] sm:$0xff] }
 0x44b   :  { %4070 = vmatprep.subr.bf16.mxu1 %v8610_v57  ;;  %v8620_v57 = vld [vmem:[#allocation59_spill] sm:$0xff] }
 0x44d   :  { %3964 = vmatpush2.bf16.msra.mxu0 %v8611_v54  ;;  %v8621_v54 = vld [vmem:[#allocation98_spill] sm:$0xff] }
 0x44e   :  { %4071 = vmatpush1.bf16.msra.mxu1 %v8416_v27  ;;  %3965 = vmatprep.subr.bf16.mxu0 %v8612_v3  ;;  %v8622_v3 = vld [vmem:[#allocation61_spill] sm:$0xff] }
 0x44f   :  { %4072 = vmatprep.subr.bf16.mxu1 %v8613_v49  ;;  %v8631_v49 = vld [vmem:[#allocation108_spill] sm:$0xff] }
 0x451   :  { %3966 = vmatpush2.bf16.msra.mxu0 %v8614_v7  ;;  %v8623_v7 = vld [vmem:[#allocation100_spill] sm:$0xff] }
 0x452   :  { %4073 = vmatpush1.bf16.msra.mxu1 %v8615_v15  ;;  %3967 = vmatprep.subr.bf16.mxu0 %v8616_v55  ;;  %v8624_v15 = vld [vmem:[#allocation63_spill] sm:$0xff]  ;;  %v8625_v55 = vld [vmem:[#allocation102_spill] sm:$0xff] }
 0x453   :  { %4074 = vmatprep.subr.bf16.mxu1 %v8617_v25  ;;  %v8626_v25 = vld [vmem:[#allocation65_spill] sm:$0xff] }
 0x455   :  { %3968 = vmatpush2.bf16.msra.mxu0 %v8618_v45  ;;  %v8627_v45 = vld [vmem:[#allocation104_spill] sm:$0xff] }
 0x456   :  { %4075 = vmatpush1.bf16.msra.mxu1 %v8619_v60  ;;  %4019 = vmatprep.subr.bf16.mxu0 %v8620_v57  ;;  %v8628_v60 = vld [vmem:[#allocation67_spill] sm:$0xff]  ;;  %v8629_v57 = vld [vmem:[#allocation106_spill] sm:$0xff] }
 0x457   :  { %4076 = vmatprep.subr.bf16.mxu1 %v8621_v54  ;;  %v8630_v54 = vld [vmem:[#allocation69_spill] sm:$0xff] }
 0x458   :  { %3970 = vmatmul.mubr.bf16.vlgmr.msra.gmra.mxu0 %v7036_v21 }
 0x459   :  { %4020 = vmatpush1.bf16.msra.mxu0 %v8622_v3  ;;  %4051 = vmatprep.mubr.bf16.mxu0 %v7034_v38  ;;  %v8632_v3 = vld [vmem:[#allocation71_spill] sm:$0xff]  ;;  %v8633_v38 = vld [vmem:[#allocation110_spill] sm:$0xff] }
 0x45a   :  { %4077 = vmatpush2.bf16.msra.mxu1 %v8623_v7  ;;  %4021 = vmatprep.subr.bf16.mxu0 %v8624_v15  ;;  %v8634_v7 = vld [vmem:[#allocation74_spill] sm:$0xff]  ;;  %v8635_v15 = vld [vmem:[#allocation113_spill] sm:$0xff] }
 0x45b   :  { %4078 = vmatprep.subr.bf16.mxu1 %v8625_v55  ;;  %v8636_v55 = vld [vmem:[#allocation77_spill] sm:$0xff] }
 0x45d   :  { %4022 = vmatpush1.bf16.msra.mxu0 %v8626_v25  ;;  %v8637_v25 = vld [vmem:[#allocation116_spill] sm:$0xff] }
 0x45e   :  { %4079 = vmatpush2.bf16.msra.mxu1 %v8627_v45  ;;  %4023 = vmatprep.subr.bf16.mxu0 %v8628_v60  ;;  %v8638_v45 = vld [vmem:[#allocation80_spill] sm:$0xff]  ;;  %v8639_v60 = vld [vmem:[#allocation119_spill] sm:$0xff] }
 0x45f   :  { %4080 = vmatprep.subr.bf16.mxu1 %v8629_v57  ;;  %v8640_v57 = vld [vmem:[#allocation83_spill] sm:$0xff] }
 0x461   :  { %4024 = vmatpush1.bf16.msra.mxu0 %v8630_v54  ;;  %v8641_v54 = vld [vmem:[#allocation122_spill] sm:$0xff] }
 0x462   :  { %4081 = vmatpush2.bf16.msra.mxu1 %v8631_v49  ;;  %4025 = vmatprep.subr.bf16.mxu0 %v8632_v3  ;;  %v8642_v49 = vld [vmem:[#allocation86_spill] sm:$0xff]  ;;  %v8643_v3 = vld [vmem:[#allocation125_spill] sm:$0xff] }
 0x463   :  { %4082 = vmatprep.subr.bf16.mxu1 %v8633_v38  ;;  %v8644_v38 = vld [vmem:[#allocation89_spill] sm:$0xff] }
 0x465   :  { %4026 = vmatpush1.bf16.msra.mxu0 %v8634_v7  ;;  %v8645_v7 = vld [vmem:[#allocation128_spill] sm:$0xff] }
 0x466   :  { %4083 = vmatpush2.bf16.msra.mxu1 %v8635_v15  ;;  %4027 = vmatprep.subr.bf16.mxu0 %v8636_v55  ;;  %v8646_v15 = vld [vmem:[#allocation91_spill] sm:$0xff]  ;;  %v8647_v55 = vld [vmem:[#allocation130_spill] sm:$0xff] }
 0x467   :  { %4084 = vmatprep.subr.bf16.mxu1 %v8637_v25  ;;  %v8648_v25 = vld [vmem:[#allocation93_spill] sm:$0xff] }
 0x469   :  { %4028 = vmatpush1.bf16.msra.mxu0 %v8638_v45  ;;  %v8649_v45 = vld [vmem:[#allocation132_spill] sm:$0xff] }
 0x46a   :  { %4085 = vmatpush2.bf16.msra.mxu1 %v8639_v60  ;;  %4029 = vmatprep.subr.bf16.mxu0 %v8640_v57  ;;  %v8650_v60 = vld [vmem:[#allocation95_spill] sm:$0xff]  ;;  %v8651_v57 = vld [vmem:[#allocation134_spill] sm:$0xff] }
 0x46b   :  { %4086 = vmatprep.subr.bf16.mxu1 %v8641_v54  ;;  %v8652_v54 = vld [vmem:[#allocation97_spill] sm:$0xff] }
 0x46d   :  { %4030 = vmatpush1.bf16.msra.mxu0 %v8642_v49  ;;  %v7181_v49 = vld [vmem:[#allocation10 + $0x2e4] ss:$16 sps:$4 sm:$0xff]  }
 0x46e   :  { %4087 = vmatpush2.bf16.msra.mxu1 %v8643_v3  ;;  %4031 = vmatprep.subr.bf16.mxu0 %v8644_v38  ;;  %8653 = vst [vmem:[#allocation146_spill] sm:$0xff] %v7181_v49  ;;  %v7305_v38 = vld [vmem:[#allocation10 + $0x1c4] ss:$16 sps:$4 sm:$0xff]  }
 0x46f   :  { %4088 = vmatprep.subr.bf16.mxu1 %v8645_v7  ;;  %v8654_v7 = vld [vmem:[#allocation99_spill] sm:$0xff]  ;;  %8704 = vst [vmem:[#allocation114_spill] sm:$0xff] %v7305_v38 }
 0x471   :  { %4032 = vmatpush1.bf16.msra.mxu0 %v8646_v15  ;;  %v8655_v15 = vld [vmem:[#allocation101_spill] sm:$0xff] }
 0x472   :  { %4089 = vmatpush2.bf16.msra.mxu1 %v8647_v55  ;;  %4033 = vmatprep.subr.bf16.mxu0 %v8648_v25  ;;  %v7187_v55 = vld [vmem:[#allocation10 + $0x2e0] ss:$16 sps:$4 sm:$0xff]  }
 0x473   :  { %4090 = vmatprep.subr.bf16.mxu1 %v8649_v45  ;;  %8656 = vst [vmem:[#allocation147_spill] sm:$0xff] %v7187_v55  ;;  %v7190_v45 = vld [vmem:[#allocation10 + $0x2c4] ss:$16 sps:$4 sm:$0xff]  }
 0x474   :  { %8657 = vst [vmem:[#allocation148_spill] sm:$0xff] %v7190_v45 }
 0x475   :  { %4034 = vmatpush1.bf16.msra.mxu0 %v8650_v60  ;;  %v7204_v60 = vld [vmem:[#allocation10 + $0x2a0] ss:$16 sps:$4 sm:$0xff]  }
 0x476   :  { %4091 = vmatpush2.bf16.msra.mxu1 %v8651_v57  ;;  %4035 = vmatprep.subr.bf16.mxu0 %v8652_v54  ;;  %v8658_v54 = vld [vmem:[#allocation103_spill] sm:$0xff]  ;;  %v8659_v57 = vld [vmem:[#allocation105_spill] sm:$0xff]  ;;  %8664 = vst [vmem:[#allocation151_spill] sm:$0xff] %v7204_v60 }
 0x477   :  { %4201 = vmatprep.subr.bf16.mxu1 %v7181_v49  ;;  %v7196_v49 = vld [vmem:[#allocation10 + $0x2c0] ss:$16 sps:$4 sm:$0xff]  }
 0x478   :  { %8660 = vst [vmem:[#allocation149_spill] sm:$0xff] %v7196_v49 }
 0x479   :  { %4093 = vmatmul.mubr.bf16.vlgmr.msra.gmra.mxu1 %v7036_v21  ;;  %4036 = vmatpush2.bf16.msra.mxu0 %v8654_v7  ;;  %v7199_v7 = vld [vmem:[#allocation10 + $0x2a4] ss:$16 sps:$4 sm:$0xff]  }
 0x47a   :  { %4037 = vmatprep.subr.bf16.mxu0 %v8655_v15  ;;  %4202 = vmatpush1.bf16.msra.mxu1 %v7187_v55  ;;  %8661 = vst [vmem:[#allocation150_spill] sm:$0xff] %v7199_v7  ;;  %v8662_v15 = vld [vmem:[#allocation107_spill] sm:$0xff]  ;;  %v8663_v55 = vld [vmem:[#allocation109_spill] sm:$0xff] }
 0x47b   :  { %4203 = vmatprep.subr.bf16.mxu1 %v7190_v45  ;;  %4233 = vmatprep.mubr.bf16.mxu1 %v8221_v19  ;;  %v7207_v45 = vld [vmem:[#allocation10 + $0x284] ss:$16 sps:$4 sm:$0xff]  }
 0x47c   :  { %8665 = vst [vmem:[#allocation152_spill] sm:$0xff] %v7207_v45 }
 0x47d   :  { %4038 = vmatpush2.bf16.msra.mxu0 %v8658_v54  ;;  %v8667_v54 = vld [vmem:[#allocation115_spill] sm:$0xff] }
 0x47e   :  { %4039 = vmatprep.subr.bf16.mxu0 %v8659_v57  ;;  %4204 = vmatpush1.bf16.msra.mxu1 %v7196_v49  ;;  %v8666_v57 = vld [vmem:[#allocation112_spill] sm:$0xff]  ;;  %v7212_v49 = vld [vmem:[#allocation10 + $0x280] ss:$16 sps:$4 sm:$0xff]  }
 0x47f   :  { %4205 = vmatprep.subr.bf16.mxu1 %v7199_v7  ;;  %8668 = vst [vmem:[#allocation153_spill] sm:$0xff] %v7212_v49  ;;  %v7215_v7 = vld [vmem:[#allocation10 + $0x264] ss:$16 sps:$4 sm:$0xff]  }
 0x480   :  { %8669 = vst [vmem:[#allocation154_spill] sm:$0xff] %v7215_v7 }
 0x481   :  { %4040 = vmatpush2.bf16.msra.mxu0 %v8662_v15  ;;  %v8671_v15 = vld [vmem:[#allocation120_spill] sm:$0xff] }
 0x482   :  { %4041 = vmatprep.subr.bf16.mxu0 %v8663_v55  ;;  %4206 = vmatpush1.bf16.msra.mxu1 %v7204_v60  ;;  %v8670_v55 = vld [vmem:[#allocation118_spill] sm:$0xff]  ;;  %v7220_v60 = vld [vmem:[#allocation10 + $0x260] ss:$16 sps:$4 sm:$0xff]  }
 0x483   :  { %4207 = vmatprep.subr.bf16.mxu1 %v7207_v45  ;;  %8672 = vst [vmem:[#allocation159_spill] sm:$0xff] %v7220_v60  ;;  %v7223_v45 = vld [vmem:[#allocation10 + $0x244] ss:$16 sps:$4 sm:$0xff]  }
 0x484   :  { %8673 = vst [vmem:[#allocation162_spill] sm:$0xff] %v7223_v45 }
 0x485   :  { %4042 = vmatpush2.bf16.msra.mxu0 %v8666_v57  ;;  %v8675_v57 = vld [vmem:[#allocation126_spill] sm:$0xff] }
 0x486   :  { %4043 = vmatprep.subr.bf16.mxu0 %v8667_v54  ;;  %4208 = vmatpush1.bf16.msra.mxu1 %v7212_v49  ;;  %v8674_v54 = vld [vmem:[#allocation124_spill] sm:$0xff]  ;;  %v7228_v49 = vld [vmem:[#allocation10 + $0x240] ss:$16 sps:$4 sm:$0xff]  }
 0x487   :  { %4209 = vmatprep.subr.bf16.mxu1 %v7215_v7  ;;  %8676 = vst [vmem:[#allocation163_spill] sm:$0xff] %v7228_v49  ;;  %v7231_v7 = vld [vmem:[#allocation10 + $0x224] ss:$16 sps:$4 sm:$0xff]  }
 0x488   :  { %8677 = vst [vmem:[#allocation166_spill] sm:$0xff] %v7231_v7 }
 0x489   :  { %4044 = vmatpush2.bf16.msra.mxu0 %v8670_v55  ;;  %v8679_v55 = vld [vmem:[#allocation131_spill] sm:$0xff] }
 0x48a   :  { %4045 = vmatprep.subr.bf16.mxu0 %v8671_v15  ;;  %4210 = vmatpush1.bf16.msra.mxu1 %v7220_v60  ;;  %v8678_v15 = vld [vmem:[#allocation129_spill] sm:$0xff] }
 0x48b   :  { %4211 = vmatprep.subr.bf16.mxu1 %v7223_v45  ;;  %v7236_v60 = vld [vmem:[#allocation10 + $0x220] ss:$16 sps:$4 sm:$0xff]   ;;  %v7239_v45 = vld [vmem:[#allocation10 + $0x204] ss:$16 sps:$4 sm:$0xff]  }
 0x48c   :  { %8680 = vst [vmem:[#allocation167_spill] sm:$0xff] %v7236_v60  ;;  %8681 = vst [vmem:[#allocation170_spill] sm:$0xff] %v7239_v45 }
 0x48d   :  { %4046 = vmatpush2.bf16.msra.mxu0 %v8674_v54  ;;  %v7243_v54 = vld [vmem:[#allocation10 + $0x200] ss:$16 sps:$4 sm:$0xff]  }
 0x48e   :  { %4047 = vmatprep.subr.bf16.mxu0 %v8675_v57  ;;  %4212 = vmatpush1.bf16.msra.mxu1 %v7228_v49  ;;  %v8682_v57 = vld [vmem:[#allocation133_spill] sm:$0xff]  ;;  %8683 = vst [vmem:[#allocation172_spill] sm:$0xff] %v7243_v54 }
 0x48f   :  { %4213 = vmatprep.subr.bf16.mxu1 %v7231_v7  ;;  %v7246_v49 = vld [vmem:[#allocation10 + $0xe4] ss:$16 sps:$4 sm:$0xff]  }
 0x490   :  { %8684 = vst [vmem:[#allocation174_spill] sm:$0xff] %v7246_v49 }
 0x491   :  { %4048 = vmatpush2.bf16.msra.mxu0 %v8678_v15  ;;  %v7249_v15 = vld [vmem:[#allocation10 + $0xec] ss:$16 sps:$4 sm:$0xff]  }
 0x492   :  { %4049 = vmatprep.subr.bf16.mxu0 %v8679_v55  ;;  %4214 = vmatpush1.bf16.msra.mxu1 %v7236_v60  ;;  %8685 = vst [vmem:[#allocation176_spill] sm:$0xff] %v7249_v15  ;;  %v7253_v60 = vld [vmem:[#allocation10 + $0xe0] ss:$16 sps:$4 sm:$0xff]  }
 0x493   :  { %4215 = vmatprep.subr.bf16.mxu1 %v7239_v45  ;;  %8686 = vst [vmem:[#allocation178_spill] sm:$0xff] %v7253_v60  ;;  %v7256_v45 = vld [vmem:[#allocation10 + $0xc4] ss:$16 sps:$4 sm:$0xff]   ;;  %v7301_v55 = vld [vmem:[#allocation10 + $0x1e0] ss:$16 sps:$4 sm:$0xff]  }
 0x494   :  { %8687 = vst [vmem:[#allocation53_spill] sm:$0xff] %v7256_v45  ;;  %8702 = vst [vmem:[#allocation111_spill] sm:$0xff] %v7301_v55 }
 0x495   :  { %4050 = vmatpush2.bf16.msra.mxu0 %v8682_v57  ;;  %v7259_v57 = vld [vmem:[#allocation10 + $0xc0] ss:$16 sps:$4 sm:$0xff]  }
 0x496   :  { %4216 = vmatpush1.bf16.msra.mxu1 %v7243_v54  ;;  %4160 = vmatprep.subr.bf16.mxu0 %v7246_v49  ;;  %8688 = vst [vmem:[#allocation182_spill] sm:$0xff] %v7259_v57  ;;  %v7262_v54 = vld [vmem:[#allocation10 + $0xa4] ss:$16 sps:$4 sm:$0xff]   ;;  %v7265_v49 = vld [vmem:[#allocation10 + $0xa0] ss:$16 sps:$4 sm:$0xff]  }
 0x497   :  { %4242 = vmatprep.subr.bf16.mxu1 %v7249_v15  ;;  %8689 = vst [vmem:[#allocation190_spill] sm:$0xff] %v7262_v54  ;;  %8690 = vst [vmem:[#allocation192_spill] sm:$0xff] %v7265_v49 }
 0x498   :  { %4052 = vmatmul.mubr.bf16.vlgmr.msra.gmra.mxu0 %v7036_v21  ;;  %v7268_v21 = vld [vmem:[#allocation10 + $0x84] ss:$16 sps:$4 sm:$0xff]  }
 0x499   :  { %4161 = vmatpush1.bf16.msra.mxu0 %v7253_v60  ;;  %8691 = vst [vmem:[#allocation195_spill] sm:$0xff] %v7268_v21  ;;  %v7271_v60 = vld [vmem:[#allocation10 + $0x80] ss:$16 sps:$4 sm:$0xff]  }
 0x49a   :  { %4162 = vmatprep.subr.bf16.mxu0 %v7256_v45  ;;  %8692 = vst [vmem:[#allocation197_spill] sm:$0xff] %v7271_v60  ;;  %v7274_v45 = vld [vmem:[#allocation10 + $0x64] ss:$16 sps:$4 sm:$0xff]  }
 0x49b   :  { %8693 = vst [vmem:[#allocation199_spill] sm:$0xff] %v7274_v45 }
 0x49d   :  { %4163 = vmatpush1.bf16.msra.mxu0 %v7259_v57  ;;  %v7277_v57 = vld [vmem:[#allocation10 + $0x60] ss:$16 sps:$4 sm:$0xff]  }
 0x49e   :  { %4164 = vmatprep.subr.bf16.mxu0 %v7262_v54  ;;  %8694 = vst [vmem:[#allocation201_spill] sm:$0xff] %v7277_v57  ;;  %v7280_v54 = vld [vmem:[#allocation10 + $0x44] ss:$16 sps:$4 sm:$0xff]  }
 0x49f   :  { %8695 = vst [vmem:[#allocation203_spill] sm:$0xff] %v7280_v54 }
 0x4a1   :  { %4165 = vmatpush1.bf16.msra.mxu0 %v7265_v49  ;;  %v7283_v49 = vld [vmem:[#allocation10 + $0x40] ss:$16 sps:$4 sm:$0xff]  }
 0x4a2   :  { %4166 = vmatprep.subr.bf16.mxu0 %v7268_v21  ;;  %8696 = vst [vmem:[#allocation205_spill] sm:$0xff] %v7283_v49  ;;  %v7286_v21 = vld [vmem:[#allocation10 + $0x24] ss:$16 sps:$4 sm:$0xff]  }
 0x4a3   :  { %8697 = vst [vmem:[#allocation207_spill] sm:$0xff] %v7286_v21 }
 0x4a5   :  { %4167 = vmatpush1.bf16.msra.mxu0 %v7271_v60  ;;  %v7289_v60 = vld [vmem:[#allocation10 + $0x20] ss:$16 sps:$4 sm:$0xff]  }
 0x4a6   :  { %4168 = vmatprep.subr.bf16.mxu0 %v7274_v45  ;;  %8698 = vst [vmem:[#allocation209_spill] sm:$0xff] %v7289_v60  ;;  %v7292_v45 = vld [vmem:[#allocation10 + $0x4] ss:$16 sps:$4 sm:$0xff]  }
 0x4a7   :  { %8699 = vst [vmem:[#allocation211_spill] sm:$0xff] %v7292_v45 }
 0x4a9   :  { %4169 = vmatpush1.bf16.msra.mxu0 %v7277_v57  ;;  %v7295_v57 = vld [vmem:[#allocation10] ss:$16 sps:$4 sm:$0xff]  }
 0x4aa   :  { %4170 = vmatprep.subr.bf16.mxu0 %v7280_v54  ;;  %8700 = vst [vmem:[#allocation213_spill] sm:$0xff] %v7295_v57  ;;  %v7298_v54 = vld [vmem:[#allocation10 + $0x1e4] ss:$16 sps:$4 sm:$0xff]  }
 0x4ab   :  { %8701 = vst [vmem:[#allocation215_spill] sm:$0xff] %v7298_v54 }
 0x4ad   :  { %4171 = vmatpush1.bf16.msra.mxu0 %v7283_v49 }
 0x4ae   :  { %4172 = vmatprep.subr.bf16.mxu0 %v7286_v21  ;;  %v8703_v21 = vld [vmem:[#allocation135_spill] sm:$0xff] }
 0x4b1   :  { %4173 = vmatpush1.bf16.msra.mxu0 %v7289_v60 }
 0x4b2   :  { %4174 = vmatprep.subr.bf16.mxu0 %v7292_v45  ;;  %v8705_v45 = vld [vmem:[#allocation136_spill] sm:$0xff] }
 0x4b5   :  { %4175 = vmatpush1.bf16.msra.mxu0 %v7295_v57 }
 0x4b6   :  { %4176 = vmatprep.subr.bf16.mxu0 %v7298_v54 }
 0x4b8   :  { %v3783_v49 = vpop.f32.mrf.mxu0  ;;  %v3865_v15 = vpop.f32.mrf.mxu1 }
 0x4b9   :  { %4177 = vmatpush2.bf16.msra.mxu0 %v7301_v55  ;;  %v3784_v60 = vadd.f32 %v3783_v49, %v8703_v21  ;;  %v7314_v21 = vld [vmem:[#allocation10 + $0x1a4] ss:$16 sps:$4 sm:$0xff]  }
 0x4ba   :  { %v3785_v7 = vpop.f32.mrf.mxu0  ;;  %v3867_v25 = vpop.f32.mrf.mxu1  ;;  %4178 = vmatprep.subr.bf16.mxu0 %v7305_v38  ;;  %8707 = vst [vmem:[#allocation165_spill] sm:$0xff] %v7314_v21  ;;  %v7317_v38 = vld [vmem:[#allocation10 + $0x1a0] ss:$16 sps:$4 sm:$0xff]  }
 0x4bb   :  { %v3786_v57 = vadd.f32 %v3785_v7, %v8705_v45  ;;  %v3825_v55 = vadd.f32 %v7109_v47, %v3784_v60  ;;  %8708 = vst [vmem:[#allocation168_spill] sm:$0xff] %v7317_v38  ;;  %v7320_v7 = vld [vmem:[#allocation10 + $0x184] ss:$16 sps:$4 sm:$0xff]   ;;  %v7335_v47 = vld [vmem:[#allocation10 + $0x140] ss:$16 sps:$4 sm:$0xff]  }
 0x4bc   :  { %v3787_v3 = vpop.f32.mrf.mxu0  ;;  %v3869_v27 = vpop.f32.mrf.mxu1  ;;  %8709 = vst [vmem:[#allocation169_spill] sm:$0xff] %v7320_v7  ;;  %v7332_v60 = vld [vmem:[#allocation10 + $0x144] ss:$16 sps:$4 sm:$0xff]   ;;  %8714 = vst [vmem:[#allocation179_spill] sm:$0xff] %v7335_v47 }
 0x4bd   :  { %v3827_v54 = vadd.f32 %v7114_v53, %v3786_v57  ;;  %4179 = vmatpush2.bf16.msra.mxu0 %v7310_v9  ;;  %v5220_v27 = vmul.f32 -1.442695, %v3825_v55  ;;  %v7323_v57 = vld [vmem:[#allocation10 + $0x180] ss:$16 sps:$4 sm:$0xff]   ;;  %8713 = vst [vmem:[#allocation177_spill] sm:$0xff] %v7332_v60 }
 0x4be   :  { %v3788_v11 = vpop.f32.mrf.mxu0  ;;  %v3870_v49 = vpop.f32.mrf.mxu1  ;;  %4180 = vmatprep.subr.bf16.mxu0 %v7314_v21  ;;  %8710 = vst [vmem:[#allocation171_spill] sm:$0xff] %v7323_v57  ;;  %v7341_v53 = vld [vmem:[#allocation10 + $0x120] ss:$16 sps:$4 sm:$0xff]   ;;  %v7344_v55 = vld [vmem:[#allocation10 + $0x104] ss:$16 sps:$4 sm:$0xff]  }
 0x4bf   :  { %v5221_v17 = vmul.f32 -1.442695, %v3827_v54  ;;  %v7326_v11 = vld [vmem:[#allocation10 + $0x164] ss:$16 sps:$4 sm:$0xff]   ;;  %v7329_v54 = vld [vmem:[#allocation10 + $0x160] ss:$16 sps:$4 sm:$0xff]  }
 0x4c0   :  { %8711 = vst [vmem:[#allocation173_spill] sm:$0xff] %v7326_v11  ;;  %8712 = vst [vmem:[#allocation175_spill] sm:$0xff] %v7329_v54 }
 0x4c1   :  { %4181 = vmatpush2.bf16.msra.mxu0 %v7317_v38  ;;  %5487 = vpow2.f32 %v5221_v17  ;;  %v7338_v17 = vld [vmem:[#allocation10 + $0x124] ss:$16 sps:$4 sm:$0xff]   ;;  %8716 = vst [vmem:[#allocation183_spill] sm:$0xff] %v7341_v53  ;;  %8717 = vst [vmem:[#allocation186_spill] sm:$0xff] %v7344_v55 }
 0x4c2   :  { %4182 = vmatprep.subr.bf16.mxu0 %v7320_v7  ;;  %5489 = vpow2.f32 %v5220_v27  ;;  %8715 = vst [vmem:[#allocation181_spill] sm:$0xff] %v7338_v17 }
 0x4c5   :  { %4183 = vmatpush2.bf16.msra.mxu0 %v7323_v57 }
 0x4c6   :  { %4184 = vmatprep.subr.bf16.mxu0 %v7326_v11 }
 0x4c9   :  { %4185 = vmatpush2.bf16.msra.mxu0 %v7329_v54  ;;  %v7350_v54 = vld [vmem:[#allocation10 + $0x2ec] ss:$16 sps:$4 sm:$0xff]  }
 0x4ca   :  { %4186 = vmatprep.subr.bf16.mxu0 %v7332_v60  ;;  %v7347_v60 = vld [vmem:[#allocation10 + $0x100] ss:$16 sps:$4 sm:$0xff]   ;;  %8719 = vst [vmem:[#allocation191_spill] sm:$0xff] %v7350_v54 }
 0x4cb   :  { %8718 = vst [vmem:[#allocation187_spill] sm:$0xff] %v7347_v60 }
 0x4cd   :  { %4187 = vmatpush2.bf16.msra.mxu0 %v7335_v47 }
 0x4ce   :  { %4188 = vmatprep.subr.bf16.mxu0 %v7338_v17  ;;  %v5488_v3 = vpop.eup %5487  ;;  %v8720_v17 = vld [vmem:[#allocation137_spill] sm:$0xff] }
 0x4cf   :  { %v5490_v49 = vpop.eup %5489  ;;  %v3922_v27 = vadd.f32 1.0, %v5488_v3  ;;  %v3866_v11 = vadd.f32 %v3865_v15, %v8720_v17 }
 0x4d0   :  { %v3916_v47 = vadd.f32 1.0, %v5490_v49 }
 0x4d1   :  { %4189 = vmatpush2.bf16.msra.mxu0 %v7341_v53  ;;  %5491 = vrcp.f32 %v3922_v27  ;;  %v8721_v53 = vld [vmem:[#allocation138_spill] sm:$0xff] }
 0x4d2   :  { %4190 = vmatprep.subr.bf16.mxu0 %v7344_v55  ;;  %v3868_v7 = vadd.f32 %v3867_v25, %v8721_v53  ;;  %5493 = vrcp.f32 %v3916_v47 }
 0x4d5   :  { %4191 = vmatpush2.bf16.msra.mxu0 %v7347_v60 }
 0x4d6   :  { %4283 = vmatprep.subr.bf16.mxu0 %v7350_v54 }
 0x4d8   :  { %v3906_v57 = vpop.f32.mrf.mxu0 }
 0x4d9   :  { %v3907_v38 = vadd.f32 %v3906_v57, %v3866_v11  ;;  %v8725_v57 = vld [vmem:[#allocation121_spill] sm:$0xff] }
 0x4da   :  { %v3908_v55 = vpop.f32.mrf.mxu0 }
 0x4db   :  { %5495 = vtanh.f32 %v3907_v38  ;;  %v3909_v3 = vadd.f32 %v3908_v55, %v3868_v7  ;;  %v8724_v38 = vld [vmem:[#allocation117_spill] sm:$0xff]  ;;  %v8729_v55 = vld [vmem:[#allocation143_spill] sm:$0xff] }
 0x4dc   :  { %v3910_v21 = vpop.f32.mrf.mxu0 }
 0x4dd   :  { %v5222_v9 = vmul.f32 -1.442695, %v3909_v3  ;;  %v8730_v3 = vld [vmem:[#allocation144_spill] sm:$0xff] }
 0x4de   :  { %v3911_v45 = vpop.f32.mrf.mxu0  ;;  %v5492_v49 = vpop.eup %5491 }
 0x4df   :  { %5497 = vpow2.f32 %v5222_v9  ;;  %v5494_v60 = vpop.eup %5493  ;;  %v3932_v54 = vmul.f32 %v5492_v49, %v8722_v50  ;;  %v8731_v49 = vld [vmem:[#allocation145_spill] sm:$0xff] }
 0x4e8   :  { %v5496_v1 = vpop.eup %5495 }
 0x4e9   :  { %v3933_v37 = vmul.f32 %v5496_v1, %v5494_v60  ;;  %v8727_v60 = vld [vmem:[#allocation141_spill] sm:$0xff] }
 0x4eb   :  { %v7356_v15 = vadd.f32 %v3933_v37, %v3932_v54  ;;  %v8726_v54 = vld [vmem:[#allocation140_spill] sm:$0xff] }
 0x4ec   :  { %v5498_v27 = vpop.eup %5497 }
 0x4ed   :  { %8723 = vst [vmem:[#allocation193_spill] sm:$0xff] %v7356_v15  ;;  %v3929_v17 = vadd.f32 1.0, %v5498_v27  ;;  %5499 = vtanh.f32 %v7356_v15  ;;  %v7374_v27 = vld [vmem:[#allocation10 + $0x88] ss:$16 sps:$4 sm:$0xff]  }
 0x4ee   :  { %8732 = vst [vmem:[#allocation196_spill] sm:$0xff] %v7374_v27 }
 0x4ef   :  { %5501 = vrcp.f32 %v3929_v17  ;;  %v8728_v17 = vld [vmem:[#allocation142_spill] sm:$0xff] }
 0x4f9   :  { %v4012_v25 = vpop.f32.mrf.mxu1 }
 0x4fa   :  { %v7360_v7 = vadd.f32 %v4012_v25, %v8724_v38  ;;  %v5500_v21 = vpop.eup %5499  ;;  %v7377_v25 = vld [vmem:[#allocation10 + $0x6c] ss:$16 sps:$4 sm:$0xff]   ;;  %v7380_v38 = vld [vmem:[#allocation10 + $0x68] ss:$16 sps:$4 sm:$0xff]  }
 0x4fb   :  { %v4014_v45 = vpop.f32.mrf.mxu1  ;;  %8733 = vst [vmem:[#allocation198_spill] sm:$0xff] %v7377_v25  ;;  %8734 = vst [vmem:[#allocation200_spill] sm:$0xff] %v7380_v38 }
 0x4fc   :  { %v5502_v9 = vpop.eup %5501  ;;  %v7363_v11 = vadd.f32 %v4014_v45, %v8725_v57  ;;  %v7386_v45 = vld [vmem:[#allocation10 + $0x48] ss:$16 sps:$4 sm:$0xff]  }
 0x4fd   :  { %v4016_v47 = vpop.f32.mrf.mxu1  ;;  %v3936_v50 = vmul.f32 %v5502_v9, %v5500_v21  ;;  %v7383_v21 = vld [vmem:[#allocation10 + $0x4c] ss:$16 sps:$4 sm:$0xff]   ;;  %8736 = vst [vmem:[#allocation204_spill] sm:$0xff] %v7386_v45 }
 0x4fe   :  { %8735 = vst [vmem:[#allocation202_spill] sm:$0xff] %v7383_v21  ;;  %v7389_v9 = vld [vmem:[#allocation10 + $0x2c] ss:$16 sps:$4 sm:$0xff]  }
 0x4ff   :  { %v4017_v1 = vpop.f32.mrf.mxu1  ;;  %v7365_v37 = vpack.c.bf16 %v3936_v50, %v3936_v50  ;;  %8737 = vst [vmem:[#allocation206_spill] sm:$0xff] %v7389_v9  ;;  %v7392_v50 = vld [vmem:[#allocation10 + $0x28] ss:$16 sps:$4 sm:$0xff]  }
 0x500   :  { %8738 = vst [vmem:[#allocation208_spill] sm:$0xff] %v7392_v50  ;;  %v7395_v1 = vld [vmem:[#allocation10 + $0xc] ss:$16 sps:$4 sm:$0xff]  }
 0x501   :  { %4234 = vmatmul.mubr.bf16.vlgmr.msra.gmra.mxu1 %v7365_v37  ;;  %8739 = vst [vmem:[#allocation210_spill] sm:$0xff] %v7395_v1 }
 0x502   :  { %4243 = vmatpush1.bf16.msra.mxu1 %v8726_v54 }
 0x503   :  { %4244 = vmatprep.subr.bf16.mxu1 %v8727_v60 }
 0x506   :  { %4245 = vmatpush1.bf16.msra.mxu1 %v8728_v17  ;;  %v7398_v17 = vld [vmem:[#allocation10 + $0x8] ss:$16 sps:$4 sm:$0xff]  }
 0x507   :  { %4246 = vmatprep.subr.bf16.mxu1 %v8729_v55  ;;  %8740 = vst [vmem:[#allocation212_spill] sm:$0xff] %v7398_v17  ;;  %v7401_v55 = vld [vmem:[#allocation10 + $0x1ec] ss:$16 sps:$4 sm:$0xff]  }
 0x508   :  { %8741 = vst [vmem:[#allocation73_spill] sm:$0xff] %v7401_v55 }
 0x50a   :  { %4247 = vmatpush1.bf16.msra.mxu1 %v8730_v3  ;;  %v7404_v3 = vld [vmem:[#allocation10 + $0x1e8] ss:$16 sps:$4 sm:$0xff]  }
 0x50b   :  { %4248 = vmatprep.subr.bf16.mxu1 %v8731_v49  ;;  %8742 = vst [vmem:[#allocation214_spill] sm:$0xff] %v7404_v3  ;;  %v7407_v49 = vld [vmem:[#allocation10 + $0x1cc] ss:$16 sps:$4 sm:$0xff]  }
 0x50c   :  { %8743 = vst [vmem:[#allocation75_spill] sm:$0xff] %v7407_v49 }
 0x50e   :  { %4249 = vmatpush1.bf16.msra.mxu1 %v7374_v27 }
 0x50f   :  { %4250 = vmatprep.subr.bf16.mxu1 %v7377_v25 }
 0x512   :  { %4251 = vmatpush1.bf16.msra.mxu1 %v7380_v38  ;;  %v8758_v38 = vld [vmem:[#allocation16_spill] sm:$0xff] }
 0x513   :  { %4252 = vmatprep.subr.bf16.mxu1 %v7383_v21 }
 0x516   :  { %4253 = vmatpush1.bf16.msra.mxu1 %v7386_v45  ;;  %v5225_v45 = vmul.f32 -1.442695, %v7360_v7  ;;  %v8760_v7 = vld [vmem:[#allocation185_spill] sm:$0xff] }
 0x517   :  { %4254 = vmatprep.subr.bf16.mxu1 %v7389_v9 }
 0x518   :  { %v3971_v57 = vpop.f32.mrf.mxu0  ;;  %5503 = vpow2.f32 %v5225_v45 }
 0x51a   :  { %v3973_v47 = vpop.f32.mrf.mxu0  ;;  %4255 = vmatpush1.bf16.msra.mxu1 %v7392_v50  ;;  %v7410_v50 = vld [vmem:[#allocation10 + $0x1c8] ss:$16 sps:$4 sm:$0xff]  }
 0x51b   :  { %4256 = vmatprep.subr.bf16.mxu1 %v7395_v1  ;;  %8744 = vst [vmem:[#allocation180_spill] sm:$0xff] %v7410_v50  ;;  %v7443_v1 = vld [vmem:[#allocation10 + $0x10c] ss:$16 sps:$4 sm:$0xff]  }
 0x51c   :  { %v3975_v54 = vpop.f32.mrf.mxu0  ;;  %8755 = vst [vmem:[#allocation20_spill] sm:$0xff] %v7443_v1 }
 0x51d   :  { %v7413_v54 = vld [vmem:[#allocation10 + $0x1ac] ss:$16 sps:$4 sm:$0xff]  }
 0x51e   :  { %v3976_v60 = vpop.f32.mrf.mxu0  ;;  %4257 = vmatpush1.bf16.msra.mxu1 %v7398_v17  ;;  %8745 = vst [vmem:[#allocation184_spill] sm:$0xff] %v7413_v54  ;;  %v7440_v17 = vld [vmem:[#allocation10 + $0x128] ss:$16 sps:$4 sm:$0xff]  }
 0x51f   :  { %4258 = vmatprep.subr.bf16.mxu1 %v7401_v55  ;;  %v7416_v60 = vld [vmem:[#allocation10 + $0x1a8] ss:$16 sps:$4 sm:$0xff]   ;;  %v7419_v55 = vld [vmem:[#allocation10 + $0x18c] ss:$16 sps:$4 sm:$0xff]   ;;  %8754 = vst [vmem:[#allocation39_spill] sm:$0xff] %v7440_v17 }
 0x520   :  { %8746 = vst [vmem:[#allocation155_spill] sm:$0xff] %v7416_v60  ;;  %8747 = vst [vmem:[#allocation156_spill] sm:$0xff] %v7419_v55 }
 0x522   :  { %4259 = vmatpush2.bf16.msra.mxu1 %v7404_v3  ;;  %v7422_v3 = vld [vmem:[#allocation10 + $0x188] ss:$16 sps:$4 sm:$0xff]  }
 0x523   :  { %4260 = vmatprep.subr.bf16.mxu1 %v7407_v49  ;;  %8748 = vst [vmem:[#allocation33_spill] sm:$0xff] %v7422_v3  ;;  %v7425_v49 = vld [vmem:[#allocation10 + $0x16c] ss:$16 sps:$4 sm:$0xff]  }
 0x524   :  { %8749 = vst [vmem:[#allocation17_spill] sm:$0xff] %v7425_v49 }
 0x526   :  { %4261 = vmatpush2.bf16.msra.mxu1 %v7410_v50  ;;  %v7428_v50 = vld [vmem:[#allocation10 + $0x168] ss:$16 sps:$4 sm:$0xff]  }
 0x527   :  { %4262 = vmatprep.subr.bf16.mxu1 %v7413_v54  ;;  %8750 = vst [vmem:[#allocation35_spill] sm:$0xff] %v7428_v50  ;;  %v7431_v54 = vld [vmem:[#allocation10 + $0x14c] ss:$16 sps:$4 sm:$0xff]  }
 0x528   :  { %8751 = vst [vmem:[#allocation18_spill] sm:$0xff] %v7431_v54 }
 0x52a   :  { %4263 = vmatpush2.bf16.msra.mxu1 %v7416_v60  ;;  %v7434_v60 = vld [vmem:[#allocation10 + $0x148] ss:$16 sps:$4 sm:$0xff]  }
 0x52b   :  { %4264 = vmatprep.subr.bf16.mxu1 %v7419_v55  ;;  %8752 = vst [vmem:[#allocation37_spill] sm:$0xff] %v7434_v60  ;;  %v7437_v55 = vld [vmem:[#allocation10 + $0x12c] ss:$16 sps:$4 sm:$0xff]  }
 0x52c   :  { %8753 = vst [vmem:[#allocation19_spill] sm:$0xff] %v7437_v55 }
 0x52e   :  { %4265 = vmatpush2.bf16.msra.mxu1 %v7422_v3 }
 0x52f   :  { %4266 = vmatprep.subr.bf16.mxu1 %v7425_v49 }
 0x532   :  { %4267 = vmatpush2.bf16.msra.mxu1 %v7428_v50  ;;  %v8756_v50 = vld [vmem:[#allocation79_spill] sm:$0xff] }
 0x533   :  { %4268 = vmatprep.subr.bf16.mxu1 %v7431_v54  ;;  %v4101_v54 = vadd.f32 %v3971_v57, %v8756_v50 }
 0x535   :  { %v5223_v27 = vmul.f32 -1.442695, %v4101_v54 }
 0x536   :  { %4269 = vmatpush2.bf16.msra.mxu1 %v7434_v60  ;;  %v7448_v60 = vld [vmem:[#allocation10 + $0x108] ss:$16 sps:$4 sm:$0xff]  }
 0x537   :  { %4270 = vmatprep.subr.bf16.mxu1 %v7437_v55  ;;  %8757 = vst [vmem:[#allocation41_spill] sm:$0xff] %v7448_v60  ;;  %v5226_v55 = vmul.f32 -1.442695, %v7363_v11 }
 0x539   :  { %v4094_v3 = vpop.f32.mrf.mxu1  ;;  %5505 = vpow2.f32 %v5226_v55  ;;  %v8763_v55 = vld [vmem:[#allocation158_spill] sm:$0xff] }
 0x53a   :  { %4271 = vmatpush2.bf16.msra.mxu1 %v7440_v17  ;;  %v8759_v17 = vld [vmem:[#allocation81_spill] sm:$0xff]  ;;  %5507 = vpow2.f32 %v5223_v27  ;;  %v4107_v50 = vadd.f32 %v4094_v3, %v8760_v7 }
 0x53b   :  { %v4096_v49 = vpop.f32.mrf.mxu1  ;;  %4272 = vmatprep.subr.bf16.mxu1 %v7443_v1  ;;  %v4102_v25 = vadd.f32 %v3973_v47, %v8759_v17  ;;  %v8762_v27 = vld [vmem:[#allocation157_spill] sm:$0xff] }
 0x53d   :  { %v4098_v9 = vpop.f32.mrf.mxu1  ;;  %v5224_v1 = vmul.f32 -1.442695, %v4102_v25 }
 0x53e   :  { %4273 = vmatpush2.bf16.msra.mxu1 %v7448_v60  ;;  %v5504_v9 = vpop.eup %5503  ;;  %v8761_v60 = vld [vmem:[#allocation188_spill] sm:$0xff] }
 0x53f   :  { %v4099_v21 = vpop.f32.mrf.mxu1  ;;  %4389 = vmatprep.subr.bf16.mxu1 %v8758_v38  ;;  %5509 = vpow2.f32 %v5224_v1  ;;  %v4127_v53 = vadd.f32 1.0, %v5504_v9  ;;  %v4108_v0 = vadd.f32 %v4096_v49, %v8761_v60 }
 0x540   :  { %v5227_v21 = vmul.f32 -1.442695, %v4107_v50 }
 0x541   :  { %5511 = vrcp.f32 %v4127_v53  ;;  %v5228_v47 = vmul.f32 -1.442695, %v4108_v0 }
 0x546   :  { %v5506_v57 = vpop.eup %5505 }
 0x547   :  { %v5508_v15 = vpop.eup %5507  ;;  %v4128_v11 = vadd.f32 1.0, %v5506_v57 }
 0x548   :  { %v4115_v38 = vadd.f32 1.0, %v5508_v15 }
 0x549   :  { %5513 = vrcp.f32 %v4128_v11 }
 0x54a   :  { %5515 = vpow2.f32 %v5227_v21 }
 0x54b   :  { %5517 = vrcp.f32 %v4115_v38 }
 0x54c   :  { %v5510_v10 = vpop.eup %5509  ;;  %5519 = vpow2.f32 %v5228_v47 }
 0x54d   :  { %v4116_v45 = vadd.f32 1.0, %v5510_v10 }
 0x54e   :  { %v5512_v60 = vpop.eup %5511 }
 0x54f   :  { %v4147_v50 = vmul.f32 %v5512_v60, %v7027_v58 }
 0x556   :  { %v5514_v15 = vpop.eup %5513 }
 0x557   :  { %v5516_v53 = vpop.eup %5515 }
 0x558   :  { %v4053_v25 = vpop.f32.mrf.mxu0  ;;  %v5518_v0 = vpop.eup %5517  ;;  %v4141_v57 = vadd.f32 1.0, %v5516_v53  ;;  %v7484_v53 = vld [vmem:[#allocation10 + $0x2c8] ss:$16 sps:$4 sm:$0xff]  }
 0x559   :  { %v4105_v1 = vadd.f32 %v4053_v25, %v8762_v27  ;;  %v5520_v9 = vpop.eup %5519 }
 0x55a   :  { %v4055_v17 = vpop.f32.mrf.mxu0  ;;  %v4142_v38 = vadd.f32 1.0, %v5520_v9  ;;  %v7500_v9 = vld [vmem:[#allocation10 + $0x288] ss:$16 sps:$4 sm:$0xff]  }
 0x55b   :  { %5521 = vtanh.f32 %v4105_v1  ;;  %v4106_v3 = vadd.f32 %v4055_v17, %v8763_v55 }
 0x55c   :  { %5523 = vrcp.f32 %v4116_v45  ;;  %v4057_v49 = vpop.f32.mrf.mxu0  ;;  %v4148_v45 = vmul.f32 %v5514_v15, %v7031_v36  ;;  %v7474_v36 = vld [vmem:[#allocation10 + $0x2e8] ss:$16 sps:$4 sm:$0xff]   ;;  %v7479_v15 = vld [vmem:[#allocation10 + $0x2cc] ss:$16 sps:$4 sm:$0xff]  }
 0x55d   :  { %5525 = vtanh.f32 %v4106_v3 }
 0x55e   :  { %v4058_v54 = vpop.f32.mrf.mxu0  ;;  %5527 = vrcp.f32 %v4141_v57  ;;  %v8790_v57 = vld [vmem:[#allocation78_spill] sm:$0xff] }
 0x568   :  { %v5522_v10 = vpop.eup %5521 }
 0x569   :  { %v5524_v7 = vpop.eup %5523  ;;  %v4149_v11 = vmul.f32 %v5522_v10, %v5518_v0  ;;  %v7488_v0 = vld [vmem:[#allocation10 + $0x2ac] ss:$16 sps:$4 sm:$0xff]  }
 0x56a   :  { %v5526_v21 = vpop.eup %5525  ;;  %v8789_v10 = vld [vmem:[#allocation42_spill] sm:$0xff] }
 0x56b   :  { %v7459_v47 = vadd.f32 %v4149_v11, %v4147_v50  ;;  %v4150_v25 = vmul.f32 %v5526_v21, %v5524_v7  ;;  %v5528_v1 = vpop.eup %5527  ;;  %v8791_v7 = vld [vmem:[#allocation44_spill] sm:$0xff]  ;;  %v8792_v50 = vld [vmem:[#allocation82_spill] sm:$0xff] }
 0x56c   :  { %v8793_v11 = vld [vmem:[#allocation46_spill] sm:$0xff]  ;;  %v8794_v21 = vld [vmem:[#allocation84_spill] sm:$0xff] }
 0x56d   :  { %5529 = vtanh.f32 %v7459_v47  ;;  %v7463_v27 = vadd.f32 %v4150_v25, %v4148_v45  ;;  %v8796_v45 = vld [vmem:[#allocation88_spill] sm:$0xff]  ;;  %v8797_v25 = vld [vmem:[#allocation50_spill] sm:$0xff] }
 0x56e   :  { %5531 = vrcp.f32 %v4142_v38  ;;  %v8795_v38 = vld [vmem:[#allocation48_spill] sm:$0xff] }
 0x56f   :  { %5533 = vtanh.f32 %v7463_v27 }
 0x57a   :  { %v5530_v17 = vpop.eup %5529 }
 0x57b   :  { %v5532_v55 = vpop.eup %5531  ;;  %v4155_v3 = vmul.f32 %v5530_v17, %v5528_v1  ;;  %v8798_v1 = vld [vmem:[#allocation90_spill] sm:$0xff]  ;;  %v8799_v17 = vld [vmem:[#allocation52_spill] sm:$0xff] }
 0x57c   :  { %v5534_v58 = vpop.eup %5533 }
 0x57d   :  { %v4156_v49 = vmul.f32 %v5534_v58, %v5532_v55  ;;  %v7468_v60 = vpack.c.bf16 %v4155_v3, %v4155_v3  ;;  %v8800_v55 = vld [vmem:[#allocation92_spill] sm:$0xff]  ;;  %v8801_v58 = vld [vmem:[#allocation55_spill] sm:$0xff]  ;;  %v8802_v3 = vld [vmem:[#allocation94_spill] sm:$0xff] }
 0x57f   :  { %v7466_v54 = vpack.c.bf16 %v4156_v49, %v4156_v49  ;;  %v8803_v49 = vld [vmem:[#allocation57_spill] sm:$0xff] }
 0x581   :  { %4192 = vmatprep.mubr.bf16.mxu0 %v7466_v54  ;;  %4274 = vmatprep.mubr.bf16.mxu1 %v7466_v54 }
 0x582   :  { %4193 = vmatmul.mubr.bf16.vlgmr.msra.gmra.mxu0 %v7468_v60  ;;  %4275 = vmatmul.mubr.bf16.vlgmr.msra.gmra.mxu1 %v7468_v60 }
 0x583   :  { %4284 = vmatpush1.bf16.msra.mxu0 %v7474_v36  ;;  %4390 = vmatpush1.bf16.msra.mxu1 %v5951_v42  ;;  %v7492_v42 = vld [vmem:[#allocation10 + $0x2a8] ss:$16 sps:$4 sm:$0xff]  }
 0x584   :  { %4421 = vmatprep.mubr.bf16.mxu1 %v7466_v54  ;;  %4285 = vmatprep.subr.bf16.mxu0 %v7479_v15 }
 0x585   :  { %4391 = vmatprep.subr.bf16.mxu1 %v5956_v44  ;;  %4315 = vmatprep.mubr.bf16.mxu0 %v8221_v19  ;;  %v7496_v44 = vld [vmem:[#allocation10 + $0x28c] ss:$16 sps:$4 sm:$0xff]  }
 0x587   :  { %4286 = vmatpush1.bf16.msra.mxu0 %v7484_v53  ;;  %4392 = vmatpush1.bf16.msra.mxu1 %v5963_v52  ;;  %v7504_v52 = vld [vmem:[#allocation10 + $0x26c] ss:$16 sps:$4 sm:$0xff]  }
 0x588   :  { %4287 = vmatprep.subr.bf16.mxu0 %v7488_v0  ;;  %4393 = vmatprep.subr.bf16.mxu1 %v5968_v13  ;;  %v7508_v13 = vld [vmem:[#allocation10 + $0x268] ss:$16 sps:$4 sm:$0xff]  }
 0x58b   :  { %4288 = vmatpush1.bf16.msra.mxu0 %v7492_v42  ;;  %4394 = vmatpush1.bf16.msra.mxu1 %v5976_v20  ;;  %v7512_v20 = vld [vmem:[#allocation10 + $0x24c] ss:$16 sps:$4 sm:$0xff]  }
 0x58c   :  { %4289 = vmatprep.subr.bf16.mxu0 %v7496_v44  ;;  %4395 = vmatprep.subr.bf16.mxu1 %v5981_v61  ;;  %v7516_v61 = vld [vmem:[#allocation10 + $0x248] ss:$16 sps:$4 sm:$0xff]  }
 0x58f   :  { %4290 = vmatpush1.bf16.msra.mxu0 %v7500_v9  ;;  %4396 = vmatpush1.bf16.msra.mxu1 %v5988_v6  ;;  %v7520_v6 = vld [vmem:[#allocation10 + $0x22c] ss:$16 sps:$4 sm:$0xff]  }
 0x590   :  { %4291 = vmatprep.subr.bf16.mxu0 %v7504_v52  ;;  %4397 = vmatprep.subr.bf16.mxu1 %v5993_v31  ;;  %v7524_v31 = vld [vmem:[#allocation10 + $0x228] ss:$16 sps:$4 sm:$0xff]  }
 0x593   :  { %4292 = vmatpush1.bf16.msra.mxu0 %v7508_v13  ;;  %4398 = vmatpush1.bf16.msra.mxu1 %v6002_v12  ;;  %v7528_v12 = vld [vmem:[#allocation10 + $0x20c] ss:$16 sps:$4 sm:$0xff]  }
 0x594   :  { %4293 = vmatprep.subr.bf16.mxu0 %v7512_v20  ;;  %4399 = vmatprep.subr.bf16.mxu1 %v6007_v59  ;;  %v7532_v59 = vld [vmem:[#allocation10 + $0x208] ss:$16 sps:$4 sm:$0xff]  }
 0x597   :  { %4294 = vmatpush1.bf16.msra.mxu0 %v7516_v61  ;;  %4400 = vmatpush1.bf16.msra.mxu1 %v6014_v22  ;;  %v8768_v22 = vld [vmem:[#allocation54_spill] sm:$0xff] }
 0x598   :  { %4295 = vmatprep.subr.bf16.mxu0 %v7520_v6  ;;  %4401 = vmatprep.subr.bf16.mxu1 %v6019_v24  ;;  %v8769_v24 = vld [vmem:[#allocation27_spill] sm:$0xff] }
 0x59b   :  { %4296 = vmatpush1.bf16.msra.mxu0 %v7524_v31  ;;  %4402 = vmatpush1.bf16.msra.mxu1 %v6026_v30  ;;  %v8770_v30 = vld [vmem:[#allocation56_spill] sm:$0xff] }
 0x59c   :  { %4297 = vmatprep.subr.bf16.mxu0 %v7528_v12  ;;  %4403 = vmatprep.subr.bf16.mxu1 %v6031_v33  ;;  %v8771_v33 = vld [vmem:[#allocation28_spill] sm:$0xff] }
 0x59f   :  { %4298 = vmatpush1.bf16.msra.mxu0 %v7532_v59  ;;  %4404 = vmatpush1.bf16.msra.mxu1 %v6038_v46  ;;  %v8772_v46 = vld [vmem:[#allocation58_spill] sm:$0xff] }
 0x5a0   :  { %4348 = vmatprep.subr.bf16.mxu0 %v5944_v34  ;;  %4405 = vmatprep.subr.bf16.mxu1 %v6043_v48  ;;  %v8764_v34 = vld [vmem:[#allocation49_spill] sm:$0xff] }
 0x5a1   :  { %v8773_v48 = vld [vmem:[#allocation29_spill] sm:$0xff] }
 0x5a2   :  { %4316 = vmatmul.mubr.bf16.vlgmr.msra.gmra.mxu0 %v7365_v37  ;;  %v8788_v37 = vld [vmem:[#allocation76_spill] sm:$0xff] }
 0x5a3   :  { %4349 = vmatpush1.bf16.msra.mxu0 %v5948_v41  ;;  %4380 = vmatprep.mubr.bf16.mxu0 %v7466_v54  ;;  %v8765_v41 = vld [vmem:[#allocation25_spill] sm:$0xff] }
 0x5a4   :  { %4406 = vmatpush2.bf16.msra.mxu1 %v6050_v56  ;;  %4350 = vmatprep.subr.bf16.mxu0 %v5953_v43  ;;  %v8766_v43 = vld [vmem:[#allocation51_spill] sm:$0xff] }
 0x5a5   :  { %4407 = vmatprep.subr.bf16.mxu1 %v6055_v62  ;;  %v8774_v62 = vld [vmem:[#allocation60_spill] sm:$0xff] }
 0x5a7   :  { %4351 = vmatpush1.bf16.msra.mxu0 %v5959_v51  ;;  %v8767_v51 = vld [vmem:[#allocation26_spill] sm:$0xff] }
 0x5a8   :  { %4408 = vmatpush2.bf16.msra.mxu1 %v8564_v2  ;;  %4352 = vmatprep.subr.bf16.mxu0 %v8565_v28  ;;  %v8775_v2 = vld [vmem:[#allocation30_spill] sm:$0xff] }
 0x5a9   :  { %4409 = vmatprep.subr.bf16.mxu1 %v8566_v32  ;;  %v8776_v32 = vld [vmem:[#allocation62_spill] sm:$0xff] }
 0x5ab   :  { %4353 = vmatpush1.bf16.msra.mxu0 %v8567_v40 }
 0x5ac   :  { %4410 = vmatpush2.bf16.msra.mxu1 %v8568_v26  ;;  %4354 = vmatprep.subr.bf16.mxu0 %v8569_v29  ;;  %v8777_v26 = vld [vmem:[#allocation31_spill] sm:$0xff]  ;;  %v8778_v29 = vld [vmem:[#allocation64_spill] sm:$0xff] }
 0x5ad   :  { %4411 = vmatprep.subr.bf16.mxu1 %v8570_v16  ;;  %v8779_v16 = vld [vmem:[#allocation32_spill] sm:$0xff] }
 0x5af   :  { %4355 = vmatpush1.bf16.msra.mxu0 %v8571_v14 }
 0x5b0   :  { %4412 = vmatpush2.bf16.msra.mxu1 %v8572_v18  ;;  %4356 = vmatprep.subr.bf16.mxu0 %v8573_v8  ;;  %v8780_v18 = vld [vmem:[#allocation66_spill] sm:$0xff] }
 0x5b1   :  { %4413 = vmatprep.subr.bf16.mxu1 %v8574_v4  ;;  %v8781_v8 = vld [vmem:[#allocation34_spill] sm:$0xff]  ;;  %v8782_v4 = vld [vmem:[#allocation68_spill] sm:$0xff] }
 0x5b3   :  { %4357 = vmatpush1.bf16.msra.mxu0 %v8575_v63  ;;  %v8783_v63 = vld [vmem:[#allocation36_spill] sm:$0xff] }
 0x5b4   :  { %4414 = vmatpush2.bf16.msra.mxu1 %v8576_v39  ;;  %4358 = vmatprep.subr.bf16.mxu0 %v8577_v23  ;;  %v8784_v39 = vld [vmem:[#allocation70_spill] sm:$0xff] }
 0x5b5   :  { %4415 = vmatprep.subr.bf16.mxu1 %v8578_v5  ;;  %v8785_v23 = vld [vmem:[#allocation38_spill] sm:$0xff]  ;;  %v8786_v5 = vld [vmem:[#allocation72_spill] sm:$0xff] }
 0x5b7   :  { %4359 = vmatpush1.bf16.msra.mxu0 %v8579_v35  ;;  %v8787_v35 = vld [vmem:[#allocation40_spill] sm:$0xff] }
 0x5b8   :  { %4416 = vmatpush2.bf16.msra.mxu1 %v8764_v34  ;;  %4360 = vmatprep.subr.bf16.mxu0 %v8765_v41  ;;  %v8804_v34 = vld [vmem:[#allocation96_spill] sm:$0xff]  ;;  %v8805_v41 = vld [vmem:[#allocation59_spill] sm:$0xff] }
 0x5b9   :  { %4417 = vmatprep.subr.bf16.mxu1 %v8766_v43  ;;  %v8806_v43 = vld [vmem:[#allocation98_spill] sm:$0xff] }
 0x5bb   :  { %4361 = vmatpush1.bf16.msra.mxu0 %v8767_v51  ;;  %v8807_v51 = vld [vmem:[#allocation61_spill] sm:$0xff] }
 0x5bc   :  { %4418 = vmatpush2.bf16.msra.mxu1 %v8768_v22  ;;  %4362 = vmatprep.subr.bf16.mxu0 %v8769_v24  ;;  %v8808_v22 = vld [vmem:[#allocation100_spill] sm:$0xff]  ;;  %v8809_v24 = vld [vmem:[#allocation63_spill] sm:$0xff] }
 0x5bd   :  { %4419 = vmatprep.subr.bf16.mxu1 %v8770_v30  ;;  %v8810_v30 = vld [vmem:[#allocation102_spill] sm:$0xff] }
 0x5bf   :  { %4363 = vmatpush1.bf16.msra.mxu0 %v8771_v33  ;;  %v8811_v33 = vld [vmem:[#allocation65_spill] sm:$0xff] }
 0x5c0   :  { %4420 = vmatpush2.bf16.msra.mxu1 %v8772_v46  ;;  %4364 = vmatprep.subr.bf16.mxu0 %v8773_v48  ;;  %v8812_v46 = vld [vmem:[#allocation104_spill] sm:$0xff]  ;;  %v8813_v48 = vld [vmem:[#allocation67_spill] sm:$0xff] }
 0x5c1   :  { %v7571_v56 = vpop.f32.mrf.mxu1  ;;  %4471 = vmatprep.subr.bf16.mxu1 %v8774_v62  ;;  %v8814_v62 = vld [vmem:[#allocation106_spill] sm:$0xff] }
 0x5c3   :  { %4422 = vmatmul.mubr.bf16.vlgmr.msra.gmra.mxu1 %v7468_v60  ;;  %4365 = vmatpush2.bf16.msra.mxu0 %v8775_v2  ;;  %v7576_v28 = vpop.f32.mrf.mxu1  ;;  %v8815_v2 = vld [vmem:[#allocation69_spill] sm:$0xff] }
 0x5c4   :  { %4472 = vmatpush1.bf16.msra.mxu1 %v8776_v32  ;;  %4503 = vmatprep.mubr.bf16.mxu1 %v7466_v54  ;;  %v8816_v32 = vld [vmem:[#allocation108_spill] sm:$0xff] }
 0x5c5   :  { %v4239_v40 = vpop.f32.mrf.mxu1  ;;  %4366 = vmatprep.subr.bf16.mxu0 %v8777_v26  ;;  %4473 = vmatprep.subr.bf16.mxu1 %v8778_v29  ;;  %v8819_v26 = vld [vmem:[#allocation74_spill] sm:$0xff]  ;;  %v8820_v29 = vld [vmem:[#allocation113_spill] sm:$0xff] }
 0x5c6   :  { %v8817_v40 = vld [vmem:[#allocation71_spill] sm:$0xff] }
 0x5c7   :  { %4367 = vmatpush2.bf16.msra.mxu0 %v8779_v16  ;;  %v4240_v14 = vpop.f32.mrf.mxu1  ;;  %v8821_v16 = vld [vmem:[#allocation77_spill] sm:$0xff] }
 0x5c8   :  { %4474 = vmatpush1.bf16.msra.mxu1 %v8780_v18  ;;  %4368 = vmatprep.subr.bf16.mxu0 %v8781_v8  ;;  %v8822_v14 = vld [vmem:[#allocation116_spill] sm:$0xff]  ;;  %v8824_v8 = vld [vmem:[#allocation119_spill] sm:$0xff] }
 0x5c9   :  { %4475 = vmatprep.subr.bf16.mxu1 %v8782_v4  ;;  %v8823_v18 = vld [vmem:[#allocation80_spill] sm:$0xff]  ;;  %v8825_v4 = vld [vmem:[#allocation83_spill] sm:$0xff] }
 0x5cb   :  { %4369 = vmatpush2.bf16.msra.mxu0 %v8783_v63  ;;  %v8826_v63 = vld [vmem:[#allocation122_spill] sm:$0xff] }
 0x5cc   :  { %4476 = vmatpush1.bf16.msra.mxu1 %v8784_v39  ;;  %4370 = vmatprep.subr.bf16.mxu0 %v8785_v23  ;;  %v8827_v39 = vld [vmem:[#allocation86_spill] sm:$0xff]  ;;  %v8828_v23 = vld [vmem:[#allocation125_spill] sm:$0xff] }
 0x5cd   :  { %4477 = vmatprep.subr.bf16.mxu1 %v8786_v5  ;;  %v8829_v5 = vld [vmem:[#allocation89_spill] sm:$0xff] }
 0x5cf   :  { %4371 = vmatpush2.bf16.msra.mxu0 %v8787_v35  ;;  %v8830_v35 = vld [vmem:[#allocation128_spill] sm:$0xff] }
 0x5d0   :  { %4478 = vmatpush1.bf16.msra.mxu1 %v8788_v37  ;;  %4372 = vmatprep.subr.bf16.mxu0 %v8789_v10  ;;  %v8831_v37 = vld [vmem:[#allocation91_spill] sm:$0xff]  ;;  %v8832_v10 = vld [vmem:[#allocation130_spill] sm:$0xff] }
 0x5d1   :  { %4479 = vmatprep.subr.bf16.mxu1 %v8790_v57  ;;  %v8833_v57 = vld [vmem:[#allocation93_spill] sm:$0xff] }
 0x5d3   :  { %4373 = vmatpush2.bf16.msra.mxu0 %v8791_v7  ;;  %v8834_v7 = vld [vmem:[#allocation132_spill] sm:$0xff] }
 0x5d4   :  { %4480 = vmatpush1.bf16.msra.mxu1 %v8792_v50  ;;  %4374 = vmatprep.subr.bf16.mxu0 %v8793_v11  ;;  %v8835_v50 = vld [vmem:[#allocation95_spill] sm:$0xff]  ;;  %v8836_v11 = vld [vmem:[#allocation134_spill] sm:$0xff] }
 0x5d5   :  { %4481 = vmatprep.subr.bf16.mxu1 %v8794_v21  ;;  %v8837_v21 = vld [vmem:[#allocation97_spill] sm:$0xff] }
 0x5d7   :  { %4375 = vmatpush2.bf16.msra.mxu0 %v8795_v38  ;;  %v8838_v38 = vld [vmem:[#allocation146_spill] sm:$0xff] }
 0x5d8   :  { %4482 = vmatpush1.bf16.msra.mxu1 %v8796_v45  ;;  %4376 = vmatprep.subr.bf16.mxu0 %v8797_v25  ;;  %v8839_v45 = vld [vmem:[#allocation99_spill] sm:$0xff]  ;;  %v8840_v25 = vld [vmem:[#allocation101_spill] sm:$0xff] }
 0x5d9   :  { %4483 = vmatprep.subr.bf16.mxu1 %v8798_v1  ;;  %v8841_v1 = vld [vmem:[#allocation147_spill] sm:$0xff] }
 0x5db   :  { %4377 = vmatpush2.bf16.msra.mxu0 %v8799_v17  ;;  %v8842_v17 = vld [vmem:[#allocation148_spill] sm:$0xff] }
 0x5dc   :  { %4484 = vmatpush1.bf16.msra.mxu1 %v8800_v55  ;;  %4378 = vmatprep.subr.bf16.mxu0 %v8801_v58  ;;  %v8843_v55 = vld [vmem:[#allocation103_spill] sm:$0xff]  ;;  %v8844_v58 = vld [vmem:[#allocation105_spill] sm:$0xff] }
 0x5dd   :  { %4485 = vmatprep.subr.bf16.mxu1 %v8802_v3  ;;  %v8845_v3 = vld [vmem:[#allocation149_spill] sm:$0xff] }
 0x5df   :  { %4379 = vmatpush2.bf16.msra.mxu0 %v8803_v49  ;;  %v8846_v49 = vld [vmem:[#allocation150_spill] sm:$0xff] }
 0x5e0   :  { %4486 = vmatpush1.bf16.msra.mxu1 %v8804_v34  ;;  %4430 = vmatprep.subr.bf16.mxu0 %v8805_v41  ;;  %v8847_v34 = vld [vmem:[#allocation107_spill] sm:$0xff]  ;;  %v8848_v41 = vld [vmem:[#allocation109_spill] sm:$0xff] }
 0x5e1   :  { %4487 = vmatprep.subr.bf16.mxu1 %v8806_v43  ;;  %v8849_v43 = vld [vmem:[#allocation151_spill] sm:$0xff] }
 0x5e2   :  { %4381 = vmatmul.mubr.bf16.vlgmr.msra.gmra.mxu0 %v7468_v60 }
 0x5e3   :  { %4431 = vmatpush1.bf16.msra.mxu0 %v8807_v51  ;;  %4462 = vmatprep.mubr.bf16.mxu0 %v7466_v54  ;;  %v8818_v54 = vld [vmem:[#allocation110_spill] sm:$0xff]  ;;  %v8850_v51 = vld [vmem:[#allocation152_spill] sm:$0xff] }
 0x5e4   :  { %4488 = vmatpush2.bf16.msra.mxu1 %v8808_v22  ;;  %4432 = vmatprep.subr.bf16.mxu0 %v8809_v24  ;;  %v8851_v22 = vld [vmem:[#allocation112_spill] sm:$0xff]  ;;  %v8852_v24 = vld [vmem:[#allocation115_spill] sm:$0xff] }
 0x5e5   :  { %4489 = vmatprep.subr.bf16.mxu1 %v8810_v30  ;;  %v8853_v30 = vld [vmem:[#allocation153_spill] sm:$0xff] }
 0x5e7   :  { %4433 = vmatpush1.bf16.msra.mxu0 %v8811_v33  ;;  %v8854_v33 = vld [vmem:[#allocation154_spill] sm:$0xff] }
 0x5e8   :  { %4490 = vmatpush2.bf16.msra.mxu1 %v8812_v46  ;;  %4434 = vmatprep.subr.bf16.mxu0 %v8813_v48  ;;  %v8855_v46 = vld [vmem:[#allocation118_spill] sm:$0xff]  ;;  %v8856_v48 = vld [vmem:[#allocation120_spill] sm:$0xff] }
 0x5e9   :  { %4491 = vmatprep.subr.bf16.mxu1 %v8814_v62  ;;  %v8857_v62 = vld [vmem:[#allocation159_spill] sm:$0xff] }
 0x5eb   :  { %4435 = vmatpush1.bf16.msra.mxu0 %v8815_v2  ;;  %v8858_v2 = vld [vmem:[#allocation162_spill] sm:$0xff] }
 0x5ec   :  { %4492 = vmatpush2.bf16.msra.mxu1 %v8816_v32  ;;  %4436 = vmatprep.subr.bf16.mxu0 %v8817_v40  ;;  %v8859_v32 = vld [vmem:[#allocation124_spill] sm:$0xff]  ;;  %v8860_v40 = vld [vmem:[#allocation126_spill] sm:$0xff] }
 0x5ed   :  { %4493 = vmatprep.subr.bf16.mxu1 %v8818_v54  ;;  %v8861_v54 = vld [vmem:[#allocation163_spill] sm:$0xff] }
 0x5ef   :  { %4437 = vmatpush1.bf16.msra.mxu0 %v8819_v26  ;;  %v8862_v26 = vld [vmem:[#allocation166_spill] sm:$0xff] }
 0x5f0   :  { %4494 = vmatpush2.bf16.msra.mxu1 %v8820_v29  ;;  %4438 = vmatprep.subr.bf16.mxu0 %v8821_v16  ;;  %v8863_v29 = vld [vmem:[#allocation129_spill] sm:$0xff]  ;;  %v8864_v16 = vld [vmem:[#allocation131_spill] sm:$0xff] }
 0x5f1   :  { %4495 = vmatprep.subr.bf16.mxu1 %v8822_v14  ;;  %v8865_v14 = vld [vmem:[#allocation167_spill] sm:$0xff] }
 0x5f3   :  { %4439 = vmatpush1.bf16.msra.mxu0 %v8823_v18  ;;  %v8866_v18 = vld [vmem:[#allocation170_spill] sm:$0xff] }
 0x5f4   :  { %4496 = vmatpush2.bf16.msra.mxu1 %v8824_v8  ;;  %4440 = vmatprep.subr.bf16.mxu0 %v8825_v4  ;;  %v8867_v8 = vld [vmem:[#allocation133_spill] sm:$0xff]  ;;  %v8868_v4 = vld [vmem:[#allocation172_spill] sm:$0xff] }
 0x5f5   :  { %4497 = vmatprep.subr.bf16.mxu1 %v8826_v63  ;;  %v8869_v63 = vld [vmem:[#allocation174_spill] sm:$0xff] }
 0x5f7   :  { %4441 = vmatpush1.bf16.msra.mxu0 %v8827_v39  ;;  %v8870_v39 = vld [vmem:[#allocation176_spill] sm:$0xff] }
 0x5f8   :  { %4498 = vmatpush2.bf16.msra.mxu1 %v8828_v23  ;;  %4442 = vmatprep.subr.bf16.mxu0 %v8829_v5  ;;  %v8871_v23 = vld [vmem:[#allocation178_spill] sm:$0xff]  ;;  %v8872_v5 = vld [vmem:[#allocation53_spill] sm:$0xff] }
 0x5f9   :  { %4499 = vmatprep.subr.bf16.mxu1 %v8830_v35  ;;  %v8873_v35 = vld [vmem:[#allocation182_spill] sm:$0xff] }
 0x5fb   :  { %4443 = vmatpush1.bf16.msra.mxu0 %v8831_v37  ;;  %v8874_v37 = vld [vmem:[#allocation190_spill] sm:$0xff] }
 0x5fc   :  { %4500 = vmatpush2.bf16.msra.mxu1 %v8832_v10  ;;  %4444 = vmatprep.subr.bf16.mxu0 %v8833_v57  ;;  %v8875_v10 = vld [vmem:[#allocation192_spill] sm:$0xff]  ;;  %v8876_v57 = vld [vmem:[#allocation195_spill] sm:$0xff] }
 0x5fd   :  { %4501 = vmatprep.subr.bf16.mxu1 %v8834_v7  ;;  %v8877_v7 = vld [vmem:[#allocation197_spill] sm:$0xff] }
 0x5ff   :  { %4445 = vmatpush1.bf16.msra.mxu0 %v8835_v50  ;;  %v8878_v50 = vld [vmem:[#allocation199_spill] sm:$0xff] }
 0x600   :  { %4502 = vmatpush2.bf16.msra.mxu1 %v8836_v11  ;;  %4446 = vmatprep.subr.bf16.mxu0 %v8837_v21  ;;  %v8879_v11 = vld [vmem:[#allocation201_spill] sm:$0xff]  ;;  %v8880_v21 = vld [vmem:[#allocation203_spill] sm:$0xff] }
 0x601   :  { %4612 = vmatprep.subr.bf16.mxu1 %v8838_v38  ;;  %v8882_v38 = vld [vmem:[#allocation207_spill] sm:$0xff] }
 0x603   :  { %4504 = vmatmul.mubr.bf16.vlgmr.msra.gmra.mxu1 %v7468_v60  ;;  %4447 = vmatpush2.bf16.msra.mxu0 %v8839_v45  ;;  %v8883_v45 = vld [vmem:[#allocation209_spill] sm:$0xff] }
 0x604   :  { %4448 = vmatprep.subr.bf16.mxu0 %v8840_v25  ;;  %4613 = vmatpush1.bf16.msra.mxu1 %v8841_v1  ;;  %v8884_v25 = vld [vmem:[#allocation211_spill] sm:$0xff]  ;;  %v8885_v1 = vld [vmem:[#allocation213_spill] sm:$0xff] }
 0x605   :  { %4614 = vmatprep.subr.bf16.mxu1 %v8842_v17  ;;  %4644 = vmatprep.mubr.bf16.mxu1 %v8221_v19  ;;  %v8886_v17 = vld [vmem:[#allocation215_spill] sm:$0xff] }
 0x607   :  { %4449 = vmatpush2.bf16.msra.mxu0 %v8843_v55 }
 0x608   :  { %4450 = vmatprep.subr.bf16.mxu0 %v8844_v58  ;;  %4615 = vmatpush1.bf16.msra.mxu1 %v8845_v3  ;;  %v8887_v3 = vld [vmem:[#allocation111_spill] sm:$0xff] }
 0x609   :  { %4616 = vmatprep.subr.bf16.mxu1 %v8846_v49  ;;  %v8888_v49 = vld [vmem:[#allocation135_spill] sm:$0xff] }
 0x60b   :  { %4451 = vmatpush2.bf16.msra.mxu0 %v8847_v34 }
 0x60c   :  { %4452 = vmatprep.subr.bf16.mxu0 %v8848_v41  ;;  %4617 = vmatpush1.bf16.msra.mxu1 %v8849_v43 }
 0x60d   :  { %4618 = vmatprep.subr.bf16.mxu1 %v8850_v51  ;;  %v8889_v51 = vld [vmem:[#allocation114_spill] sm:$0xff] }
 0x60f   :  { %4453 = vmatpush2.bf16.msra.mxu0 %v8851_v22  ;;  %v8890_v22 = vld [vmem:[#allocation136_spill] sm:$0xff] }
 0x610   :  { %4454 = vmatprep.subr.bf16.mxu0 %v8852_v24  ;;  %4619 = vmatpush1.bf16.msra.mxu1 %v8853_v30 }
 0x611   :  { %4620 = vmatprep.subr.bf16.mxu1 %v8854_v33 }
 0x613   :  { %4455 = vmatpush2.bf16.msra.mxu0 %v8855_v46 }
 0x614   :  { %4456 = vmatprep.subr.bf16.mxu0 %v8856_v48  ;;  %4621 = vmatpush1.bf16.msra.mxu1 %v8857_v62  ;;  %v8891_v48 = vld [vmem:[#allocation164_spill] sm:$0xff] }
 0x615   :  { %4622 = vmatprep.subr.bf16.mxu1 %v8858_v2 }
 0x617   :  { %4457 = vmatpush2.bf16.msra.mxu0 %v8859_v32 }
 0x618   :  { %4458 = vmatprep.subr.bf16.mxu0 %v8860_v40  ;;  %4623 = vmatpush1.bf16.msra.mxu1 %v8861_v54  ;;  %v8892_v40 = vld [vmem:[#allocation165_spill] sm:$0xff] }
 0x619   :  { %4624 = vmatprep.subr.bf16.mxu1 %v8862_v26  ;;  %v8893_v26 = vld [vmem:[#allocation168_spill] sm:$0xff] }
 0x61b   :  { %4459 = vmatpush2.bf16.msra.mxu0 %v8863_v29 }
 0x61c   :  { %4460 = vmatprep.subr.bf16.mxu0 %v8864_v16  ;;  %4625 = vmatpush1.bf16.msra.mxu1 %v8865_v14  ;;  %v8894_v16 = vld [vmem:[#allocation169_spill] sm:$0xff]  ;;  %v8895_v14 = vld [vmem:[#allocation171_spill] sm:$0xff] }
 0x61d   :  { %4626 = vmatprep.subr.bf16.mxu1 %v8866_v18  ;;  %v8896_v18 = vld [vmem:[#allocation173_spill] sm:$0xff] }
 0x61f   :  { %4461 = vmatpush2.bf16.msra.mxu0 %v8867_v8  ;;  %v8898_v8 = vld [vmem:[#allocation177_spill] sm:$0xff] }
 0x620   :  { %4627 = vmatpush1.bf16.msra.mxu1 %v8868_v4  ;;  %4571 = vmatprep.subr.bf16.mxu0 %v8869_v63  ;;  %v8900_v4 = vld [vmem:[#allocation181_spill] sm:$0xff]  ;;  %v8901_v63 = vld [vmem:[#allocation183_spill] sm:$0xff] }
 0x621   :  { %4653 = vmatprep.subr.bf16.mxu1 %v8870_v39 }
 0x622   :  { %4463 = vmatmul.mubr.bf16.vlgmr.msra.gmra.mxu0 %v7468_v60  ;;  %v8881_v60 = vld [vmem:[#allocation205_spill] sm:$0xff] }
 0x623   :  { %4572 = vmatpush1.bf16.msra.mxu0 %v8871_v23  ;;  %v8902_v23 = vld [vmem:[#allocation186_spill] sm:$0xff] }
 0x624   :  { %4573 = vmatprep.subr.bf16.mxu0 %v8872_v5 }
 0x627   :  { %4574 = vmatpush1.bf16.msra.mxu0 %v8873_v35 }
 0x628   :  { %4575 = vmatprep.subr.bf16.mxu0 %v8874_v37  ;;  %v8903_v37 = vld [vmem:[#allocation187_spill] sm:$0xff] }
 0x62b   :  { %4576 = vmatpush1.bf16.msra.mxu0 %v8875_v10 }
 0x62c   :  { %4577 = vmatprep.subr.bf16.mxu0 %v8876_v57  ;;  %v8904_v57 = vld [vmem:[#allocation191_spill] sm:$0xff] }
 0x62f   :  { %4578 = vmatpush1.bf16.msra.mxu0 %v8877_v7  ;;  %v8905_v7 = vld [vmem:[#allocation137_spill] sm:$0xff] }
 0x630   :  { %4579 = vmatprep.subr.bf16.mxu0 %v8878_v50 }
 0x633   :  { %4580 = vmatpush1.bf16.msra.mxu0 %v8879_v11 }
 0x634   :  { %4581 = vmatprep.subr.bf16.mxu0 %v8880_v21  ;;  %v8906_v21 = vld [vmem:[#allocation138_spill] sm:$0xff] }
 0x637   :  { %4582 = vmatpush1.bf16.msra.mxu0 %v8881_v60 }
 0x638   :  { %4583 = vmatprep.subr.bf16.mxu0 %v8882_v38 }
 0x63b   :  { %4584 = vmatpush1.bf16.msra.mxu0 %v8883_v45 }
 0x63c   :  { %4585 = vmatprep.subr.bf16.mxu0 %v8884_v25 }
 0x63f   :  { %4586 = vmatpush1.bf16.msra.mxu0 %v8885_v1 }
 0x640   :  { %4587 = vmatprep.subr.bf16.mxu0 %v8886_v17 }
 0x642   :  { %v4194_v55 = vpop.f32.mrf.mxu0  ;;  %v4276_v58 = vpop.f32.mrf.mxu1 }
 0x643   :  { %4588 = vmatpush2.bf16.msra.mxu0 %v8887_v3  ;;  %v4195_v34 = vadd.f32 %v4194_v55, %v8888_v49  ;;  %v4277_v50 = vadd.f32 %v4276_v58, %v8905_v7 }
 0x644   :  { %v4196_v41 = vpop.f32.mrf.mxu0  ;;  %v4278_v43 = vpop.f32.mrf.mxu1  ;;  %4589 = vmatprep.subr.bf16.mxu0 %v8889_v51  ;;  %v8907_v51 = vld [vmem:[#allocation193_spill] sm:$0xff] }
 0x645   :  { %v4197_v24 = vadd.f32 %v4196_v41, %v8890_v22  ;;  %v4236_v62 = vadd.f32 %v7571_v56, %v4195_v34  ;;  %v8899_v56 = vld [vmem:[#allocation179_spill] sm:$0xff]  ;;  %v4279_v60 = vadd.f32 %v4278_v43, %v8906_v21 }
 0x646   :  { %v4198_v30 = vpop.f32.mrf.mxu0  ;;  %v4280_v33 = vpop.f32.mrf.mxu1 }
 0x647   :  { %v4238_v46 = vadd.f32 %v7576_v28, %v4197_v24  ;;  %4590 = vmatpush2.bf16.msra.mxu0 %v8891_v48  ;;  %v5229_v29 = vmul.f32 -1.442695, %v4236_v62  ;;  %v8897_v28 = vld [vmem:[#allocation175_spill] sm:$0xff] }
 0x648   :  { %v4199_v2 = vpop.f32.mrf.mxu0  ;;  %v4281_v32 = vpop.f32.mrf.mxu1  ;;  %4591 = vmatprep.subr.bf16.mxu0 %v8892_v40  ;;  %v8908_v48 = vld [vmem:[#allocation123_spill] sm:$0xff] }
 0x649   :  { %v5230_v54 = vmul.f32 -1.442695, %v4238_v46 }
 0x64b   :  { %4592 = vmatpush2.bf16.msra.mxu0 %v8893_v26  ;;  %5535 = vpow2.f32 %v5230_v54  ;;  %v8909_v54 = vld [vmem:[#allocation127_spill] sm:$0xff] }
 0x64c   :  { %4593 = vmatprep.subr.bf16.mxu0 %v8894_v16  ;;  %5537 = vpow2.f32 %v5229_v29 }
 0x64f   :  { %4594 = vmatpush2.bf16.msra.mxu0 %v8895_v14 }
 0x650   :  { %4595 = vmatprep.subr.bf16.mxu0 %v8896_v18 }
 0x653   :  { %4596 = vmatpush2.bf16.msra.mxu0 %v8897_v28  ;;  %v5702_v28 = vld [vmem:[#allocation10 + $0xe8] ss:$16 sps:$4 sm:$0xff]  }
 0x654   :  { %4597 = vmatprep.subr.bf16.mxu0 %v8898_v8  ;;  %v5703_v8 = vld [vmem:[#allocation10 + $0xcc] ss:$16 sps:$4 sm:$0xff]  }
 0x657   :  { %4598 = vmatpush2.bf16.msra.mxu0 %v8899_v56  ;;  %v5704_v56 = vld [vmem:[#allocation10 + $0xc8] ss:$16 sps:$4 sm:$0xff]  }
 0x658   :  { %4599 = vmatprep.subr.bf16.mxu0 %v8900_v4  ;;  %v5536_v39 = vpop.eup %5535  ;;  %v5705_v4 = vld [vmem:[#allocation10 + $0xac] ss:$16 sps:$4 sm:$0xff]  }
 0x659   :  { %v5538_v5 = vpop.eup %5537  ;;  %v4333_v35 = vadd.f32 1.0, %v5536_v39  ;;  %v5707_v39 = vld [vmem:[#allocation10 + $0x8c] ss:$16 sps:$4 sm:$0xff]  }
 0x65a   :  { %v4327_v10 = vadd.f32 1.0, %v5538_v5  ;;  %v8911_v5 = vld [vmem:[#allocation198_spill] sm:$0xff] }
 0x65b   :  { %4600 = vmatpush2.bf16.msra.mxu0 %v8901_v63  ;;  %5539 = vrcp.f32 %v4333_v35  ;;  %v5706_v63 = vld [vmem:[#allocation10 + $0xa8] ss:$16 sps:$4 sm:$0xff]  }
 0x65c   :  { %4601 = vmatprep.subr.bf16.mxu0 %v8902_v23  ;;  %5541 = vrcp.f32 %v4327_v10  ;;  %v8910_v23 = vld [vmem:[#allocation196_spill] sm:$0xff] }
 0x65d   :  { %v8912_v35 = vld [vmem:[#allocation200_spill] sm:$0xff] }
 0x65e   :  { %v8914_v10 = vld [vmem:[#allocation204_spill] sm:$0xff] }
 0x65f   :  { %4602 = vmatpush2.bf16.msra.mxu0 %v8903_v37  ;;  %v8913_v37 = vld [vmem:[#allocation202_spill] sm:$0xff] }
 0x660   :  { %4694 = vmatprep.subr.bf16.mxu0 %v8904_v57  ;;  %v8915_v57 = vld [vmem:[#allocation206_spill] sm:$0xff] }
 0x662   :  { %v4317_v11 = vpop.f32.mrf.mxu0 }
 0x663   :  { %v4318_v38 = vadd.f32 %v4317_v11, %v4277_v50 }
 0x664   :  { %v4319_v45 = vpop.f32.mrf.mxu0 }
 0x665   :  { %5543 = vtanh.f32 %v4318_v38  ;;  %v4320_v25 = vadd.f32 %v4319_v45, %v4279_v60  ;;  %v8916_v60 = vld [vmem:[#allocation208_spill] sm:$0xff]  ;;  %v8917_v38 = vld [vmem:[#allocation210_spill] sm:$0xff] }
 0x666   :  { %v4321_v1 = vpop.f32.mrf.mxu0 }
 0x667   :  { %v5231_v17 = vmul.f32 -1.442695, %v4320_v25  ;;  %v8918_v1 = vld [vmem:[#allocation212_spill] sm:$0xff] }
 0x668   :  { %v4322_v55 = vpop.f32.mrf.mxu0  ;;  %v5540_v3 = vpop.eup %5539 }
 0x669   :  { %5545 = vpow2.f32 %v5231_v17  ;;  %v5542_v34 = vpop.eup %5541  ;;  %v4343_v24 = vmul.f32 %v5540_v3, %v8907_v51  ;;  %v8919_v17 = vld [vmem:[#allocation73_spill] sm:$0xff]  ;;  %v8920_v55 = vld [vmem:[#allocation214_spill] sm:$0xff]  ;;  %v8921_v3 = vld [vmem:[#allocation75_spill] sm:$0xff] }
 0x66a   :  { %v8924_v51 = vld [vmem:[#allocation155_spill] sm:$0xff] }
 0x672   :  { %v5544_v41 = vpop.eup %5543 }
 0x673   :  { %v4344_v30 = vmul.f32 %v5544_v41, %v5542_v34  ;;  %v8922_v34 = vld [vmem:[#allocation180_spill] sm:$0xff] }
 0x674   :  { %v8923_v41 = vld [vmem:[#allocation184_spill] sm:$0xff] }
 0x675   :  { %v7718_v58 = vadd.f32 %v4344_v30, %v4343_v24  ;;  %v8925_v24 = vld [vmem:[#allocation156_spill] sm:$0xff]  ;;  %v8926_v30 = vld [vmem:[#allocation33_spill] sm:$0xff] }
 0x676   :  { %v5546_v33 = vpop.eup %5545 }
 0x677   :  { %v4340_v46 = vadd.f32 1.0, %v5546_v33  ;;  %5547 = vtanh.f32 %v7718_v58  ;;  %v8927_v33 = vld [vmem:[#allocation17_spill] sm:$0xff] }
 0x679   :  { %5549 = vrcp.f32 %v4340_v46  ;;  %v8928_v46 = vld [vmem:[#allocation35_spill] sm:$0xff] }
 0x683   :  { %v4423_v43 = vpop.f32.mrf.mxu1 }
 0x684   :  { %v4514_v62 = vadd.f32 %v4423_v43, %v8908_v48  ;;  %v5548_v2 = vpop.eup %5547  ;;  %v8929_v43 = vld [vmem:[#allocation18_spill] sm:$0xff]  ;;  %v8930_v48 = vld [vmem:[#allocation37_spill] sm:$0xff] }
 0x685   :  { %v4425_v32 = vpop.f32.mrf.mxu1 }
 0x686   :  { %v5550_v40 = vpop.eup %5549  ;;  %v4515_v26 = vadd.f32 %v4425_v32, %v8909_v54 }
 0x687   :  { %v4427_v29 = vpop.f32.mrf.mxu1  ;;  %v4347_v16 = vmul.f32 %v5550_v40, %v5548_v2  ;;  %v8931_v2 = vld [vmem:[#allocation19_spill] sm:$0xff] }
 0x688   :  { %v8932_v40 = vld [vmem:[#allocation39_spill] sm:$0xff]  ;;  %v8933_v29 = vld [vmem:[#allocation20_spill] sm:$0xff] }
 0x689   :  { %v4428_v14 = vpop.f32.mrf.mxu1  ;;  %v7723_v18 = vpack.c.bf16 %v4347_v16, %v4347_v16  ;;  %v8934_v16 = vld [vmem:[#allocation85_spill] sm:$0xff] }
 0x68b   :  { %4645 = vmatmul.mubr.bf16.vlgmr.msra.gmra.mxu1 %v7723_v18 }
 0x68c   :  { %4654 = vmatpush1.bf16.msra.mxu1 %v5702_v28 }
 0x68d   :  { %4655 = vmatprep.subr.bf16.mxu1 %v5703_v8  ;;  %v5234_v8 = vmul.f32 -1.442695, %v4514_v62 }
 0x68f   :  { %5551 = vpow2.f32 %v5234_v8 }
 0x690   :  { %4656 = vmatpush1.bf16.msra.mxu1 %v5704_v56  ;;  %v8935_v56 = vld [vmem:[#allocation41_spill] sm:$0xff] }
 0x691   :  { %4657 = vmatprep.subr.bf16.mxu1 %v5705_v4  ;;  %v5235_v4 = vmul.f32 -1.442695, %v4515_v26 }
 0x693   :  { %5553 = vpow2.f32 %v5235_v4 }
 0x694   :  { %4658 = vmatpush1.bf16.msra.mxu1 %v5706_v63 }
 0x695   :  { %4659 = vmatprep.subr.bf16.mxu1 %v5707_v39  ;;  %v8936_v39 = vld [vmem:[#allocation87_spill] sm:$0xff] }
 0x698   :  { %4660 = vmatpush1.bf16.msra.mxu1 %v8910_v23 }
 0x699   :  { %4661 = vmatprep.subr.bf16.mxu1 %v8911_v5 }
 0x69c   :  { %4662 = vmatpush1.bf16.msra.mxu1 %v8912_v35 }
 0x69d   :  { %4663 = vmatprep.subr.bf16.mxu1 %v8913_v37  ;;  %v5552_v37 = vpop.eup %5551 }
 0x6a0   :  { %4664 = vmatpush1.bf16.msra.mxu1 %v8914_v10  ;;  %v5554_v10 = vpop.eup %5553 }
 0x6a1   :  { %4665 = vmatprep.subr.bf16.mxu1 %v8915_v57  ;;  %v8937_v57 = vld [vmem:[#allocation189_spill] sm:$0xff] }
 0x6a2   :  { %v4382_v50 = vpop.f32.mrf.mxu0 }
 0x6a3   :  { %v4512_v14 = vadd.f32 %v4382_v50, %v8934_v16  ;;  %v4538_v50 = vadd.f32 1.0, %v5552_v37 }
 0x6a4   :  { %v4384_v11 = vpop.f32.mrf.mxu0  ;;  %4666 = vmatpush1.bf16.msra.mxu1 %v8916_v60 }
 0x6a5   :  { %4667 = vmatprep.subr.bf16.mxu1 %v8917_v38  ;;  %v4513_v23 = vadd.f32 %v4384_v11, %v8936_v39  ;;  %v5232_v5 = vmul.f32 -1.442695, %v4512_v14 }
 0x6a6   :  { %v4386_v45 = vpop.f32.mrf.mxu0 }
 0x6a7   :  { %v5233_v35 = vmul.f32 -1.442695, %v4513_v23  ;;  %5555 = vpow2.f32 %v5232_v5  ;;  %v8938_v45 = vld [vmem:[#allocation194_spill] sm:$0xff] }
 0x6a8   :  { %v4387_v25 = vpop.f32.mrf.mxu0  ;;  %4668 = vmatpush1.bf16.msra.mxu1 %v8918_v1 }
 0x6a9   :  { %4669 = vmatprep.subr.bf16.mxu1 %v8919_v17  ;;  %5557 = vpow2.f32 %v5233_v35  ;;  %v4539_v25 = vadd.f32 1.0, %v5554_v10 }
 0x6aa   :  { %5559 = vrcp.f32 %v4538_v50 }
 0x6ab   :  { %5561 = vrcp.f32 %v4539_v25 }
 0x6ac   :  { %4670 = vmatpush2.bf16.msra.mxu1 %v8920_v55 }
 0x6ad   :  { %4671 = vmatprep.subr.bf16.mxu1 %v8921_v3 }
 0x6b0   :  { %4672 = vmatpush2.bf16.msra.mxu1 %v8922_v34  ;;  %v8939_v34 = vld [vmem:[#allocation160_spill] sm:$0xff] }
 0x6b1   :  { %4673 = vmatprep.subr.bf16.mxu1 %v8923_v41 }
 0x6b4   :  { %4674 = vmatpush2.bf16.msra.mxu1 %v8924_v51  ;;  %v5556_v38 = vpop.eup %5555 }
 0x6b5   :  { %4675 = vmatprep.subr.bf16.mxu1 %v8925_v24  ;;  %v4526_v17 = vadd.f32 1.0, %v5556_v38  ;;  %v8940_v24 = vld [vmem:[#allocation161_spill] sm:$0xff] }
 0x6b6   :  { %v5558_v26 = vpop.eup %5557 }
 0x6b7   :  { %v4527_v55 = vadd.f32 1.0, %v5558_v26 }
 0x6b8   :  { %4676 = vmatpush2.bf16.msra.mxu1 %v8926_v30 }
 0x6b9   :  { %4677 = vmatprep.subr.bf16.mxu1 %v8927_v33 }
 0x6bc   :  { %4678 = vmatpush2.bf16.msra.mxu1 %v8928_v46 }
 0x6bd   :  { %4679 = vmatprep.subr.bf16.mxu1 %v8929_v43  ;;  %v5560_v43 = vpop.eup %5559 }
 0x6be   :  { %v4558_v14 = vmul.f32 %v5560_v43, %v7459_v47 }
 0x6c0   :  { %4680 = vmatpush2.bf16.msra.mxu1 %v8930_v48  ;;  %v5562_v48 = vpop.eup %5561 }
 0x6c1   :  { %4681 = vmatprep.subr.bf16.mxu1 %v8931_v2 }
 0x6c3   :  { %v4505_v32 = vpop.f32.mrf.mxu1 }
 0x6c4   :  { %4682 = vmatpush2.bf16.msra.mxu1 %v8932_v40  ;;  %v4518_v60 = vadd.f32 %v4505_v32, %v8937_v57 }
 0x6c5   :  { %v4507_v54 = vpop.f32.mrf.mxu1  ;;  %4683 = vmatprep.subr.bf16.mxu1 %v8933_v29 }
 0x6c6   :  { %v4519_v62 = vadd.f32 %v4507_v54, %v8938_v45  ;;  %v5236_v1 = vmul.f32 -1.442695, %v4518_v60 }
 0x6c7   :  { %v4509_v28 = vpop.f32.mrf.mxu1 }
 0x6c8   :  { %4684 = vmatpush2.bf16.msra.mxu1 %v8935_v56  ;;  %v5237_v11 = vmul.f32 -1.442695, %v4519_v62  ;;  %5563 = vpow2.f32 %v5236_v1 }
 0x6c9   :  { %v4510_v63 = vpop.f32.mrf.mxu1  ;;  %5565 = vrcp.f32 %v4526_v17 }
 0x6ca   :  { %5567 = vpow2.f32 %v5237_v11  ;;  %v4559_v63 = vmul.f32 %v5562_v48, %v7463_v27 }
 0x6d5   :  { %v5564_v2 = vpop.eup %5563 }
 0x6d6   :  { %v5566_v32 = vpop.eup %5565  ;;  %v4552_v29 = vadd.f32 1.0, %v5564_v2 }
 0x6d7   :  { %v5568_v40 = vpop.eup %5567 }
 0x6d8   :  { %v4553_v56 = vadd.f32 1.0, %v5568_v40 }
 0x6e2   :  { %v4464_v3 = vpop.f32.mrf.mxu0 }
 0x6e3   :  { %v4516_v41 = vadd.f32 %v4464_v3, %v8939_v34 }
 0x6e4   :  { %v4466_v51 = vpop.f32.mrf.mxu0 }
 0x6e5   :  { %5569 = vtanh.f32 %v4516_v41  ;;  %v4517_v30 = vadd.f32 %v4466_v51, %v8940_v24 }
 0x6e6   :  { %5571 = vrcp.f32 %v4527_v55  ;;  %v4468_v33 = vpop.f32.mrf.mxu0 }
 0x6e7   :  { %5573 = vtanh.f32 %v4517_v30 }
 0x6e8   :  { %v4469_v46 = vpop.f32.mrf.mxu0  ;;  %5575 = vrcp.f32 %v4552_v29 }
 0x6f2   :  { %v5570_v54 = vpop.eup %5569 }
 0x6f3   :  { %v5572_v16 = vpop.eup %5571  ;;  %v4560_v28 = vmul.f32 %v5570_v54, %v5566_v32 }
 0x6f4   :  { %v5574_v8 = vpop.eup %5573 }
 0x6f5   :  { %v4562_v4 = vadd.f32 %v4560_v28, %v4558_v14  ;;  %v4561_v39 = vmul.f32 %v5574_v8, %v5572_v16  ;;  %v5576_v5 = vpop.eup %5575 }
 0x6f7   :  { %5577 = vtanh.f32 %v4562_v4  ;;  %v4563_v23 = vadd.f32 %v4561_v39, %v4559_v63 }
 0x6f8   :  { %5579 = vrcp.f32 %v4553_v56 }
 0x6f9   :  { %5581 = vtanh.f32 %v4563_v23 }
 0x704   :  { %v5578_v35 = vpop.eup %5577 }
 0x705   :  { %v5580_v37 = vpop.eup %5579  ;;  %v4566_v10 = vmul.f32 %v5578_v35, %v5576_v5 }
 0x706   :  { %v5582_v57 = vpop.eup %5581 }
 0x707   :  { %v4567_v60 = vmul.f32 %v5582_v57, %v5580_v37  ;;  %v4568_v47 = vpack.c.bf16 %v4566_v10, %v4566_v10 }
 0x709   :  { %v4569_v38 = vpack.c.bf16 %v4567_v60, %v4567_v60 }
 0x70b   :  { %4603 = vmatprep.mubr.bf16.mxu0 %v4569_v38  ;;  %4685 = vmatprep.mubr.bf16.mxu1 %v4569_v38 }
 0x70c   :  { %4604 = vmatmul.mubr.bf16.vlgmr.msra.gmra.mxu0 %v4568_v47  ;;  %4686 = vmatmul.mubr.bf16.vlgmr.msra.gmra.mxu1 %v4568_v47 }
 0x70d   :  { %4695 = vmatpush1.bf16.msra.mxu0 %v7474_v36  ;;  %4726 = vmatprep.mubr.bf16.mxu0 %v8221_v19 }
 0x70e   :  { %4696 = vmatprep.subr.bf16.mxu0 %v7479_v15 }
 0x711   :  { %4697 = vmatpush1.bf16.msra.mxu0 %v7484_v53 }
 0x712   :  { %4698 = vmatprep.subr.bf16.mxu0 %v7488_v0 }
 0x715   :  { %4699 = vmatpush1.bf16.msra.mxu0 %v7492_v42 }
 0x716   :  { %4700 = vmatprep.subr.bf16.mxu0 %v7496_v44 }
 0x719   :  { %4701 = vmatpush1.bf16.msra.mxu0 %v7500_v9 }
 0x71a   :  { %4702 = vmatprep.subr.bf16.mxu0 %v7504_v52 }
 0x71d   :  { %4703 = vmatpush1.bf16.msra.mxu0 %v7508_v13 }
 0x71e   :  { %4704 = vmatprep.subr.bf16.mxu0 %v7512_v20 }
 0x721   :  { %4705 = vmatpush1.bf16.msra.mxu0 %v7516_v61 }
 0x722   :  { %4706 = vmatprep.subr.bf16.mxu0 %v7520_v6 }
 0x725   :  { %4707 = vmatpush1.bf16.msra.mxu0 %v7524_v31 }
 0x726   :  { %4708 = vmatprep.subr.bf16.mxu0 %v7528_v12 }
 0x729   :  { %4709 = vmatpush1.bf16.msra.mxu0 %v7532_v59 }
 0x72c   :  { %4727 = vmatmul.mubr.bf16.vlgmr.msra.gmra.mxu0 %v7723_v18 }
 0x74b   :  { %v4646_v19 = vpop.f32.mrf.mxu1 }
 0x74d   :  { %v4648_v27 = vpop.f32.mrf.mxu1 }
 0x74f   :  { %v4650_v36 = vpop.f32.mrf.mxu1 }
 0x751   :  { %v4651_v15 = vpop.f32.mrf.mxu1 }
 0x7cc   :  { %v4605_v53 = vpop.f32.mrf.mxu0  ;;  %v4687_v0 = vpop.f32.mrf.mxu1 }
 0x7cd   :  { %v4606_v42 = vadd.f32 %v4605_v53, %v8888_v49  ;;  %v4688_v49 = vadd.f32 %v4687_v0, %v8905_v7 }
 0x7ce   :  { %v4607_v44 = vpop.f32.mrf.mxu0  ;;  %v4689_v9 = vpop.f32.mrf.mxu1 }
 0x7cf   :  { %v4608_v52 = vadd.f32 %v4607_v44, %v8890_v22  ;;  %v4647_v6 = vadd.f32 %v4646_v19, %v4606_v42  ;;  %v4690_v22 = vadd.f32 %v4689_v9, %v8906_v21 }
 0x7d0   :  { %v4609_v13 = vpop.f32.mrf.mxu0  ;;  %v4691_v20 = vpop.f32.mrf.mxu1 }
 0x7d1   :  { %v4649_v61 = vadd.f32 %v4648_v27, %v4608_v52  ;;  %v5238_v18 = vmul.f32 -1.442695, %v4647_v6 }
 0x7d2   :  { %v4610_v31 = vpop.f32.mrf.mxu0  ;;  %v4692_v12 = vpop.f32.mrf.mxu1 }
 0x7d3   :  { %v5239_v59 = vmul.f32 -1.442695, %v4649_v61 }
 0x7d5   :  { %5583 = vpow2.f32 %v5239_v59 }
 0x7d6   :  { %5585 = vpow2.f32 %v5238_v18 }
 0x7e2   :  { %v5584_v50 = vpop.eup %5583 }
 0x7e3   :  { %v5586_v45 = vpop.eup %5585  ;;  %v4744_v62 = vadd.f32 1.0, %v5584_v50 }
 0x7e4   :  { %v4738_v25 = vadd.f32 1.0, %v5586_v45 }
 0x7e5   :  { %5587 = vrcp.f32 %v4744_v62 }
 0x7e6   :  { %5589 = vrcp.f32 %v4738_v25 }
 0x7ec   :  { %v4728_v1 = vpop.f32.mrf.mxu0 }
 0x7ed   :  { %v4729_v26 = vadd.f32 %v4728_v1, %v4688_v49 }
 0x7ee   :  { %v4730_v17 = vpop.f32.mrf.mxu0 }
 0x7ef   :  { %5591 = vtanh.f32 %v4729_v26  ;;  %v4731_v11 = vadd.f32 %v4730_v17, %v4690_v22 }
 0x7f0   :  { %v4732_v55 = vpop.f32.mrf.mxu0 }
 0x7f1   :  { %v5240_v3 = vmul.f32 -1.442695, %v4731_v11 }
 0x7f2   :  { %v4733_v34 = vpop.f32.mrf.mxu0  ;;  %v5588_v41 = vpop.eup %5587 }
 0x7f3   :  { %5593 = vpow2.f32 %v5240_v3  ;;  %v5590_v51 = vpop.eup %5589  ;;  %v4754_v33 = vmul.f32 %v5588_v41, %v7718_v58 }
 0x7fc   :  { %v5592_v24 = vpop.eup %5591 }
 0x7fd   :  { %v4755_v30 = vmul.f32 %v5592_v24, %v5590_v51 }
 0x7ff   :  { %v4756_v7 = vadd.f32 %v4755_v30, %v4754_v33 }
 0x800   :  { %v5594_v46 = vpop.eup %5593 }
 0x801   :  { %v4751_v43 = vadd.f32 1.0, %v5594_v46  ;;  %5595 = vtanh.f32 %v4756_v7 }
 0x803   :  { %5597 = vrcp.f32 %v4751_v43 }
 0x80e   :  { %v5596_v21 = vpop.eup %5595 }
 0x810   :  { %v5598_v48 = vpop.eup %5597 }
 0x811   :  { %v4758_v2 = vmul.f32 %v5598_v48, %v5596_v21 }
 0x813   :  { %v4759_v32 = vmul.f32 %v4758_v2, %v4758_v2 }
 0x815   :  { %4760 = vadd.xlane.f32.xlu0 %v4759_v32 }
 0x89e   :  { %v4761_v40 = vpop.xlane.xlu0 %4760 }
 0x89f   :  { %v4762_v54 = vadd.f32 1e-12, %v4761_v40 }
 0x8a1   :  { %5599 = vrsqrt.f32 %v4762_v54 }
 0x8ae   :  { %v5600_v29 = vpop.eup %5599 }
 0x8af   :  { %v4764_v16 = vmul.f32 %v5600_v29, %v4758_v2 }
 0x8b1   :  { %4765 = vst [vmem:[#allocation11] sm:$0xff] %v4764_v16 }
 0x8b2   :  { %5819 = shalt.err (!%p5816_p1)
}
 0x8b3   :  { %4775 = dma.vmem_to_hbm [thread:$0]  %s4773_s24, 128, %s7790_s6, [#allocation4]  }
 0x8b4   :  { %5834 = dma.done.wait [#allocation4], 128  }
 0x8b5   :  { %5835 = vsyncadd [#allocation4], 4294967168 }
 0x8b6   :  { %4779 = vsyncpa [#allocation3], 1 }
 0x8b7   :  { %4780 = vsyncpa [#allocation6], 1 }
 0x8b8   :  { %4781 = vsyncpa [#allocation9], 1 }
 0x8b9   :  { %4782 = vsyncpa [#allocation4], 1 }

</bundles_post_ra>
